<compile_context>
chip_gen: v7x
topology: tpu7x:2x2x1
jax: 0.10.0
libtpu: 0.0.40
codegen_flags: <defaults>
</compile_context>

<pallas_src>
import functools
import math

import jax
import jax.numpy as jnp
from jax.experimental import pallas as pl
from jax.experimental.pallas import tpu as pltpu

_INV_SQRT2 = 1.0 / math.sqrt(2.0)
_VMEM_LIMIT = 64 * 1024 * 1024


# ------------------------------ tiling helper -------------------------------

def _pick_tile(dim, cap, align):
    """Largest multiple of `align` <= cap that divides dim; else the full dim."""
    if dim <= cap:
        return dim
    t = (cap // align) * align
    while t >= align:
        if dim % t == 0:
            return t
        t -= align
    return dim


def _align_for(n):
    """Prefer 256-aligned tiles (v6e/v7x 2x256 MXU); fall back to 128."""
    return 256 if n % 256 == 0 else 128


# ----------------------------- linear kernels -------------------------------

def _bias_act(y, b_ref, act):
    y = y + b_ref[...].astype(jnp.float32)
    if act == "gelu":
        # exact (erf) GELU, matching PyTorch F.gelu default
        y = 0.5 * y * (1.0 + jax.lax.erf(y * _INV_SQRT2))
    return y


def _bf16_dot(x, w):
    return jnp.dot(x.astype(jnp.bfloat16), w.astype(jnp.bfloat16),
                   preferred_element_type=jnp.float32)


def _linear_acc_kernel(x_ref, w_ref, b_ref, o_ref, acc_ref, *, act):
    """One (tm,tn) output tile; K-reduction over grid axis 2."""
    @pl.when(pl.program_id(2) == 0)
    def _():
        acc_ref[...] = jnp.zeros_like(acc_ref)

    acc_ref[...] += _bf16_dot(x_ref[...], w_ref[...])

    @pl.when(pl.program_id(2) == pl.num_programs(2) - 1)
    def _():
        o_ref[...] = _bias_act(acc_ref[...], b_ref, act).astype(o_ref.dtype)


def _linear_noacc_kernel(x_ref, w_ref, b_ref, o_ref, *, act):
    """Single-K-tile variant: no scratch accumulator, no pl.when branches."""
    y = _bf16_dot(x_ref[...], w_ref[...])
    o_ref[...] = _bias_act(y, b_ref, act).astype(o_ref.dtype)


def linear(x, w, b, act=None):
    """y = x @ w + b (optionally fused GELU).  x:(M,K) w:(K,N) b:(N,)."""
    M, K = x.shape
    K2, N = w.shape
    assert K == K2
    orig_N = N
    # Pad the output dim so a 128-aligned tile always exists (e.g. LM-head
    # vocab sizes that are not multiples of 128 must never force a whole-N
    # weight tile).
    n_pad = (-N) % 128 if N > 128 else 0
    if n_pad:
        w = jnp.pad(w, ((0, 0), (0, n_pad)))
        b = jnp.pad(b, ((0, n_pad),))
        N = N + n_pad

    tm = _pick_tile(M, 512, 8)
    tn = _pick_tile(N, 1024, _align_for(N))
    tk = _pick_tile(K, 512, _align_for(K))
    b2 = b.reshape(1, N)

    if tk == K:
        out = pl.pallas_call(
            functools.partial(_linear_noacc_kernel, act=act),
            out_shape=jax.ShapeDtypeStruct((M, N), x.dtype),
            grid=(M // tm, N // tn),
            in_specs=[pl.BlockSpec((tm, K), lambda i, j: (i, 0)),
                      pl.BlockSpec((K, tn), lambda i, j: (0, j)),
                      pl.BlockSpec((1, tn), lambda i, j: (0, j))],
            out_specs=pl.BlockSpec((tm, tn), lambda i, j: (i, j)),
            compiler_params=pltpu.CompilerParams(
                dimension_semantics=("parallel", "parallel"),
                vmem_limit_bytes=_VMEM_LIMIT),
        )(x, w, b2)
    else:
        out = pl.pallas_call(
            functools.partial(_linear_acc_kernel, act=act),
            out_shape=jax.ShapeDtypeStruct((M, N), x.dtype),
            grid=(M // tm, N // tn, K // tk),
            in_specs=[pl.BlockSpec((tm, tk), lambda i, j, k: (i, k)),
                      pl.BlockSpec((tk, tn), lambda i, j, k: (k, j)),
                      pl.BlockSpec((1, tn), lambda i, j, k: (0, j))],
            out_specs=pl.BlockSpec((tm, tn), lambda i, j, k: (i, j)),
            scratch_shapes=[pltpu.VMEM((tm, tn), jnp.float32)],
            compiler_params=pltpu.CompilerParams(
                dimension_semantics=("parallel", "parallel", "arbitrary"),
                vmem_limit_bytes=_VMEM_LIMIT),
        )(x, w, b2)
    return out[:, :orig_N] if n_pad else out


# ---------------- matmul with fused residual-add + LayerNorm ----------------

def _ln_epilogue(h, g_ref, bb_ref, eps):
    mean = jnp.mean(h, axis=-1, keepdims=True)
    c = h - mean
    var = jnp.mean(c * c, axis=-1, keepdims=True)
    return (c * jax.lax.rsqrt(var + eps) * g_ref[...].astype(jnp.float32)
            + bb_ref[...].astype(jnp.float32))


def _linear_add_ln_acc_kernel(x_ref, w_ref, b_ref, r_ref, g_ref, bb_ref,
                              o_ref, acc_ref, *, eps):
    @pl.when(pl.program_id(1) == 0)
    def _():
        acc_ref[...] = jnp.zeros_like(acc_ref)

    acc_ref[...] += _bf16_dot(x_ref[...], w_ref[...])

    @pl.when(pl.program_id(1) == pl.num_programs(1) - 1)
    def _():
        h = (acc_ref[...] + b_ref[...].astype(jnp.float32)
             + r_ref[...].astype(jnp.float32))
        o_ref[...] = _ln_epilogue(h, g_ref, bb_ref, eps).astype(o_ref.dtype)


def _linear_add_ln_noacc_kernel(x_ref, w_ref, b_ref, r_ref, g_ref, bb_ref,
                                o_ref, *, eps):
    h = (_bf16_dot(x_ref[...], w_ref[...]) + b_ref[...].astype(jnp.float32)
         + r_ref[...].astype(jnp.float32))
    o_ref[...] = _ln_epilogue(h, g_ref, bb_ref, eps).astype(o_ref.dtype)


def linear_add_layernorm(x, w, b, resid, gamma, beta, eps=1e-5):
    """y = LayerNorm(x @ w + b + resid).  x:(M,K) w:(K,D) resid:(M,D)."""
    M, K = x.shape
    K2, N = w.shape
    assert K == K2 and resid.shape == (M, N)
    tm = _pick_tile(M, 256, 8)
    tk = _pick_tile(K, 512, _align_for(K))
    b2, g2, bb2 = b.reshape(1, N), gamma.reshape(1, N), beta.reshape(1, N)

    if tk == K:
        return pl.pallas_call(
            functools.partial(_linear_add_ln_noacc_kernel, eps=eps),
            out_shape=jax.ShapeDtypeStruct((M, N), x.dtype),
            grid=(M // tm,),
            in_specs=[pl.BlockSpec((tm, K), lambda i: (i, 0)),
                      pl.BlockSpec((K, N), lambda i: (0, 0)),
                      pl.BlockSpec((1, N), lambda i: (0, 0)),
                      pl.BlockSpec((tm, N), lambda i: (i, 0)),
                      pl.BlockSpec((1, N), lambda i: (0, 0)),
                      pl.BlockSpec((1, N), lambda i: (0, 0))],
            out_specs=pl.BlockSpec((tm, N), lambda i: (i, 0)),
            compiler_params=pltpu.CompilerParams(
                dimension_semantics=("parallel",),
                vmem_limit_bytes=_VMEM_LIMIT),
        )(x, w, b2, resid, g2, bb2)

    return pl.pallas_call(
        functools.partial(_linear_add_ln_acc_kernel, eps=eps),
        out_shape=jax.ShapeDtypeStruct((M, N), x.dtype),
        grid=(M // tm, K // tk),
        in_specs=[pl.BlockSpec((tm, tk), lambda i, k: (i, k)),
                  pl.BlockSpec((tk, N), lambda i, k: (k, 0)),
                  pl.BlockSpec((1, N), lambda i, k: (0, 0)),
                  pl.BlockSpec((tm, N), lambda i, k: (i, 0)),
                  pl.BlockSpec((1, N), lambda i, k: (0, 0)),
                  pl.BlockSpec((1, N), lambda i, k: (0, 0))],
        out_specs=pl.BlockSpec((tm, N), lambda i, k: (i, 0)),
        scratch_shapes=[pltpu.VMEM((tm, N), jnp.float32)],
        compiler_params=pltpu.CompilerParams(
            dimension_semantics=("parallel", "arbitrary"),
            vmem_limit_bytes=_VMEM_LIMIT),
    )(x, w, b2, resid, g2, bb2)


# ------------------------------ final LayerNorm -----------------------------

def _ln_kernel(x_ref, g_ref, b_ref, o_ref, *, eps):
    h = x_ref[...].astype(jnp.float32)
    o_ref[...] = _ln_epilogue(h, g_ref, b_ref, eps).astype(o_ref.dtype)


def layernorm(x, gamma, beta, eps=1e-5):
    M, D = x.shape
    tm = _pick_tile(M, 512, 8)
    return pl.pallas_call(
        functools.partial(_ln_kernel, eps=eps),
        out_shape=jax.ShapeDtypeStruct((M, D), x.dtype),
        grid=(M // tm,),
        in_specs=[pl.BlockSpec((tm, D), lambda i: (i, 0)),
                  pl.BlockSpec((1, D), lambda i: (0, 0)),
                  pl.BlockSpec((1, D), lambda i: (0, 0))],
        out_specs=pl.BlockSpec((tm, D), lambda i: (i, 0)),
        compiler_params=pltpu.CompilerParams(
            dimension_semantics=("parallel",),
            vmem_limit_bytes=_VMEM_LIMIT),
    )(x, gamma.reshape(1, D), beta.reshape(1, D))


# --------------------------- flash-style attention --------------------------
# Heads stay packed in the lane dim; the online-softmax state (m/l/acc) lives
# in per-head VMEM scratch indexed on its LEADING axis, and the output is one
# lane-dense (tq, D) store built by concatenating head results.
#
# TODO(synk): the per-head q/k/v reads are still lane slices of the packed
# (., 3D)/(., 2D) blocks (relayout when Dh < 128); a head-major (B,H,S,Dh)
# layout would remove them at the cost of an HBM transpose after the QKV
# matmul.

def _flash_init(m_ref, l_ref, acc_ref):
    m_ref[...] = jnp.full_like(m_ref, -jnp.inf)
    l_ref[...] = jnp.zeros_like(l_ref)
    acc_ref[...] = jnp.zeros_like(acc_ref)


def _flash_update(h, s, v, m_ref, l_ref, acc_ref):
    m_old = m_ref[h]
    m_new = jnp.maximum(m_old, jnp.max(s, axis=-1, keepdims=True))
    a = jnp.exp(m_old - m_new)
    p = jnp.exp(s - m_new)
    l_ref[h] = a * l_ref[h] + jnp.sum(p, axis=-1, keepdims=True)
    acc_ref[h] = a * acc_ref[h] + jnp.dot(
        p.astype(jnp.bfloat16), v.astype(jnp.bfloat16),
        preferred_element_type=jnp.float32)
    m_ref[h] = m_new


def _flash_finalize(o_ref, l_ref, acc_ref, num_heads):
    outs = [acc_ref[h] * pl.reciprocal(l_ref[h], approx=True)
            for h in range(num_heads)]
    o_ref[0] = jnp.concatenate(outs, axis=-1).astype(o_ref.dtype)


def _self_attn_kernel(q_src_ref, kv_src_ref, o_ref, m_ref, l_ref, acc_ref,
                      *, num_heads, head_dim, scale, tq, tkv):
    """Causal flash self-attention.  q block (1,tq,3D) [q|k|v] (uses q lanes),
    kv block (1,tkv,3D) (uses k/v lanes).  Output (1,tq,D)."""
    H, Dh = num_heads, head_dim
    D = H * Dh
    qi = pl.program_id(1)
    kvi = pl.program_id(2)

    @pl.when(kvi == 0)
    def _():
        _flash_init(m_ref, l_ref, acc_ref)

    # Skip KV tiles that lie entirely above the causal diagonal.
    @pl.when(kvi * tkv <= qi * tq + (tq - 1))
    def _():
        row = qi * tq + jax.lax.broadcasted_iota(jnp.int32, (tq, tkv), 0)
        col = kvi * tkv + jax.lax.broadcasted_iota(jnp.int32, (tq, tkv), 1)
        masked = col > row
        neg_inf = jnp.float32(-jnp.inf)
        for h in range(H):
            # softmax scale folded into q (O(tq*Dh) instead of O(tq*tkv))
            q = q_src_ref[0, :, h * Dh:(h + 1) * Dh].astype(jnp.float32) * scale
            k = kv_src_ref[0, :, D + h * Dh:D + (h + 1) * Dh]
            v = kv_src_ref[0, :, 2 * D + h * Dh:2 * D + (h + 1) * Dh]
            s = jax.lax.dot_general(
                q.astype(jnp.bfloat16), k.astype(jnp.bfloat16),
                (((1,), (1,)), ((), ())),
                preferred_element_type=jnp.float32)        # (tq, tkv) f32
            s = jnp.where(masked, neg_inf, s)
            _flash_update(h, s, v, m_ref, l_ref, acc_ref)

    @pl.when(kvi == pl.num_programs(2) - 1)
    def _():
        _flash_finalize(o_ref, l_ref, acc_ref, H)


def self_attention(qkv, B, S, H, Dh):
    """qkv:(B,S,3D) columns [q|k|v] -> (B,S,D) causal attention output."""
    D = H * Dh
    tq = _pick_tile(S, 256, 8)
    tkv = _pick_tile(S, 512, 8)
    kernel = functools.partial(_self_attn_kernel, num_heads=H, head_dim=Dh,
                               scale=1.0 / math.sqrt(Dh), tq=tq, tkv=tkv)
    return pl.pallas_call(
        kernel,
        out_shape=jax.ShapeDtypeStruct((B, S, D), qkv.dtype),
        grid=(B, S // tq, S // tkv),
        in_specs=[pl.BlockSpec((1, tq, 3 * D), lambda b, qi, kvi: (b, qi, 0)),
                  pl.BlockSpec((1, tkv, 3 * D), lambda b, qi, kvi: (b, kvi, 0))],
        out_specs=pl.BlockSpec((1, tq, D), lambda b, qi, kvi: (b, qi, 0)),
        scratch_shapes=[pltpu.VMEM((H, tq, 1), jnp.float32),
                        pltpu.VMEM((H, tq, 1), jnp.float32),
                        pltpu.VMEM((H, tq, Dh), jnp.float32)],
        compiler_params=pltpu.CompilerParams(
            dimension_semantics=("parallel", "parallel", "arbitrary"),
            vmem_limit_bytes=_VMEM_LIMIT),
    )(qkv, qkv)


def _cross_attn_kernel(q_ref, kv_ref, o_ref, m_ref, l_ref, acc_ref,
                       *, num_heads, head_dim, scale):
    """Flash cross-attention (no mask).  q block (1,tq,D), kv (1,tkv,2D)=[k|v]."""
    H, Dh = num_heads, head_dim
    D = H * Dh
    kvi = pl.program_id(2)

    @pl.when(kvi == 0)
    def _():
        _flash_init(m_ref, l_ref, acc_ref)

    for h in range(H):
        q = q_ref[0, :, h * Dh:(h + 1) * Dh].astype(jnp.float32) * scale
        k = kv_ref[0, :, h * Dh:(h + 1) * Dh]
        v = kv_ref[0, :, D + h * Dh:D + (h + 1) * Dh]
        s = jax.lax.dot_general(
            q.astype(jnp.bfloat16), k.astype(jnp.bfloat16),
            (((1,), (1,)), ((), ())),
            preferred_element_type=jnp.float32)
        _flash_update(h, s, v, m_ref, l_ref, acc_ref)

    @pl.when(kvi == pl.num_programs(2) - 1)
    def _():
        _flash_finalize(o_ref, l_ref, acc_ref, H)


def cross_attention(q, kv, B, S, H, Dh):
    """q:(B,S,D), kv:(B,S,2D) -> (B,S,D) attention output (no mask)."""
    D = H * Dh
    tq = _pick_tile(S, 256, 8)
    tkv = _pick_tile(S, 512, 8)
    kernel = functools.partial(_cross_attn_kernel, num_heads=H, head_dim=Dh,
                               scale=1.0 / math.sqrt(Dh))
    return pl.pallas_call(
        kernel,
        out_shape=jax.ShapeDtypeStruct((B, S, D), q.dtype),
        grid=(B, S // tq, S // tkv),
        in_specs=[pl.BlockSpec((1, tq, D), lambda b, qi, kvi: (b, qi, 0)),
                  pl.BlockSpec((1, tkv, 2 * D), lambda b, qi, kvi: (b, kvi, 0))],
        out_specs=pl.BlockSpec((1, tq, D), lambda b, qi, kvi: (b, qi, 0)),
        scratch_shapes=[pltpu.VMEM((H, tq, 1), jnp.float32),
                        pltpu.VMEM((H, tq, 1), jnp.float32),
                        pltpu.VMEM((H, tq, Dh), jnp.float32)],
        compiler_params=pltpu.CompilerParams(
            dimension_semantics=("parallel", "parallel", "arbitrary"),
            vmem_limit_bytes=_VMEM_LIMIT),
    )(q, kv)


# --------------------------- model (glue in JAX) ----------------------------

def gpt_forward(params, input_ids, cfg):
    B, S = input_ids.shape
    D, H = cfg["d_model"], cfg["num_heads"]
    Dh = D // H

    # embedding gather + scale (XLA glue; a table gather has no Pallas win here)
    x = params["embedding"][input_ids] * math.sqrt(D)          # (B, S, D)
    # positional encoding (bug-compatible with the reference: indexed by batch,
    # broadcast over the sequence, exactly as pe[:x.size(0)] does batch_first)
    x = x + params["pe"][:B][:, None, :]

    x = x.reshape(B * S, D)
    memory = x                                                  # memory == tgt input

    for lp in params["layers"]:
        sa = lp["self_attn"]
        # ---- causal self-attention: fused QKV matmul, flash attention ----
        qkv = linear(x, sa["w_in"], sa["b_in"]).reshape(B, S, 3 * D)
        attn = self_attention(qkv, B, S, H, Dh).reshape(B * S, D)
        # out-projection with residual-add + LayerNorm fused into the epilogue
        x = linear_add_layernorm(attn, sa["w_out"], sa["b_out"],
                                 x, lp["ln1_g"], lp["ln1_b"])

        ca = lp["cross_attn"]
        # ---- cross-attention against memory (no mask) ----
        q = linear(x, ca["w_q"], ca["b_q"]).reshape(B, S, D)
        kv = linear(memory, ca["w_kv"], ca["b_kv"]).reshape(B, S, 2 * D)
        attn = cross_attention(q, kv, B, S, H, Dh).reshape(B * S, D)
        x = linear_add_layernorm(attn, ca["w_out"], ca["b_out"],
                                 x, lp["ln2_g"], lp["ln2_b"])

        # ---- feed-forward: GELU fused into FF1, add+LN fused into FF2 ----
        hdn = linear(x, lp["w_ff1"], lp["b_ff1"], act="gelu")
        x = linear_add_layernorm(hdn, lp["w_ff2"], lp["b_ff2"],
                                 x, lp["ln3_g"], lp["ln3_b"])

    x = layernorm(x, params["lnf_g"], params["lnf_b"])
    logits = linear(x, params["w_head"], params["b_head"])
    return logits.reshape(B, S, cfg["vocab_size"])


# ------------------------------- parameters --------------------------------

def make_pe(max_len, d_model):
    position = jnp.arange(max_len, dtype=jnp.float32)[:, None]
    div_term = jnp.exp(jnp.arange(0, d_model, 2, dtype=jnp.float32)
                       * (-math.log(10000.0) / d_model))
    pe = jnp.zeros((max_len, d_model), jnp.float32)
    pe = pe.at[:, 0::2].set(jnp.sin(position * div_term))
    pe = pe.at[:, 1::2].set(jnp.cos(position * div_term))
    return pe


def init_params(key, cfg):
    V, D, F, L, ML = (cfg["vocab_size"], cfg["d_model"], cfg["d_ff"],
                      cfg["num_layers"], cfg["max_seq_len"])
    keys = iter(jax.random.split(key, 4 + 8 * L))

    def normal(shape):
        return 0.02 * jax.random.normal(next(keys), shape, jnp.float32)

    def self_attn_params():
        return {"w_in": normal((D, 3 * D)),
                "b_in": jnp.zeros((3 * D,), jnp.float32),
                "w_out": normal((D, D)),
                "b_out": jnp.zeros((D,), jnp.float32)}

    def cross_attn_params():
        # q-projection and kv-projection stored pre-split (q applies to the
        # target stream, kv to memory), avoiding per-step weight slicing.
        return {"w_q": normal((D, D)),
                "b_q": jnp.zeros((D,), jnp.float32),
                "w_kv": normal((D, 2 * D)),
                "b_kv": jnp.zeros((2 * D,), jnp.float32),
                "w_out": normal((D, D)),
                "b_out": jnp.zeros((D,), jnp.float32)}

    params = {
        "embedding": normal((V, D)),
        "pe": make_pe(ML, D),
        "lnf_g": jnp.ones((D,), jnp.float32),
        "lnf_b": jnp.zeros((D,), jnp.float32),
        "w_head": normal((D, V)),
        "b_head": jnp.zeros((V,), jnp.float32),
        "layers": [],
    }
    for _ in range(L):
        params["layers"].append({
            "self_attn": self_attn_params(),
            "cross_attn": cross_attn_params(),
            "ln1_g": jnp.ones((D,), jnp.float32), "ln1_b": jnp.zeros((D,), jnp.float32),
            "ln2_g": jnp.ones((D,), jnp.float32), "ln2_b": jnp.zeros((D,), jnp.float32),
            "ln3_g": jnp.ones((D,), jnp.float32), "ln3_b": jnp.zeros((D,), jnp.float32),
            "w_ff1": normal((D, F)), "b_ff1": jnp.zeros((F,), jnp.float32),
            "w_ff2": normal((F, D)), "b_ff2": jnp.zeros((D,), jnp.float32),
        })
    return params


# ---------------------------------- main ------------------------------------

if __name__ == "__main__":
    cfg = dict(vocab_size=64, d_model=32, num_heads=4, d_ff=64,
               num_layers=2, max_seq_len=16)

    key = jax.random.PRNGKey(0)
    pkey, dkey = jax.random.split(key)
    params = init_params(pkey, cfg)

    B, S = 2, 8
    input_ids = jax.random.randint(dkey, (B, S), 0, cfg["vocab_size"],
                                   dtype=jnp.int32)

    fwd = jax.jit(lambda p, ids: gpt_forward(p, ids, cfg))
    logits = jax.block_until_ready(fwd(params, input_ids))

    assert logits.shape == (B, S, cfg["vocab_size"]), logits.shape
    assert bool(jnp.all(jnp.isfinite(logits)))
    print("KERNEL_OK")
</pallas_src>

<mosaic_0001>
module attributes {stable_mosaic.version = 11 : i64} {
  func.func @_linear_noacc_kernel(%arg0: i32, %arg1: i32, %arg2: memref<16x32xf32, #tpu.memory_space<vmem>>, %arg3: memref<32x64xf32, #tpu.memory_space<vmem>>, %arg4: memref<1x64xf32, #tpu.memory_space<vmem>>, %arg5: memref<16x64xf32, #tpu.memory_space<vmem>>) attributes {dimension_semantics = [#tpu.dimension_semantics<parallel>, #tpu.dimension_semantics<parallel>], iteration_bounds = array<i64: 1, 1>, scalar_prefetch = 0 : i64, scratch_operands = 0 : i64, tpu.core_type = #tpu.core_type<tc>, window_params = [{transform_indices = @transform_0, window_bounds = array<i64: 16, 32>}, {transform_indices = @transform_1, window_bounds = array<i64: 32, 64>}, {transform_indices = @transform_2, window_bounds = array<i64: 1, 64>}, {transform_indices = @transform_3, window_bounds = array<i64: 16, 64>}]} {
    %c0 = arith.constant 0 : index
    %c0_0 = arith.constant 0 : index
    %0 = vector.load %arg2[%c0, %c0_0] : memref<16x32xf32, #tpu.memory_space<vmem>>, vector<16x32xf32>
    %c0_1 = arith.constant 0 : index
    %c0_2 = arith.constant 0 : index
    %1 = vector.load %arg3[%c0_1, %c0_2] : memref<32x64xf32, #tpu.memory_space<vmem>>, vector<32x64xf32>
    %2 = arith.truncf %0 : vector<16x32xf32> to vector<16x32xbf16>
    %3 = arith.truncf %1 : vector<32x64xf32> to vector<32x64xbf16>
    %cst = arith.constant dense<0.000000e+00> : vector<16x64xf32>
    %4 = tpu.matmul %2, %3, %cst {dimension_numbers = #tpu.dot_dimension_numbers<[1], [0], [0], [1], [0, 0, 1, 1], [], []>} : vector<16x32xbf16>, vector<32x64xbf16>, vector<16x64xf32> -> vector<16x64xf32>
    %c0_3 = arith.constant 0 : index
    %c0_4 = arith.constant 0 : index
    %5 = vector.load %arg4[%c0_3, %c0_4] : memref<1x64xf32, #tpu.memory_space<vmem>>, vector<1x64xf32>
    %6 = vector.broadcast %5 : vector<1x64xf32> to vector<16x64xf32>
    %7 = arith.addf %4, %6 : vector<16x64xf32>
    %c0_5 = arith.constant 0 : index
    %c0_6 = arith.constant 0 : index
    %8 = vector.load %arg5[%c0_5, %c0_6] : memref<16x64xf32, #tpu.memory_space<vmem>>, vector<16x64xf32>
    tpu.vector_store %arg5[%c0_5, %c0_6], %7 {strides = array<i32>} : memref<16x64xf32, #tpu.memory_space<vmem>>, vector<16x64xf32>,
    return
  }
  func.func @transform_0(%arg0: i32, %arg1: i32) -> (i32, i32) {
    %c0_i32 = arith.constant 0 : i32
    %c0_i32_0 = arith.constant 0 : i32
    return %arg0, %c0_i32 : i32, i32
  }
  func.func @transform_1(%arg0: i32, %arg1: i32) -> (i32, i32) {
    %c0_i32 = arith.constant 0 : i32
    %c0_i32_0 = arith.constant 0 : i32
    return %c0_i32, %arg1 : i32, i32
  }
  func.func @transform_2(%arg0: i32, %arg1: i32) -> (i32, i32) {
    %c0_i32 = arith.constant 0 : i32
    %c0_i32_0 = arith.constant 0 : i32
    return %c0_i32, %arg1 : i32, i32
  }
  func.func @transform_3(%arg0: i32, %arg1: i32) -> (i32, i32) {
    %c0_i32 = arith.constant 0 : i32
    return %arg0, %arg1 : i32, i32
  }
}

module attributes {stable_mosaic.version = 11 : i64} {
  func.func @_linear_noacc_kernel(%arg0: i32, %arg1: i32, %arg2: memref<16x32xf32, #tpu.memory_space<vmem>>, %arg3: memref<32x96xf32, #tpu.memory_space<vmem>>, %arg4: memref<1x96xf32, #tpu.memory_space<vmem>>, %arg5: memref<16x96xf32, #tpu.memory_space<vmem>>) attributes {dimension_semantics = [#tpu.dimension_semantics<parallel>, #tpu.dimension_semantics<parallel>], iteration_bounds = array<i64: 1, 1>, scalar_prefetch = 0 : i64, scratch_operands = 0 : i64, tpu.core_type = #tpu.core_type<tc>, window_params = [{transform_indices = @transform_0, window_bounds = array<i64: 16, 32>}, {transform_indices = @transform_1, window_bounds = array<i64: 32, 96>}, {transform_indices = @transform_2, window_bounds = array<i64: 1, 96>}, {transform_indices = @transform_3, window_bounds = array<i64: 16, 96>}]} {
    %c0 = arith.constant 0 : index
    %c0_0 = arith.constant 0 : index
    %0 = vector.load %arg2[%c0, %c0_0] : memref<16x32xf32, #tpu.memory_space<vmem>>, vector<16x32xf32>
    %c0_1 = arith.constant 0 : index
    %c0_2 = arith.constant 0 : index
    %1 = vector.load %arg3[%c0_1, %c0_2] : memref<32x96xf32, #tpu.memory_space<vmem>>, vector<32x96xf32>
    %2 = arith.truncf %0 : vector<16x32xf32> to vector<16x32xbf16>
    %3 = arith.truncf %1 : vector<32x96xf32> to vector<32x96xbf16>
    %cst = arith.constant dense<0.000000e+00> : vector<16x96xf32>
    %4 = tpu.matmul %2, %3, %cst {dimension_numbers = #tpu.dot_dimension_numbers<[1], [0], [0], [1], [0, 0, 1, 1], [], []>} : vector<16x32xbf16>, vector<32x96xbf16>, vector<16x96xf32> -> vector<16x96xf32>
    %c0_3 = arith.constant 0 : index
    %c0_4 = arith.constant 0 : index
    %5 = vector.load %arg4[%c0_3, %c0_4] : memref<1x96xf32, #tpu.memory_space<vmem>>, vector<1x96xf32>
    %6 = vector.broadcast %5 : vector<1x96xf32> to vector<16x96xf32>
    %7 = arith.addf %4, %6 : vector<16x96xf32>
    %c0_5 = arith.constant 0 : index
    %c0_6 = arith.constant 0 : index
    %8 = vector.load %arg5[%c0_5, %c0_6] : memref<16x96xf32, #tpu.memory_space<vmem>>, vector<16x96xf32>
    tpu.vector_store %arg5[%c0_5, %c0_6], %7 {strides = array<i32>} : memref<16x96xf32, #tpu.memory_space<vmem>>, vector<16x96xf32>,
    return
  }
  func.func @transform_0(%arg0: i32, %arg1: i32) -> (i32, i32) {
    %c0_i32 = arith.constant 0 : i32
    %c0_i32_0 = arith.constant 0 : i32
    return %arg0, %c0_i32 : i32, i32
  }
  func.func @transform_1(%arg0: i32, %arg1: i32) -> (i32, i32) {
    %c0_i32 = arith.constant 0 : i32
    %c0_i32_0 = arith.constant 0 : i32
    return %c0_i32, %arg1 : i32, i32
  }
  func.func @transform_2(%arg0: i32, %arg1: i32) -> (i32, i32) {
    %c0_i32 = arith.constant 0 : i32
    %c0_i32_0 = arith.constant 0 : i32
    return %c0_i32, %arg1 : i32, i32
  }
  func.func @transform_3(%arg0: i32, %arg1: i32) -> (i32, i32) {
    %c0_i32 = arith.constant 0 : i32
    return %arg0, %arg1 : i32, i32
  }
}

module attributes {stable_mosaic.version = 11 : i64} {
  func.func @_linear_add_ln_noacc_kernel(%arg0: i32, %arg1: memref<16x32xf32, #tpu.memory_space<vmem>>, %arg2: memref<32x32xf32, #tpu.memory_space<vmem>>, %arg3: memref<1x32xf32, #tpu.memory_space<vmem>>, %arg4: memref<16x32xf32, #tpu.memory_space<vmem>>, %arg5: memref<1x32xf32, #tpu.memory_space<vmem>>, %arg6: memref<1x32xf32, #tpu.memory_space<vmem>>, %arg7: memref<16x32xf32, #tpu.memory_space<vmem>>) attributes {dimension_semantics = [#tpu.dimension_semantics<parallel>], iteration_bounds = array<i64: 1>, scalar_prefetch = 0 : i64, scratch_operands = 0 : i64, tpu.core_type = #tpu.core_type<tc>, window_params = [{transform_indices = @transform_0, window_bounds = array<i64: 16, 32>}, {pipeline_mode = #tpu.pipeline_mode<synchronous>, transform_indices = @transform_1, window_bounds = array<i64: 32, 32>}, {pipeline_mode = #tpu.pipeline_mode<synchronous>, transform_indices = @transform_2, window_bounds = array<i64: 1, 32>}, {transform_indices = @transform_3, window_bounds = array<i64: 16, 32>}, {pipeline_mode = #tpu.pipeline_mode<synchronous>, transform_indices = @transform_4, window_bounds = array<i64: 1, 32>}, {pipeline_mode = #tpu.pipeline_mode<synchronous>, transform_indices = @transform_5, window_bounds = array<i64: 1, 32>}, {transform_indices = @transform_6, window_bounds = array<i64: 16, 32>}]} {
    %c0 = arith.constant 0 : index
    %c0_0 = arith.constant 0 : index
    %0 = vector.load %arg1[%c0, %c0_0] : memref<16x32xf32, #tpu.memory_space<vmem>>, vector<16x32xf32>
    %c0_1 = arith.constant 0 : index
    %c0_2 = arith.constant 0 : index
    %1 = vector.load %arg2[%c0_1, %c0_2] : memref<32x32xf32, #tpu.memory_space<vmem>>, vector<32x32xf32>
    %2 = arith.truncf %0 : vector<16x32xf32> to vector<16x32xbf16>
    %3 = arith.truncf %1 : vector<32x32xf32> to vector<32x32xbf16>
    %cst = arith.constant dense<0.000000e+00> : vector<16x32xf32>
    %4 = tpu.matmul %2, %3, %cst {dimension_numbers = #tpu.dot_dimension_numbers<[1], [0], [0], [1], [0, 0, 1, 1], [], []>} : vector<16x32xbf16>, vector<32x32xbf16>, vector<16x32xf32> -> vector<16x32xf32>
    %c0_3 = arith.constant 0 : index
    %c0_4 = arith.constant 0 : index
    %5 = vector.load %arg3[%c0_3, %c0_4] : memref<1x32xf32, #tpu.memory_space<vmem>>, vector<1x32xf32>
    %6 = vector.broadcast %5 : vector<1x32xf32> to vector<16x32xf32>
    %7 = arith.addf %4, %6 : vector<16x32xf32>
    %c0_5 = arith.constant 0 : index
    %c0_6 = arith.constant 0 : index
    %8 = vector.load %arg4[%c0_5, %c0_6] : memref<16x32xf32, #tpu.memory_space<vmem>>, vector<16x32xf32>
    %9 = arith.addf %7, %8 : vector<16x32xf32>
    %cst_7 = arith.constant dense<0.000000e+00> : vector<16xf32>
    %10 = vector.multi_reduction <add>, %9, %cst_7 [1] : vector<16x32xf32> to vector<16xf32>
    %11 = vector.shape_cast %10 : vector<16xf32> to vector<16x1xf32>
    %cst_8 = arith.constant 3.200000e+01 : f32
    %12 = vector.broadcast %cst_8 : f32 to vector<16x1xf32>
    %13 = arith.divf %11, %12 : vector<16x1xf32>
    %14 = vector.broadcast %13 : vector<16x1xf32> to vector<16x32xf32>
    %15 = arith.subf %9, %14 : vector<16x32xf32>
    %16 = arith.mulf %15, %15 : vector<16x32xf32>
    %cst_9 = arith.constant dense<0.000000e+00> : vector<16xf32>
    %17 = vector.multi_reduction <add>, %16, %cst_9 [1] : vector<16x32xf32> to vector<16xf32>
    %18 = vector.shape_cast %17 : vector<16xf32> to vector<16x1xf32>
    %cst_10 = arith.constant 3.200000e+01 : f32
    %19 = vector.broadcast %cst_10 : f32 to vector<16x1xf32>
    %20 = arith.divf %18, %19 : vector<16x1xf32>
    %cst_11 = arith.constant 9.99999974E-6 : f32
    %21 = vector.broadcast %cst_11 : f32 to vector<16x1xf32>
    %22 = arith.addf %20, %21 : vector<16x1xf32>
    %23 = math.rsqrt %22 : vector<16x1xf32>
    %24 = vector.broadcast %23 : vector<16x1xf32> to vector<16x32xf32>
    %25 = arith.mulf %15, %24 : vector<16x32xf32>
    %c0_12 = arith.constant 0 : index
    %c0_13 = arith.constant 0 : index
    %26 = vector.load %arg5[%c0_12, %c0_13] : memref<1x32xf32, #tpu.memory_space<vmem>>, vector<1x32xf32>
    %27 = vector.broadcast %26 : vector<1x32xf32> to vector<16x32xf32>
    %28 = arith.mulf %25, %27 : vector<16x32xf32>
    %c0_14 = arith.constant 0 : index
    %c0_15 = arith.constant 0 : index
    %29 = vector.load %arg6[%c0_14, %c0_15] : memref<1x32xf32, #tpu.memory_space<vmem>>, vector<1x32xf32>
    %30 = vector.broadcast %29 : vector<1x32xf32> to vector<16x32xf32>
    %31 = arith.addf %28, %30 : vector<16x32xf32>
    %c0_16 = arith.constant 0 : index
    %c0_17 = arith.constant 0 : index
    %32 = vector.load %arg7[%c0_16, %c0_17] : memref<16x32xf32, #tpu.memory_space<vmem>>, vector<16x32xf32>
    tpu.vector_store %arg7[%c0_16, %c0_17], %31 {strides = array<i32>} : memref<16x32xf32, #tpu.memory_space<vmem>>, vector<16x32xf32>,
    return
  }
  func.func @transform_0(%arg0: i32) -> (i32, i32) {
    %c0_i32 = arith.constant 0 : i32
    %c0_i32_0 = arith.constant 0 : i32
    return %arg0, %c0_i32 : i32, i32
  }
  func.func @transform_1(%arg0: i32) -> (i32, i32) {
    %c0_i32 = arith.constant 0 : i32
    %c0_i32_0 = arith.constant 0 : i32
    %c0_i32_1 = arith.constant 0 : i32
    return %c0_i32, %c0_i32_0 : i32, i32
  }
  func.func @transform_2(%arg0: i32) -> (i32, i32) {
    %c0_i32 = arith.constant 0 : i32
    %c0_i32_0 = arith.constant 0 : i32
    %c0_i32_1 = arith.constant 0 : i32
    return %c0_i32, %c0_i32_0 : i32, i32
  }
  func.func @transform_3(%arg0: i32) -> (i32, i32) {
    %c0_i32 = arith.constant 0 : i32
    %c0_i32_0 = arith.constant 0 : i32
    return %arg0, %c0_i32 : i32, i32
  }
  func.func @transform_4(%arg0: i32) -> (i32, i32) {
    %c0_i32 = arith.constant 0 : i32
    %c0_i32_0 = arith.constant 0 : i32
    %c0_i32_1 = arith.constant 0 : i32
    return %c0_i32, %c0_i32_0 : i32, i32
  }
  func.func @transform_5(%arg0: i32) -> (i32, i32) {
    %c0_i32 = arith.constant 0 : i32
    %c0_i32_0 = arith.constant 0 : i32
    %c0_i32_1 = arith.constant 0 : i32
    return %c0_i32, %c0_i32_0 : i32, i32
  }
  func.func @transform_6(%arg0: i32) -> (i32, i32) {
    %c0_i32 = arith.constant 0 : i32
    %c0_i32_0 = arith.constant 0 : i32
    return %arg0, %c0_i32 : i32, i32
  }
}

module attributes {stable_mosaic.version = 11 : i64} {
  func.func @_self_attn_kernel(%arg0: i32, %arg1: i32, %arg2: i32, %arg3: memref<1x8x96xf32, #tpu.memory_space<vmem>>, %arg4: memref<1x8x96xf32, #tpu.memory_space<vmem>>, %arg5: memref<1x8x32xf32, #tpu.memory_space<vmem>>, %arg6: memref<4x8x1xf32, #tpu.memory_space<vmem>>, %arg7: memref<4x8x1xf32, #tpu.memory_space<vmem>>, %arg8: memref<4x8x8xf32, #tpu.memory_space<vmem>>) attributes {dimension_semantics = [#tpu.dimension_semantics<parallel>, #tpu.dimension_semantics<parallel>, #tpu.dimension_semantics<arbitrary>], iteration_bounds = array<i64: 2, 1, 1>, scalar_prefetch = 0 : i64, scratch_operands = 3 : i64, tpu.core_type = #tpu.core_type<tc>, window_params = [{transform_indices = @transform_0, window_bounds = array<i64: 1, 8, 96>}, {transform_indices = @transform_1, window_bounds = array<i64: 1, 8, 96>}, {transform_indices = @transform_2, window_bounds = array<i64: 1, 8, 32>}]} {
    %c0_i32 = arith.constant 0 : i32
    %0 = arith.cmpi eq, %arg2, %c0_i32 : i32
    %1 = arith.extui %0 : i1 to i32
    %c0_i32_0 = arith.constant 0 : i32
    %2 = arith.cmpi ne, %1, %c0_i32_0 : i32
    scf.if %2 {
      %cst = arith.constant 0xFF800000 : f32
      %12 = vector.broadcast %cst : f32 to vector<4x8x1xf32>
      %c0 = arith.constant 0 : index
      %c0_5 = arith.constant 0 : index
      %c0_6 = arith.constant 0 : index
      %13 = vector.load %arg6[%c0, %c0_5, %c0_6] : memref<4x8x1xf32, #tpu.memory_space<vmem>>, vector<4x8x1xf32>
      tpu.vector_store %arg6[%c0, %c0_5, %c0_6], %12 {strides = array<i32>} : memref<4x8x1xf32, #tpu.memory_space<vmem>>, vector<4x8x1xf32>,
      %cst_7 = arith.constant 0.000000e+00 : f32
      %14 = vector.broadcast %cst_7 : f32 to vector<4x8x1xf32>
      %c0_8 = arith.constant 0 : index
      %c0_9 = arith.constant 0 : index
      %c0_10 = arith.constant 0 : index
      %15 = vector.load %arg7[%c0_8, %c0_9, %c0_10] : memref<4x8x1xf32, #tpu.memory_space<vmem>>, vector<4x8x1xf32>
      tpu.vector_store %arg7[%c0_8, %c0_9, %c0_10], %14 {strides = array<i32>} : memref<4x8x1xf32, #tpu.memory_space<vmem>>, vector<4x8x1xf32>,
      %cst_11 = arith.constant 0.000000e+00 : f32
      %16 = vector.broadcast %cst_11 : f32 to vector<4x8x8xf32>
      %c0_12 = arith.constant 0 : index
      %c0_13 = arith.constant 0 : index
      %c0_14 = arith.constant 0 : index
      %17 = vector.load %arg8[%c0_12, %c0_13, %c0_14] : memref<4x8x8xf32, #tpu.memory_space<vmem>>, vector<4x8x8xf32>
      tpu.vector_store %arg8[%c0_12, %c0_13, %c0_14], %16 {strides = array<i32>} : memref<4x8x8xf32, #tpu.memory_space<vmem>>, vector<4x8x8xf32>,
    } else {
    }
    %c8_i32 = arith.constant 8 : i32
    %3 = arith.muli %arg2, %c8_i32 : i32
    %c8_i32_1 = arith.constant 8 : i32
    %4 = arith.muli %arg1, %c8_i32_1 : i32
    %c7_i32 = arith.constant 7 : i32
    %5 = arith.addi %4, %c7_i32 : i32
    %6 = arith.cmpi sle, %3, %5 : i32
    %7 = arith.extui %6 : i1 to i32
    %c0_i32_2 = arith.constant 0 : i32
    %8 = arith.cmpi ne, %7, %c0_i32_2 : i32
    scf.if %8 {
      %c8_i32_5 = arith.constant 8 : i32
      %12 = arith.muli %arg1, %c8_i32_5 : i32
      %13 = tpu.iota {dimensions = array<i32: 0>} : vector<8x8xi32>
      %14 = vector.broadcast %12 : i32 to vector<8x8xi32>
      %15 = arith.addi %14, %13 : vector<8x8xi32>
      %c8_i32_6 = arith.constant 8 : i32
      %16 = arith.muli %arg2, %c8_i32_6 : i32
      %17 = tpu.iota {dimensions = array<i32: 1>} : vector<8x8xi32>
      %18 = vector.broadcast %16 : i32 to vector<8x8xi32>
      %19 = arith.addi %18, %17 : vector<8x8xi32>
      %20 = arith.cmpi sgt, %19, %15 : vector<8x8xi32>
      %c0 = arith.constant 0 : index
      %c0_7 = arith.constant 0 : index
      %c0_8 = arith.constant 0 : index
      %21 = vector.load %arg3[%c0, %c0_7, %c0_8] : memref<1x8x96xf32, #tpu.memory_space<vmem>>, vector<1x8x8xf32>
      %22 = vector.shape_cast %21 : vector<1x8x8xf32> to vector<8x8xf32>
      %cst = arith.constant 0.353553385 : f32
      %23 = vector.broadcast %cst : f32 to vector<8x8xf32>
      %24 = arith.mulf %22, %23 : vector<8x8xf32>
      %c0_9 = arith.constant 0 : index
      %c0_10 = arith.constant 0 : index
      %c32 = arith.constant 32 : index
      %25 = vector.load %arg4[%c0_9, %c0_10, %c32] : memref<1x8x96xf32, #tpu.memory_space<vmem>>, vector<1x8x8xf32>
      %26 = vector.shape_cast %25 : vector<1x8x8xf32> to vector<8x8xf32>
      %c0_11 = arith.constant 0 : index
      %c0_12 = arith.constant 0 : index
      %c64 = arith.constant 64 : index
      %27 = vector.load %arg4[%c0_11, %c0_12, %c64] : memref<1x8x96xf32, #tpu.memory_space<vmem>>, vector<1x8x8xf32>
      %28 = vector.shape_cast %27 : vector<1x8x8xf32> to vector<8x8xf32>
      %29 = arith.truncf %24 : vector<8x8xf32> to vector<8x8xbf16>
      %30 = arith.truncf %26 : vector<8x8xf32> to vector<8x8xbf16>
      %cst_13 = arith.constant dense<0.000000e+00> : vector<8x8xf32>
      %31 = tpu.matmul %29, %30, %cst_13 {dimension_numbers = #tpu.dot_dimension_numbers<[1], [1], [0], [0], [0, 0, 1, 0], [], []>} : vector<8x8xbf16>, vector<8x8xbf16>, vector<8x8xf32> -> vector<8x8xf32>
      %cst_14 = arith.constant 0xFF800000 : f32
      %32 = vector.broadcast %cst_14 : f32 to vector<8x8xf32>
      %33 = arith.select %20, %32, %31 : vector<8x8xi1>, vector<8x8xf32>
      %c0_15 = arith.constant 0 : index
      %c0_16 = arith.constant 0 : index
      %c0_17 = arith.constant 0 : index
      %34 = vector.load %arg6[%c0_15, %c0_16, %c0_17] : memref<4x8x1xf32, #tpu.memory_space<vmem>>, vector<1x8x1xf32>
      %35 = vector.shape_cast %34 : vector<1x8x1xf32> to vector<8x1xf32>
      %cst_18 = arith.constant dense<0xFF800000> : vector<8xf32>
      %36 = vector.multi_reduction <maximumf>, %33, %cst_18 [1] : vector<8x8xf32> to vector<8xf32>
      %37 = vector.shape_cast %36 : vector<8xf32> to vector<8x1xf32>
      %38 = arith.maximumf %35, %37 : vector<8x1xf32>
      %39 = arith.subf %35, %38 : vector<8x1xf32>
      %40 = math.exp %39 : vector<8x1xf32>
      %41 = vector.broadcast %38 : vector<8x1xf32> to vector<8x8xf32>
      %42 = arith.subf %33, %41 : vector<8x8xf32>
      %43 = math.exp %42 : vector<8x8xf32>
      %c0_19 = arith.constant 0 : index
      %c0_20 = arith.constant 0 : index
      %c0_21 = arith.constant 0 : index
      %44 = vector.load %arg7[%c0_19, %c0_20, %c0_21] : memref<4x8x1xf32, #tpu.memory_space<vmem>>, vector<1x8x1xf32>
      %45 = vector.shape_cast %44 : vector<1x8x1xf32> to vector<8x1xf32>
      %46 = arith.mulf %40, %45 : vector<8x1xf32>
      %cst_22 = arith.constant dense<0.000000e+00> : vector<8xf32>
      %47 = vector.multi_reduction <add>, %43, %cst_22 [1] : vector<8x8xf32> to vector<8xf32>
      %48 = vector.shape_cast %47 : vector<8xf32> to vector<8x1xf32>
      %49 = arith.addf %46, %48 : vector<8x1xf32>
      %c0_23 = arith.constant 0 : index
      %c0_24 = arith.constant 0 : index
      %c0_25 = arith.constant 0 : index
      %50 = vector.load %arg7[%c0_23, %c0_24, %c0_25] : memref<4x8x1xf32, #tpu.memory_space<vmem>>, vector<1x8x1xf32>
      %51 = vector.shape_cast %50 : vector<1x8x1xf32> to vector<8x1xf32>
      %52 = vector.shape_cast %49 : vector<8x1xf32> to vector<1x8x1xf32>
      tpu.vector_store %arg7[%c0_23, %c0_24, %c0_25], %52 {strides = array<i32>} : memref<4x8x1xf32, #tpu.memory_space<vmem>>, vector<1x8x1xf32>,
      %c0_26 = arith.constant 0 : index
      %c0_27 = arith.constant 0 : index
      %c0_28 = arith.constant 0 : index
      %53 = vector.load %arg8[%c0_26, %c0_27, %c0_28] : memref<4x8x8xf32, #tpu.memory_space<vmem>>, vector<1x8x8xf32>
      %54 = vector.shape_cast %53 : vector<1x8x8xf32> to vector<8x8xf32>
      %55 = vector.broadcast %40 : vector<8x1xf32> to vector<8x8xf32>
      %56 = arith.mulf %55, %54 : vector<8x8xf32>
      %57 = arith.truncf %43 : vector<8x8xf32> to vector<8x8xbf16>
      %58 = arith.truncf %28 : vector<8x8xf32> to vector<8x8xbf16>
      %cst_29 = arith.constant dense<0.000000e+00> : vector<8x8xf32>
      %59 = tpu.matmul %57, %58, %cst_29 {dimension_numbers = #tpu.dot_dimension_numbers<[1], [0], [0], [1], [0, 0, 1, 1], [], []>} : vector<8x8xbf16>, vector<8x8xbf16>, vector<8x8xf32> -> vector<8x8xf32>
      %60 = arith.addf %56, %59 : vector<8x8xf32>
      %c0_30 = arith.constant 0 : index
      %c0_31 = arith.constant 0 : index
      %c0_32 = arith.constant 0 : index
      %61 = vector.load %arg8[%c0_30, %c0_31, %c0_32] : memref<4x8x8xf32, #tpu.memory_space<vmem>>, vector<1x8x8xf32>
      %62 = vector.shape_cast %61 : vector<1x8x8xf32> to vector<8x8xf32>
      %63 = vector.shape_cast %60 : vector<8x8xf32> to vector<1x8x8xf32>
      tpu.vector_store %arg8[%c0_30, %c0_31, %c0_32], %63 {strides = array<i32>} : memref<4x8x8xf32, #tpu.memory_space<vmem>>, vector<1x8x8xf32>,
      %c0_33 = arith.constant 0 : index
      %c0_34 = arith.constant 0 : index
      %c0_35 = arith.constant 0 : index
      %64 = vector.load %arg6[%c0_33, %c0_34, %c0_35] : memref<4x8x1xf32, #tpu.memory_space<vmem>>, vector<1x8x1xf32>
      %65 = vector.shape_cast %64 : vector<1x8x1xf32> to vector<8x1xf32>
      %66 = vector.shape_cast %38 : vector<8x1xf32> to vector<1x8x1xf32>
      tpu.vector_store %arg6[%c0_33, %c0_34, %c0_35], %66 {strides = array<i32>} : memref<4x8x1xf32, #tpu.memory_space<vmem>>, vector<1x8x1xf32>,
      %c0_36 = arith.constant 0 : index
      %c0_37 = arith.constant 0 : index
      %c8 = arith.constant 8 : index
      %67 = vector.load %arg3[%c0_36, %c0_37, %c8] : memref<1x8x96xf32, #tpu.memory_space<vmem>>, vector<1x8x8xf32>
      %68 = vector.shape_cast %67 : vector<1x8x8xf32> to vector<8x8xf32>
      %cst_38 = arith.constant 0.353553385 : f32
      %69 = vector.broadcast %cst_38 : f32 to vector<8x8xf32>
      %70 = arith.mulf %68, %69 : vector<8x8xf32>
      %c0_39 = arith.constant 0 : index
      %c0_40 = arith.constant 0 : index
      %c40 = arith.constant 40 : index
      %71 = vector.load %arg4[%c0_39, %c0_40, %c40] : memref<1x8x96xf32, #tpu.memory_space<vmem>>, vector<1x8x8xf32>
      %72 = vector.shape_cast %71 : vector<1x8x8xf32> to vector<8x8xf32>
      %c0_41 = arith.constant 0 : index
      %c0_42 = arith.constant 0 : index
      %c72 = arith.constant 72 : index
      %73 = vector.load %arg4[%c0_41, %c0_42, %c72] : memref<1x8x96xf32, #tpu.memory_space<vmem>>, vector<1x8x8xf32>
      %74 = vector.shape_cast %73 : vector<1x8x8xf32> to vector<8x8xf32>
      %75 = arith.truncf %70 : vector<8x8xf32> to vector<8x8xbf16>
      %76 = arith.truncf %72 : vector<8x8xf32> to vector<8x8xbf16>
      %cst_43 = arith.constant dense<0.000000e+00> : vector<8x8xf32>
      %77 = tpu.matmul %75, %76, %cst_43 {dimension_numbers = #tpu.dot_dimension_numbers<[1], [1], [0], [0], [0, 0, 1, 0], [], []>} : vector<8x8xbf16>, vector<8x8xbf16>, vector<8x8xf32> -> vector<8x8xf32>
      %cst_44 = arith.constant 0xFF800000 : f32
      %78 = vector.broadcast %cst_44 : f32 to vector<8x8xf32>
      %79 = arith.select %20, %78, %77 : vector<8x8xi1>, vector<8x8xf32>
      %c1 = arith.constant 1 : index
      %c0_45 = arith.constant 0 : index
      %c0_46 = arith.constant 0 : index
      %80 = vector.load %arg6[%c1, %c0_45, %c0_46] : memref<4x8x1xf32, #tpu.memory_space<vmem>>, vector<1x8x1xf32>
      %81 = vector.shape_cast %80 : vector<1x8x1xf32> to vector<8x1xf32>
      %cst_47 = arith.constant dense<0xFF800000> : vector<8xf32>
      %82 = vector.multi_reduction <maximumf>, %79, %cst_47 [1] : vector<8x8xf32> to vector<8xf32>
      %83 = vector.shape_cast %82 : vector<8xf32> to vector<8x1xf32>
      %84 = arith.maximumf %81, %83 : vector<8x1xf32>
      %85 = arith.subf %81, %84 : vector<8x1xf32>
      %86 = math.exp %85 : vector<8x1xf32>
      %87 = vector.broadcast %84 : vector<8x1xf32> to vector<8x8xf32>
      %88 = arith.subf %79, %87 : vector<8x8xf32>
      %89 = math.exp %88 : vector<8x8xf32>
      %c1_48 = arith.constant 1 : index
      %c0_49 = arith.constant 0 : index
      %c0_50 = arith.constant 0 : index
      %90 = vector.load %arg7[%c1_48, %c0_49, %c0_50] : memref<4x8x1xf32, #tpu.memory_space<vmem>>, vector<1x8x1xf32>
      %91 = vector.shape_cast %90 : vector<1x8x1xf32> to vector<8x1xf32>
      %92 = arith.mulf %86, %91 : vector<8x1xf32>
      %cst_51 = arith.constant dense<0.000000e+00> : vector<8xf32>
      %93 = vector.multi_reduction <add>, %89, %cst_51 [1] : vector<8x8xf32> to vector<8xf32>
      %94 = vector.shape_cast %93 : vector<8xf32> to vector<8x1xf32>
      %95 = arith.addf %92, %94 : vector<8x1xf32>
      %c1_52 = arith.constant 1 : index
      %c0_53 = arith.constant 0 : index
      %c0_54 = arith.constant 0 : index
      %96 = vector.load %arg7[%c1_52, %c0_53, %c0_54] : memref<4x8x1xf32, #tpu.memory_space<vmem>>, vector<1x8x1xf32>
      %97 = vector.shape_cast %96 : vector<1x8x1xf32> to vector<8x1xf32>
      %98 = vector.shape_cast %95 : vector<8x1xf32> to vector<1x8x1xf32>
      tpu.vector_store %arg7[%c1_52, %c0_53, %c0_54], %98 {strides = array<i32>} : memref<4x8x1xf32, #tpu.memory_space<vmem>>, vector<1x8x1xf32>,
      %c1_55 = arith.constant 1 : index
      %c0_56 = arith.constant 0 : index
      %c0_57 = arith.constant 0 : index
      %99 = vector.load %arg8[%c1_55, %c0_56, %c0_57] : memref<4x8x8xf32, #tpu.memory_space<vmem>>, vector<1x8x8xf32>
      %100 = vector.shape_cast %99 : vector<1x8x8xf32> to vector<8x8xf32>
      %101 = vector.broadcast %86 : vector<8x1xf32> to vector<8x8xf32>
      %102 = arith.mulf %101, %100 : vector<8x8xf32>
      %103 = arith.truncf %89 : vector<8x8xf32> to vector<8x8xbf16>
      %104 = arith.truncf %74 : vector<8x8xf32> to vector<8x8xbf16>
      %cst_58 = arith.constant dense<0.000000e+00> : vector<8x8xf32>
      %105 = tpu.matmul %103, %104, %cst_58 {dimension_numbers = #tpu.dot_dimension_numbers<[1], [0], [0], [1], [0, 0, 1, 1], [], []>} : vector<8x8xbf16>, vector<8x8xbf16>, vector<8x8xf32> -> vector<8x8xf32>
      %106 = arith.addf %102, %105 : vector<8x8xf32>
      %c1_59 = arith.constant 1 : index
      %c0_60 = arith.constant 0 : index
      %c0_61 = arith.constant 0 : index
      %107 = vector.load %arg8[%c1_59, %c0_60, %c0_61] : memref<4x8x8xf32, #tpu.memory_space<vmem>>, vector<1x8x8xf32>
      %108 = vector.shape_cast %107 : vector<1x8x8xf32> to vector<8x8xf32>
      %109 = vector.shape_cast %106 : vector<8x8xf32> to vector<1x8x8xf32>
      tpu.vector_store %arg8[%c1_59, %c0_60, %c0_61], %109 {strides = array<i32>} : memref<4x8x8xf32, #tpu.memory_space<vmem>>, vector<1x8x8xf32>,
      %c1_62 = arith.constant 1 : index
      %c0_63 = arith.constant 0 : index
      %c0_64 = arith.constant 0 : index
      %110 = vector.load %arg6[%c1_62, %c0_63, %c0_64] : memref<4x8x1xf32, #tpu.memory_space<vmem>>, vector<1x8x1xf32>
      %111 = vector.shape_cast %110 : vector<1x8x1xf32> to vector<8x1xf32>
      %112 = vector.shape_cast %84 : vector<8x1xf32> to vector<1x8x1xf32>
      tpu.vector_store %arg6[%c1_62, %c0_63, %c0_64], %112 {strides = array<i32>} : memref<4x8x1xf32, #tpu.memory_space<vmem>>, vector<1x8x1xf32>,
      %c0_65 = arith.constant 0 : index
      %c0_66 = arith.constant 0 : index
      %c16 = arith.constant 16 : index
      %113 = vector.load %arg3[%c0_65, %c0_66, %c16] : memref<1x8x96xf32, #tpu.memory_space<vmem>>, vector<1x8x8xf32>
      %114 = vector.shape_cast %113 : vector<1x8x8xf32> to vector<8x8xf32>
      %cst_67 = arith.constant 0.353553385 : f32
      %115 = vector.broadcast %cst_67 : f32 to vector<8x8xf32>
      %116 = arith.mulf %114, %115 : vector<8x8xf32>
      %c0_68 = arith.constant 0 : index
      %c0_69 = arith.constant 0 : index
      %c48 = arith.constant 48 : index
      %117 = vector.load %arg4[%c0_68, %c0_69, %c48] : memref<1x8x96xf32, #tpu.memory_space<vmem>>, vector<1x8x8xf32>
      %118 = vector.shape_cast %117 : vector<1x8x8xf32> to vector<8x8xf32>
      %c0_70 = arith.constant 0 : index
      %c0_71 = arith.constant 0 : index
      %c80 = arith.constant 80 : index
      %119 = vector.load %arg4[%c0_70, %c0_71, %c80] : memref<1x8x96xf32, #tpu.memory_space<vmem>>, vector<1x8x8xf32>
      %120 = vector.shape_cast %119 : vector<1x8x8xf32> to vector<8x8xf32>
      %121 = arith.truncf %116 : vector<8x8xf32> to vector<8x8xbf16>
      %122 = arith.truncf %118 : vector<8x8xf32> to vector<8x8xbf16>
      %cst_72 = arith.constant dense<0.000000e+00> : vector<8x8xf32>
      %123 = tpu.matmul %121, %122, %cst_72 {dimension_numbers = #tpu.dot_dimension_numbers<[1], [1], [0], [0], [0, 0, 1, 0], [], []>} : vector<8x8xbf16>, vector<8x8xbf16>, vector<8x8xf32> -> vector<8x8xf32>
      %cst_73 = arith.constant 0xFF800000 : f32
      %124 = vector.broadcast %cst_73 : f32 to vector<8x8xf32>
      %125 = arith.select %20, %124, %123 : vector<8x8xi1>, vector<8x8xf32>
      %c2 = arith.constant 2 : index
      %c0_74 = arith.constant 0 : index
      %c0_75 = arith.constant 0 : index
      %126 = vector.load %arg6[%c2, %c0_74, %c0_75] : memref<4x8x1xf32, #tpu.memory_space<vmem>>, vector<1x8x1xf32>
      %127 = vector.shape_cast %126 : vector<1x8x1xf32> to vector<8x1xf32>
      %cst_76 = arith.constant dense<0xFF800000> : vector<8xf32>
      %128 = vector.multi_reduction <maximumf>, %125, %cst_76 [1] : vector<8x8xf32> to vector<8xf32>
      %129 = vector.shape_cast %128 : vector<8xf32> to vector<8x1xf32>
      %130 = arith.maximumf %127, %129 : vector<8x1xf32>
      %131 = arith.subf %127, %130 : vector<8x1xf32>
      %132 = math.exp %131 : vector<8x1xf32>
      %133 = vector.broadcast %130 : vector<8x1xf32> to vector<8x8xf32>
      %134 = arith.subf %125, %133 : vector<8x8xf32>
      %135 = math.exp %134 : vector<8x8xf32>
      %c2_77 = arith.constant 2 : index
      %c0_78 = arith.constant 0 : index
      %c0_79 = arith.constant 0 : index
      %136 = vector.load %arg7[%c2_77, %c0_78, %c0_79] : memref<4x8x1xf32, #tpu.memory_space<vmem>>, vector<1x8x1xf32>
      %137 = vector.shape_cast %136 : vector<1x8x1xf32> to vector<8x1xf32>
      %138 = arith.mulf %132, %137 : vector<8x1xf32>
      %cst_80 = arith.constant dense<0.000000e+00> : vector<8xf32>
      %139 = vector.multi_reduction <add>, %135, %cst_80 [1] : vector<8x8xf32> to vector<8xf32>
      %140 = vector.shape_cast %139 : vector<8xf32> to vector<8x1xf32>
      %141 = arith.addf %138, %140 : vector<8x1xf32>
      %c2_81 = arith.constant 2 : index
      %c0_82 = arith.constant 0 : index
      %c0_83 = arith.constant 0 : index
      %142 = vector.load %arg7[%c2_81, %c0_82, %c0_83] : memref<4x8x1xf32, #tpu.memory_space<vmem>>, vector<1x8x1xf32>
      %143 = vector.shape_cast %142 : vector<1x8x1xf32> to vector<8x1xf32>
      %144 = vector.shape_cast %141 : vector<8x1xf32> to vector<1x8x1xf32>
      tpu.vector_store %arg7[%c2_81, %c0_82, %c0_83], %144 {strides = array<i32>} : memref<4x8x1xf32, #tpu.memory_space<vmem>>, vector<1x8x1xf32>,
      %c2_84 = arith.constant 2 : index
      %c0_85 = arith.constant 0 : index
      %c0_86 = arith.constant 0 : index
      %145 = vector.load %arg8[%c2_84, %c0_85, %c0_86] : memref<4x8x8xf32, #tpu.memory_space<vmem>>, vector<1x8x8xf32>
      %146 = vector.shape_cast %145 : vector<1x8x8xf32> to vector<8x8xf32>
      %147 = vector.broadcast %132 : vector<8x1xf32> to vector<8x8xf32>
      %148 = arith.mulf %147, %146 : vector<8x8xf32>
      %149 = arith.truncf %135 : vector<8x8xf32> to vector<8x8xbf16>
      %150 = arith.truncf %120 : vector<8x8xf32> to vector<8x8xbf16>
      %cst_87 = arith.constant dense<0.000000e+00> : vector<8x8xf32>
      %151 = tpu.matmul %149, %150, %cst_87 {dimension_numbers = #tpu.dot_dimension_numbers<[1], [0], [0], [1], [0, 0, 1, 1], [], []>} : vector<8x8xbf16>, vector<8x8xbf16>, vector<8x8xf32> -> vector<8x8xf32>
      %152 = arith.addf %148, %151 : vector<8x8xf32>
      %c2_88 = arith.constant 2 : index
      %c0_89 = arith.constant 0 : index
      %c0_90 = arith.constant 0 : index
      %153 = vector.load %arg8[%c2_88, %c0_89, %c0_90] : memref<4x8x8xf32, #tpu.memory_space<vmem>>, vector<1x8x8xf32>
      %154 = vector.shape_cast %153 : vector<1x8x8xf32> to vector<8x8xf32>
      %155 = vector.shape_cast %152 : vector<8x8xf32> to vector<1x8x8xf32>
      tpu.vector_store %arg8[%c2_88, %c0_89, %c0_90], %155 {strides = array<i32>} : memref<4x8x8xf32, #tpu.memory_space<vmem>>, vector<1x8x8xf32>,
      %c2_91 = arith.constant 2 : index
      %c0_92 = arith.constant 0 : index
      %c0_93 = arith.constant 0 : index
      %156 = vector.load %arg6[%c2_91, %c0_92, %c0_93] : memref<4x8x1xf32, #tpu.memory_space<vmem>>, vector<1x8x1xf32>
      %157 = vector.shape_cast %156 : vector<1x8x1xf32> to vector<8x1xf32>
      %158 = vector.shape_cast %130 : vector<8x1xf32> to vector<1x8x1xf32>
      tpu.vector_store %arg6[%c2_91, %c0_92, %c0_93], %158 {strides = array<i32>} : memref<4x8x1xf32, #tpu.memory_space<vmem>>, vector<1x8x1xf32>,
      %c0_94 = arith.constant 0 : index
      %c0_95 = arith.constant 0 : index
      %c24 = arith.constant 24 : index
      %159 = vector.load %arg3[%c0_94, %c0_95, %c24] : memref<1x8x96xf32, #tpu.memory_space<vmem>>, vector<1x8x8xf32>
      %160 = vector.shape_cast %159 : vector<1x8x8xf32> to vector<8x8xf32>
      %cst_96 = arith.constant 0.353553385 : f32
      %161 = vector.broadcast %cst_96 : f32 to vector<8x8xf32>
      %162 = arith.mulf %160, %161 : vector<8x8xf32>
      %c0_97 = arith.constant 0 : index
      %c0_98 = arith.constant 0 : index
      %c56 = arith.constant 56 : index
      %163 = vector.load %arg4[%c0_97, %c0_98, %c56] : memref<1x8x96xf32, #tpu.memory_space<vmem>>, vector<1x8x8xf32>
      %164 = vector.shape_cast %163 : vector<1x8x8xf32> to vector<8x8xf32>
      %c0_99 = arith.constant 0 : index
      %c0_100 = arith.constant 0 : index
      %c88 = arith.constant 88 : index
      %165 = vector.load %arg4[%c0_99, %c0_100, %c88] : memref<1x8x96xf32, #tpu.memory_space<vmem>>, vector<1x8x8xf32>
      %166 = vector.shape_cast %165 : vector<1x8x8xf32> to vector<8x8xf32>
      %167 = arith.truncf %162 : vector<8x8xf32> to vector<8x8xbf16>
      %168 = arith.truncf %164 : vector<8x8xf32> to vector<8x8xbf16>
      %cst_101 = arith.constant dense<0.000000e+00> : vector<8x8xf32>
      %169 = tpu.matmul %167, %168, %cst_101 {dimension_numbers = #tpu.dot_dimension_numbers<[1], [1], [0], [0], [0, 0, 1, 0], [], []>} : vector<8x8xbf16>, vector<8x8xbf16>, vector<8x8xf32> -> vector<8x8xf32>
      %cst_102 = arith.constant 0xFF800000 : f32
      %170 = vector.broadcast %cst_102 : f32 to vector<8x8xf32>
      %171 = arith.select %20, %170, %169 : vector<8x8xi1>, vector<8x8xf32>
      %c3 = arith.constant 3 : index
      %c0_103 = arith.constant 0 : index
      %c0_104 = arith.constant 0 : index
      %172 = vector.load %arg6[%c3, %c0_103, %c0_104] : memref<4x8x1xf32, #tpu.memory_space<vmem>>, vector<1x8x1xf32>
      %173 = vector.shape_cast %172 : vector<1x8x1xf32> to vector<8x1xf32>
      %cst_105 = arith.constant dense<0xFF800000> : vector<8xf32>
      %174 = vector.multi_reduction <maximumf>, %171, %cst_105 [1] : vector<8x8xf32> to vector<8xf32>
      %175 = vector.shape_cast %174 : vector<8xf32> to vector<8x1xf32>
      %176 = arith.maximumf %173, %175 : vector<8x1xf32>
      %177 = arith.subf %173, %176 : vector<8x1xf32>
      %178 = math.exp %177 : vector<8x1xf32>
      %179 = vector.broadcast %176 : vector<8x1xf32> to vector<8x8xf32>
      %180 = arith.subf %171, %179 : vector<8x8xf32>
      %181 = math.exp %180 : vector<8x8xf32>
      %c3_106 = arith.constant 3 : index
      %c0_107 = arith.constant 0 : index
      %c0_108 = arith.constant 0 : index
      %182 = vector.load %arg7[%c3_106, %c0_107, %c0_108] : memref<4x8x1xf32, #tpu.memory_space<vmem>>, vector<1x8x1xf32>
      %183 = vector.shape_cast %182 : vector<1x8x1xf32> to vector<8x1xf32>
      %184 = arith.mulf %178, %183 : vector<8x1xf32>
      %cst_109 = arith.constant dense<0.000000e+00> : vector<8xf32>
      %185 = vector.multi_reduction <add>, %181, %cst_109 [1] : vector<8x8xf32> to vector<8xf32>
      %186 = vector.shape_cast %185 : vector<8xf32> to vector<8x1xf32>
      %187 = arith.addf %184, %186 : vector<8x1xf32>
      %c3_110 = arith.constant 3 : index
      %c0_111 = arith.constant 0 : index
      %c0_112 = arith.constant 0 : index
      %188 = vector.load %arg7[%c3_110, %c0_111, %c0_112] : memref<4x8x1xf32, #tpu.memory_space<vmem>>, vector<1x8x1xf32>
      %189 = vector.shape_cast %188 : vector<1x8x1xf32> to vector<8x1xf32>
      %190 = vector.shape_cast %187 : vector<8x1xf32> to vector<1x8x1xf32>
      tpu.vector_store %arg7[%c3_110, %c0_111, %c0_112], %190 {strides = array<i32>} : memref<4x8x1xf32, #tpu.memory_space<vmem>>, vector<1x8x1xf32>,
      %c3_113 = arith.constant 3 : index
      %c0_114 = arith.constant 0 : index
      %c0_115 = arith.constant 0 : index
      %191 = vector.load %arg8[%c3_113, %c0_114, %c0_115] : memref<4x8x8xf32, #tpu.memory_space<vmem>>, vector<1x8x8xf32>
      %192 = vector.shape_cast %191 : vector<1x8x8xf32> to vector<8x8xf32>
      %193 = vector.broadcast %178 : vector<8x1xf32> to vector<8x8xf32>
      %194 = arith.mulf %193, %192 : vector<8x8xf32>
      %195 = arith.truncf %181 : vector<8x8xf32> to vector<8x8xbf16>
      %196 = arith.truncf %166 : vector<8x8xf32> to vector<8x8xbf16>
      %cst_116 = arith.constant dense<0.000000e+00> : vector<8x8xf32>
      %197 = tpu.matmul %195, %196, %cst_116 {dimension_numbers = #tpu.dot_dimension_numbers<[1], [0], [0], [1], [0, 0, 1, 1], [], []>} : vector<8x8xbf16>, vector<8x8xbf16>, vector<8x8xf32> -> vector<8x8xf32>
      %198 = arith.addf %194, %197 : vector<8x8xf32>
      %c3_117 = arith.constant 3 : index
      %c0_118 = arith.constant 0 : index
      %c0_119 = arith.constant 0 : index
      %199 = vector.load %arg8[%c3_117, %c0_118, %c0_119] : memref<4x8x8xf32, #tpu.memory_space<vmem>>, vector<1x8x8xf32>
      %200 = vector.shape_cast %199 : vector<1x8x8xf32> to vector<8x8xf32>
      %201 = vector.shape_cast %198 : vector<8x8xf32> to vector<1x8x8xf32>
      tpu.vector_store %arg8[%c3_117, %c0_118, %c0_119], %201 {strides = array<i32>} : memref<4x8x8xf32, #tpu.memory_space<vmem>>, vector<1x8x8xf32>,
      %c3_120 = arith.constant 3 : index
      %c0_121 = arith.constant 0 : index
      %c0_122 = arith.constant 0 : index
      %202 = vector.load %arg6[%c3_120, %c0_121, %c0_122] : memref<4x8x1xf32, #tpu.memory_space<vmem>>, vector<1x8x1xf32>
      %203 = vector.shape_cast %202 : vector<1x8x1xf32> to vector<8x1xf32>
      %204 = vector.shape_cast %176 : vector<8x1xf32> to vector<1x8x1xf32>
      tpu.vector_store %arg6[%c3_120, %c0_121, %c0_122], %204 {strides = array<i32>} : memref<4x8x1xf32, #tpu.memory_space<vmem>>, vector<1x8x1xf32>,
    } else {
    }
    %c0_i32_3 = arith.constant 0 : i32
    %9 = arith.cmpi eq, %arg2, %c0_i32_3 : i32
    %10 = arith.extui %9 : i1 to i32
    %c0_i32_4 = arith.constant 0 : i32
    %11 = arith.cmpi ne, %10, %c0_i32_4 : i32
    scf.if %11 {
      %c0 = arith.constant 0 : index
      %c0_5 = arith.constant 0 : index
      %c0_6 = arith.constant 0 : index
      %12 = vector.load %arg8[%c0, %c0_5, %c0_6] : memref<4x8x8xf32, #tpu.memory_space<vmem>>, vector<1x8x8xf32>
      %13 = vector.shape_cast %12 : vector<1x8x8xf32> to vector<8x8xf32>
      %c0_7 = arith.constant 0 : index
      %c0_8 = arith.constant 0 : index
      %c0_9 = arith.constant 0 : index
      %14 = vector.load %arg7[%c0_7, %c0_8, %c0_9] : memref<4x8x1xf32, #tpu.memory_space<vmem>>, vector<1x8x1xf32>
      %15 = vector.shape_cast %14 : vector<1x8x1xf32> to vector<8x1xf32>
      %16 = tpu.reciprocal %15 {approx = true} : vector<8x1xf32> -> vector<8x1xf32>
      %17 = vector.broadcast %16 : vector<8x1xf32> to vector<8x8xf32>
      %18 = arith.mulf %13, %17 : vector<8x8xf32>
      %c1 = arith.constant 1 : index
      %c0_10 = arith.constant 0 : index
      %c0_11 = arith.constant 0 : index
      %19 = vector.load %arg8[%c1, %c0_10, %c0_11] : memref<4x8x8xf32, #tpu.memory_space<vmem>>, vector<1x8x8xf32>
      %20 = vector.shape_cast %19 : vector<1x8x8xf32> to vector<8x8xf32>
      %c1_12 = arith.constant 1 : index
      %c0_13 = arith.constant 0 : index
      %c0_14 = arith.constant 0 : index
      %21 = vector.load %arg7[%c1_12, %c0_13, %c0_14] : memref<4x8x1xf32, #tpu.memory_space<vmem>>, vector<1x8x1xf32>
      %22 = vector.shape_cast %21 : vector<1x8x1xf32> to vector<8x1xf32>
      %23 = tpu.reciprocal %22 {approx = true} : vector<8x1xf32> -> vector<8x1xf32>
      %24 = vector.broadcast %23 : vector<8x1xf32> to vector<8x8xf32>
      %25 = arith.mulf %20, %24 : vector<8x8xf32>
      %c2 = arith.constant 2 : index
      %c0_15 = arith.constant 0 : index
      %c0_16 = arith.constant 0 : index
      %26 = vector.load %arg8[%c2, %c0_15, %c0_16] : memref<4x8x8xf32, #tpu.memory_space<vmem>>, vector<1x8x8xf32>
      %27 = vector.shape_cast %26 : vector<1x8x8xf32> to vector<8x8xf32>
      %c2_17 = arith.constant 2 : index
      %c0_18 = arith.constant 0 : index
      %c0_19 = arith.constant 0 : index
      %28 = vector.load %arg7[%c2_17, %c0_18, %c0_19] : memref<4x8x1xf32, #tpu.memory_space<vmem>>, vector<1x8x1xf32>
      %29 = vector.shape_cast %28 : vector<1x8x1xf32> to vector<8x1xf32>
      %30 = tpu.reciprocal %29 {approx = true} : vector<8x1xf32> -> vector<8x1xf32>
      %31 = vector.broadcast %30 : vector<8x1xf32> to vector<8x8xf32>
      %32 = arith.mulf %27, %31 : vector<8x8xf32>
      %c3 = arith.constant 3 : index
      %c0_20 = arith.constant 0 : index
      %c0_21 = arith.constant 0 : index
      %33 = vector.load %arg8[%c3, %c0_20, %c0_21] : memref<4x8x8xf32, #tpu.memory_space<vmem>>, vector<1x8x8xf32>
      %34 = vector.shape_cast %33 : vector<1x8x8xf32> to vector<8x8xf32>
      %c3_22 = arith.constant 3 : index
      %c0_23 = arith.constant 0 : index
      %c0_24 = arith.constant 0 : index
      %35 = vector.load %arg7[%c3_22, %c0_23, %c0_24] : memref<4x8x1xf32, #tpu.memory_space<vmem>>, vector<1x8x1xf32>
      %36 = vector.shape_cast %35 : vector<1x8x1xf32> to vector<8x1xf32>
      %37 = tpu.reciprocal %36 {approx = true} : vector<8x1xf32> -> vector<8x1xf32>
      %38 = vector.broadcast %37 : vector<8x1xf32> to vector<8x8xf32>
      %39 = arith.mulf %34, %38 : vector<8x8xf32>
      %40 = tpu.concatenate %18, %25, %32, %39 in 1 : vector<8x8xf32>, vector<8x8xf32>, vector<8x8xf32>, vector<8x8xf32> -> vector<8x32xf32>
      %c0_25 = arith.constant 0 : index
      %c0_26 = arith.constant 0 : index
      %c0_27 = arith.constant 0 : index
      %41 = vector.load %arg5[%c0_25, %c0_26, %c0_27] : memref<1x8x32xf32, #tpu.memory_space<vmem>>, vector<1x8x32xf32>
      %42 = vector.shape_cast %41 : vector<1x8x32xf32> to vector<8x32xf32>
      %43 = vector.shape_cast %40 : vector<8x32xf32> to vector<1x8x32xf32>
      tpu.vector_store %arg5[%c0_25, %c0_26, %c0_27], %43 {strides = array<i32>} : memref<1x8x32xf32, #tpu.memory_space<vmem>>, vector<1x8x32xf32>,
    } else {
    }
    return
  }
  func.func @transform_0(%arg0: i32, %arg1: i32, %arg2: i32) -> (i32, i32, i32) {
    %c0_i32 = arith.constant 0 : i32
    %c0_i32_0 = arith.constant 0 : i32
    return %arg0, %arg1, %c0_i32 : i32, i32, i32
  }
  func.func @transform_1(%arg0: i32, %arg1: i32, %arg2: i32) -> (i32, i32, i32) {
    %c0_i32 = arith.constant 0 : i32
    %c0_i32_0 = arith.constant 0 : i32
    return %arg0, %arg2, %c0_i32 : i32, i32, i32
  }
  func.func @transform_2(%arg0: i32, %arg1: i32, %arg2: i32) -> (i32, i32, i32) {
    %c0_i32 = arith.constant 0 : i32
    %c0_i32_0 = arith.constant 0 : i32
    return %arg0, %arg1, %c0_i32 : i32, i32, i32
  }
}

module attributes {stable_mosaic.version = 11 : i64} {
  func.func @_linear_noacc_kernel(%arg0: i32, %arg1: i32, %arg2: memref<16x32xf32, #tpu.memory_space<vmem>>, %arg3: memref<32x32xf32, #tpu.memory_space<vmem>>, %arg4: memref<1x32xf32, #tpu.memory_space<vmem>>, %arg5: memref<16x32xf32, #tpu.memory_space<vmem>>) attributes {dimension_semantics = [#tpu.dimension_semantics<parallel>, #tpu.dimension_semantics<parallel>], iteration_bounds = array<i64: 1, 1>, scalar_prefetch = 0 : i64, scratch_operands = 0 : i64, tpu.core_type = #tpu.core_type<tc>, window_params = [{transform_indices = @transform_0, window_bounds = array<i64: 16, 32>}, {transform_indices = @transform_1, window_bounds = array<i64: 32, 32>}, {transform_indices = @transform_2, window_bounds = array<i64: 1, 32>}, {transform_indices = @transform_3, window_bounds = array<i64: 16, 32>}]} {
    %c0 = arith.constant 0 : index
    %c0_0 = arith.constant 0 : index
    %0 = vector.load %arg2[%c0, %c0_0] : memref<16x32xf32, #tpu.memory_space<vmem>>, vector<16x32xf32>
    %c0_1 = arith.constant 0 : index
    %c0_2 = arith.constant 0 : index
    %1 = vector.load %arg3[%c0_1, %c0_2] : memref<32x32xf32, #tpu.memory_space<vmem>>, vector<32x32xf32>
    %2 = arith.truncf %0 : vector<16x32xf32> to vector<16x32xbf16>
    %3 = arith.truncf %1 : vector<32x32xf32> to vector<32x32xbf16>
    %cst = arith.constant dense<0.000000e+00> : vector<16x32xf32>
    %4 = tpu.matmul %2, %3, %cst {dimension_numbers = #tpu.dot_dimension_numbers<[1], [0], [0], [1], [0, 0, 1, 1], [], []>} : vector<16x32xbf16>, vector<32x32xbf16>, vector<16x32xf32> -> vector<16x32xf32>
    %c0_3 = arith.constant 0 : index
    %c0_4 = arith.constant 0 : index
    %5 = vector.load %arg4[%c0_3, %c0_4] : memref<1x32xf32, #tpu.memory_space<vmem>>, vector<1x32xf32>
    %6 = vector.broadcast %5 : vector<1x32xf32> to vector<16x32xf32>
    %7 = arith.addf %4, %6 : vector<16x32xf32>
    %c0_5 = arith.constant 0 : index
    %c0_6 = arith.constant 0 : index
    %8 = vector.load %arg5[%c0_5, %c0_6] : memref<16x32xf32, #tpu.memory_space<vmem>>, vector<16x32xf32>
    tpu.vector_store %arg5[%c0_5, %c0_6], %7 {strides = array<i32>} : memref<16x32xf32, #tpu.memory_space<vmem>>, vector<16x32xf32>,
    return
  }
  func.func @transform_0(%arg0: i32, %arg1: i32) -> (i32, i32) {
    %c0_i32 = arith.constant 0 : i32
    %c0_i32_0 = arith.constant 0 : i32
    return %arg0, %c0_i32 : i32, i32
  }
  func.func @transform_1(%arg0: i32, %arg1: i32) -> (i32, i32) {
    %c0_i32 = arith.constant 0 : i32
    %c0_i32_0 = arith.constant 0 : i32
    return %c0_i32, %arg1 : i32, i32
  }
  func.func @transform_2(%arg0: i32, %arg1: i32) -> (i32, i32) {
    %c0_i32 = arith.constant 0 : i32
    %c0_i32_0 = arith.constant 0 : i32
    return %c0_i32, %arg1 : i32, i32
  }
  func.func @transform_3(%arg0: i32, %arg1: i32) -> (i32, i32) {
    %c0_i32 = arith.constant 0 : i32
    return %arg0, %arg1 : i32, i32
  }
}

module attributes {stable_mosaic.version = 11 : i64} {
  func.func @_cross_attn_kernel(%arg0: i32, %arg1: i32, %arg2: i32, %arg3: memref<1x8x32xf32, #tpu.memory_space<vmem>>, %arg4: memref<1x8x64xf32, #tpu.memory_space<vmem>>, %arg5: memref<1x8x32xf32, #tpu.memory_space<vmem>>, %arg6: memref<4x8x1xf32, #tpu.memory_space<vmem>>, %arg7: memref<4x8x1xf32, #tpu.memory_space<vmem>>, %arg8: memref<4x8x8xf32, #tpu.memory_space<vmem>>) attributes {dimension_semantics = [#tpu.dimension_semantics<parallel>, #tpu.dimension_semantics<parallel>, #tpu.dimension_semantics<arbitrary>], iteration_bounds = array<i64: 2, 1, 1>, scalar_prefetch = 0 : i64, scratch_operands = 3 : i64, tpu.core_type = #tpu.core_type<tc>, window_params = [{transform_indices = @transform_0, window_bounds = array<i64: 1, 8, 32>}, {transform_indices = @transform_1, window_bounds = array<i64: 1, 8, 64>}, {transform_indices = @transform_2, window_bounds = array<i64: 1, 8, 32>}]} {
    %c0_i32 = arith.constant 0 : i32
    %0 = arith.cmpi eq, %arg2, %c0_i32 : i32
    %1 = arith.extui %0 : i1 to i32
    %c0_i32_0 = arith.constant 0 : i32
    %2 = arith.cmpi ne, %1, %c0_i32_0 : i32
    scf.if %2 {
      %cst_119 = arith.constant 0xFF800000 : f32
      %182 = vector.broadcast %cst_119 : f32 to vector<4x8x1xf32>
      %c0_120 = arith.constant 0 : index
      %c0_121 = arith.constant 0 : index
      %c0_122 = arith.constant 0 : index
      %183 = vector.load %arg6[%c0_120, %c0_121, %c0_122] : memref<4x8x1xf32, #tpu.memory_space<vmem>>, vector<4x8x1xf32>
      tpu.vector_store %arg6[%c0_120, %c0_121, %c0_122], %182 {strides = array<i32>} : memref<4x8x1xf32, #tpu.memory_space<vmem>>, vector<4x8x1xf32>,
      %cst_123 = arith.constant 0.000000e+00 : f32
      %184 = vector.broadcast %cst_123 : f32 to vector<4x8x1xf32>
      %c0_124 = arith.constant 0 : index
      %c0_125 = arith.constant 0 : index
      %c0_126 = arith.constant 0 : index
      %185 = vector.load %arg7[%c0_124, %c0_125, %c0_126] : memref<4x8x1xf32, #tpu.memory_space<vmem>>, vector<4x8x1xf32>
      tpu.vector_store %arg7[%c0_124, %c0_125, %c0_126], %184 {strides = array<i32>} : memref<4x8x1xf32, #tpu.memory_space<vmem>>, vector<4x8x1xf32>,
      %cst_127 = arith.constant 0.000000e+00 : f32
      %186 = vector.broadcast %cst_127 : f32 to vector<4x8x8xf32>
      %c0_128 = arith.constant 0 : index
      %c0_129 = arith.constant 0 : index
      %c0_130 = arith.constant 0 : index
      %187 = vector.load %arg8[%c0_128, %c0_129, %c0_130] : memref<4x8x8xf32, #tpu.memory_space<vmem>>, vector<4x8x8xf32>
      tpu.vector_store %arg8[%c0_128, %c0_129, %c0_130], %186 {strides = array<i32>} : memref<4x8x8xf32, #tpu.memory_space<vmem>>, vector<4x8x8xf32>,
    } else {
    }
    %c0 = arith.constant 0 : index
    %c0_1 = arith.constant 0 : index
    %c0_2 = arith.constant 0 : index
    %3 = vector.load %arg3[%c0, %c0_1, %c0_2] : memref<1x8x32xf32, #tpu.memory_space<vmem>>, vector<1x8x8xf32>
    %4 = vector.shape_cast %3 : vector<1x8x8xf32> to vector<8x8xf32>
    %cst = arith.constant 0.353553385 : f32
    %5 = vector.broadcast %cst : f32 to vector<8x8xf32>
    %6 = arith.mulf %4, %5 : vector<8x8xf32>
    %c0_3 = arith.constant 0 : index
    %c0_4 = arith.constant 0 : index
    %c0_5 = arith.constant 0 : index
    %7 = vector.load %arg4[%c0_3, %c0_4, %c0_5] : memref<1x8x64xf32, #tpu.memory_space<vmem>>, vector<1x8x8xf32>
    %8 = vector.shape_cast %7 : vector<1x8x8xf32> to vector<8x8xf32>
    %c0_6 = arith.constant 0 : index
    %c0_7 = arith.constant 0 : index
    %c32 = arith.constant 32 : index
    %9 = vector.load %arg4[%c0_6, %c0_7, %c32] : memref<1x8x64xf32, #tpu.memory_space<vmem>>, vector<1x8x8xf32>
    %10 = vector.shape_cast %9 : vector<1x8x8xf32> to vector<8x8xf32>
    %11 = arith.truncf %6 : vector<8x8xf32> to vector<8x8xbf16>
    %12 = arith.truncf %8 : vector<8x8xf32> to vector<8x8xbf16>
    %cst_8 = arith.constant dense<0.000000e+00> : vector<8x8xf32>
    %13 = tpu.matmul %11, %12, %cst_8 {dimension_numbers = #tpu.dot_dimension_numbers<[1], [1], [0], [0], [0, 0, 1, 0], [], []>} : vector<8x8xbf16>, vector<8x8xbf16>, vector<8x8xf32> -> vector<8x8xf32>
    %c0_9 = arith.constant 0 : index
    %c0_10 = arith.constant 0 : index
    %c0_11 = arith.constant 0 : index
    %14 = vector.load %arg6[%c0_9, %c0_10, %c0_11] : memref<4x8x1xf32, #tpu.memory_space<vmem>>, vector<1x8x1xf32>
    %15 = vector.shape_cast %14 : vector<1x8x1xf32> to vector<8x1xf32>
    %cst_12 = arith.constant dense<0xFF800000> : vector<8xf32>
    %16 = vector.multi_reduction <maximumf>, %13, %cst_12 [1] : vector<8x8xf32> to vector<8xf32>
    %17 = vector.shape_cast %16 : vector<8xf32> to vector<8x1xf32>
    %18 = arith.maximumf %15, %17 : vector<8x1xf32>
    %19 = arith.subf %15, %18 : vector<8x1xf32>
    %20 = math.exp %19 : vector<8x1xf32>
    %21 = vector.broadcast %18 : vector<8x1xf32> to vector<8x8xf32>
    %22 = arith.subf %13, %21 : vector<8x8xf32>
    %23 = math.exp %22 : vector<8x8xf32>
    %c0_13 = arith.constant 0 : index
    %c0_14 = arith.constant 0 : index
    %c0_15 = arith.constant 0 : index
    %24 = vector.load %arg7[%c0_13, %c0_14, %c0_15] : memref<4x8x1xf32, #tpu.memory_space<vmem>>, vector<1x8x1xf32>
    %25 = vector.shape_cast %24 : vector<1x8x1xf32> to vector<8x1xf32>
    %26 = arith.mulf %20, %25 : vector<8x1xf32>
    %cst_16 = arith.constant dense<0.000000e+00> : vector<8xf32>
    %27 = vector.multi_reduction <add>, %23, %cst_16 [1] : vector<8x8xf32> to vector<8xf32>
    %28 = vector.shape_cast %27 : vector<8xf32> to vector<8x1xf32>
    %29 = arith.addf %26, %28 : vector<8x1xf32>
    %c0_17 = arith.constant 0 : index
    %c0_18 = arith.constant 0 : index
    %c0_19 = arith.constant 0 : index
    %30 = vector.load %arg7[%c0_17, %c0_18, %c0_19] : memref<4x8x1xf32, #tpu.memory_space<vmem>>, vector<1x8x1xf32>
    %31 = vector.shape_cast %30 : vector<1x8x1xf32> to vector<8x1xf32>
    %32 = vector.shape_cast %29 : vector<8x1xf32> to vector<1x8x1xf32>
    tpu.vector_store %arg7[%c0_17, %c0_18, %c0_19], %32 {strides = array<i32>} : memref<4x8x1xf32, #tpu.memory_space<vmem>>, vector<1x8x1xf32>,
    %c0_20 = arith.constant 0 : index
    %c0_21 = arith.constant 0 : index
    %c0_22 = arith.constant 0 : index
    %33 = vector.load %arg8[%c0_20, %c0_21, %c0_22] : memref<4x8x8xf32, #tpu.memory_space<vmem>>, vector<1x8x8xf32>
    %34 = vector.shape_cast %33 : vector<1x8x8xf32> to vector<8x8xf32>
    %35 = vector.broadcast %20 : vector<8x1xf32> to vector<8x8xf32>
    %36 = arith.mulf %35, %34 : vector<8x8xf32>
    %37 = arith.truncf %23 : vector<8x8xf32> to vector<8x8xbf16>
    %38 = arith.truncf %10 : vector<8x8xf32> to vector<8x8xbf16>
    %cst_23 = arith.constant dense<0.000000e+00> : vector<8x8xf32>
    %39 = tpu.matmul %37, %38, %cst_23 {dimension_numbers = #tpu.dot_dimension_numbers<[1], [0], [0], [1], [0, 0, 1, 1], [], []>} : vector<8x8xbf16>, vector<8x8xbf16>, vector<8x8xf32> -> vector<8x8xf32>
    %40 = arith.addf %36, %39 : vector<8x8xf32>
    %c0_24 = arith.constant 0 : index
    %c0_25 = arith.constant 0 : index
    %c0_26 = arith.constant 0 : index
    %41 = vector.load %arg8[%c0_24, %c0_25, %c0_26] : memref<4x8x8xf32, #tpu.memory_space<vmem>>, vector<1x8x8xf32>
    %42 = vector.shape_cast %41 : vector<1x8x8xf32> to vector<8x8xf32>
    %43 = vector.shape_cast %40 : vector<8x8xf32> to vector<1x8x8xf32>
    tpu.vector_store %arg8[%c0_24, %c0_25, %c0_26], %43 {strides = array<i32>} : memref<4x8x8xf32, #tpu.memory_space<vmem>>, vector<1x8x8xf32>,
    %c0_27 = arith.constant 0 : index
    %c0_28 = arith.constant 0 : index
    %c0_29 = arith.constant 0 : index
    %44 = vector.load %arg6[%c0_27, %c0_28, %c0_29] : memref<4x8x1xf32, #tpu.memory_space<vmem>>, vector<1x8x1xf32>
    %45 = vector.shape_cast %44 : vector<1x8x1xf32> to vector<8x1xf32>
    %46 = vector.shape_cast %18 : vector<8x1xf32> to vector<1x8x1xf32>
    tpu.vector_store %arg6[%c0_27, %c0_28, %c0_29], %46 {strides = array<i32>} : memref<4x8x1xf32, #tpu.memory_space<vmem>>, vector<1x8x1xf32>,
    %c0_30 = arith.constant 0 : index
    %c0_31 = arith.constant 0 : index
    %c8 = arith.constant 8 : index
    %47 = vector.load %arg3[%c0_30, %c0_31, %c8] : memref<1x8x32xf32, #tpu.memory_space<vmem>>, vector<1x8x8xf32>
    %48 = vector.shape_cast %47 : vector<1x8x8xf32> to vector<8x8xf32>
    %cst_32 = arith.constant 0.353553385 : f32
    %49 = vector.broadcast %cst_32 : f32 to vector<8x8xf32>
    %50 = arith.mulf %48, %49 : vector<8x8xf32>
    %c0_33 = arith.constant 0 : index
    %c0_34 = arith.constant 0 : index
    %c8_35 = arith.constant 8 : index
    %51 = vector.load %arg4[%c0_33, %c0_34, %c8_35] : memref<1x8x64xf32, #tpu.memory_space<vmem>>, vector<1x8x8xf32>
    %52 = vector.shape_cast %51 : vector<1x8x8xf32> to vector<8x8xf32>
    %c0_36 = arith.constant 0 : index
    %c0_37 = arith.constant 0 : index
    %c40 = arith.constant 40 : index
    %53 = vector.load %arg4[%c0_36, %c0_37, %c40] : memref<1x8x64xf32, #tpu.memory_space<vmem>>, vector<1x8x8xf32>
    %54 = vector.shape_cast %53 : vector<1x8x8xf32> to vector<8x8xf32>
    %55 = arith.truncf %50 : vector<8x8xf32> to vector<8x8xbf16>
    %56 = arith.truncf %52 : vector<8x8xf32> to vector<8x8xbf16>
    %cst_38 = arith.constant dense<0.000000e+00> : vector<8x8xf32>
    %57 = tpu.matmul %55, %56, %cst_38 {dimension_numbers = #tpu.dot_dimension_numbers<[1], [1], [0], [0], [0, 0, 1, 0], [], []>} : vector<8x8xbf16>, vector<8x8xbf16>, vector<8x8xf32> -> vector<8x8xf32>
    %c1 = arith.constant 1 : index
    %c0_39 = arith.constant 0 : index
    %c0_40 = arith.constant 0 : index
    %58 = vector.load %arg6[%c1, %c0_39, %c0_40] : memref<4x8x1xf32, #tpu.memory_space<vmem>>, vector<1x8x1xf32>
    %59 = vector.shape_cast %58 : vector<1x8x1xf32> to vector<8x1xf32>
    %cst_41 = arith.constant dense<0xFF800000> : vector<8xf32>
    %60 = vector.multi_reduction <maximumf>, %57, %cst_41 [1] : vector<8x8xf32> to vector<8xf32>
    %61 = vector.shape_cast %60 : vector<8xf32> to vector<8x1xf32>
    %62 = arith.maximumf %59, %61 : vector<8x1xf32>
    %63 = arith.subf %59, %62 : vector<8x1xf32>
    %64 = math.exp %63 : vector<8x1xf32>
    %65 = vector.broadcast %62 : vector<8x1xf32> to vector<8x8xf32>
    %66 = arith.subf %57, %65 : vector<8x8xf32>
    %67 = math.exp %66 : vector<8x8xf32>
    %c1_42 = arith.constant 1 : index
    %c0_43 = arith.constant 0 : index
    %c0_44 = arith.constant 0 : index
    %68 = vector.load %arg7[%c1_42, %c0_43, %c0_44] : memref<4x8x1xf32, #tpu.memory_space<vmem>>, vector<1x8x1xf32>
    %69 = vector.shape_cast %68 : vector<1x8x1xf32> to vector<8x1xf32>
    %70 = arith.mulf %64, %69 : vector<8x1xf32>
    %cst_45 = arith.constant dense<0.000000e+00> : vector<8xf32>
    %71 = vector.multi_reduction <add>, %67, %cst_45 [1] : vector<8x8xf32> to vector<8xf32>
    %72 = vector.shape_cast %71 : vector<8xf32> to vector<8x1xf32>
    %73 = arith.addf %70, %72 : vector<8x1xf32>
    %c1_46 = arith.constant 1 : index
    %c0_47 = arith.constant 0 : index
    %c0_48 = arith.constant 0 : index
    %74 = vector.load %arg7[%c1_46, %c0_47, %c0_48] : memref<4x8x1xf32, #tpu.memory_space<vmem>>, vector<1x8x1xf32>
    %75 = vector.shape_cast %74 : vector<1x8x1xf32> to vector<8x1xf32>
    %76 = vector.shape_cast %73 : vector<8x1xf32> to vector<1x8x1xf32>
    tpu.vector_store %arg7[%c1_46, %c0_47, %c0_48], %76 {strides = array<i32>} : memref<4x8x1xf32, #tpu.memory_space<vmem>>, vector<1x8x1xf32>,
    %c1_49 = arith.constant 1 : index
    %c0_50 = arith.constant 0 : index
    %c0_51 = arith.constant 0 : index
    %77 = vector.load %arg8[%c1_49, %c0_50, %c0_51] : memref<4x8x8xf32, #tpu.memory_space<vmem>>, vector<1x8x8xf32>
    %78 = vector.shape_cast %77 : vector<1x8x8xf32> to vector<8x8xf32>
    %79 = vector.broadcast %64 : vector<8x1xf32> to vector<8x8xf32>
    %80 = arith.mulf %79, %78 : vector<8x8xf32>
    %81 = arith.truncf %67 : vector<8x8xf32> to vector<8x8xbf16>
    %82 = arith.truncf %54 : vector<8x8xf32> to vector<8x8xbf16>
    %cst_52 = arith.constant dense<0.000000e+00> : vector<8x8xf32>
    %83 = tpu.matmul %81, %82, %cst_52 {dimension_numbers = #tpu.dot_dimension_numbers<[1], [0], [0], [1], [0, 0, 1, 1], [], []>} : vector<8x8xbf16>, vector<8x8xbf16>, vector<8x8xf32> -> vector<8x8xf32>
    %84 = arith.addf %80, %83 : vector<8x8xf32>
    %c1_53 = arith.constant 1 : index
    %c0_54 = arith.constant 0 : index
    %c0_55 = arith.constant 0 : index
    %85 = vector.load %arg8[%c1_53, %c0_54, %c0_55] : memref<4x8x8xf32, #tpu.memory_space<vmem>>, vector<1x8x8xf32>
    %86 = vector.shape_cast %85 : vector<1x8x8xf32> to vector<8x8xf32>
    %87 = vector.shape_cast %84 : vector<8x8xf32> to vector<1x8x8xf32>
    tpu.vector_store %arg8[%c1_53, %c0_54, %c0_55], %87 {strides = array<i32>} : memref<4x8x8xf32, #tpu.memory_space<vmem>>, vector<1x8x8xf32>,
    %c1_56 = arith.constant 1 : index
    %c0_57 = arith.constant 0 : index
    %c0_58 = arith.constant 0 : index
    %88 = vector.load %arg6[%c1_56, %c0_57, %c0_58] : memref<4x8x1xf32, #tpu.memory_space<vmem>>, vector<1x8x1xf32>
    %89 = vector.shape_cast %88 : vector<1x8x1xf32> to vector<8x1xf32>
    %90 = vector.shape_cast %62 : vector<8x1xf32> to vector<1x8x1xf32>
    tpu.vector_store %arg6[%c1_56, %c0_57, %c0_58], %90 {strides = array<i32>} : memref<4x8x1xf32, #tpu.memory_space<vmem>>, vector<1x8x1xf32>,
    %c0_59 = arith.constant 0 : index
    %c0_60 = arith.constant 0 : index
    %c16 = arith.constant 16 : index
    %91 = vector.load %arg3[%c0_59, %c0_60, %c16] : memref<1x8x32xf32, #tpu.memory_space<vmem>>, vector<1x8x8xf32>
    %92 = vector.shape_cast %91 : vector<1x8x8xf32> to vector<8x8xf32>
    %cst_61 = arith.constant 0.353553385 : f32
    %93 = vector.broadcast %cst_61 : f32 to vector<8x8xf32>
    %94 = arith.mulf %92, %93 : vector<8x8xf32>
    %c0_62 = arith.constant 0 : index
    %c0_63 = arith.constant 0 : index
    %c16_64 = arith.constant 16 : index
    %95 = vector.load %arg4[%c0_62, %c0_63, %c16_64] : memref<1x8x64xf32, #tpu.memory_space<vmem>>, vector<1x8x8xf32>
    %96 = vector.shape_cast %95 : vector<1x8x8xf32> to vector<8x8xf32>
    %c0_65 = arith.constant 0 : index
    %c0_66 = arith.constant 0 : index
    %c48 = arith.constant 48 : index
    %97 = vector.load %arg4[%c0_65, %c0_66, %c48] : memref<1x8x64xf32, #tpu.memory_space<vmem>>, vector<1x8x8xf32>
    %98 = vector.shape_cast %97 : vector<1x8x8xf32> to vector<8x8xf32>
    %99 = arith.truncf %94 : vector<8x8xf32> to vector<8x8xbf16>
    %100 = arith.truncf %96 : vector<8x8xf32> to vector<8x8xbf16>
    %cst_67 = arith.constant dense<0.000000e+00> : vector<8x8xf32>
    %101 = tpu.matmul %99, %100, %cst_67 {dimension_numbers = #tpu.dot_dimension_numbers<[1], [1], [0], [0], [0, 0, 1, 0], [], []>} : vector<8x8xbf16>, vector<8x8xbf16>, vector<8x8xf32> -> vector<8x8xf32>
    %c2 = arith.constant 2 : index
    %c0_68 = arith.constant 0 : index
    %c0_69 = arith.constant 0 : index
    %102 = vector.load %arg6[%c2, %c0_68, %c0_69] : memref<4x8x1xf32, #tpu.memory_space<vmem>>, vector<1x8x1xf32>
    %103 = vector.shape_cast %102 : vector<1x8x1xf32> to vector<8x1xf32>
    %cst_70 = arith.constant dense<0xFF800000> : vector<8xf32>
    %104 = vector.multi_reduction <maximumf>, %101, %cst_70 [1] : vector<8x8xf32> to vector<8xf32>
    %105 = vector.shape_cast %104 : vector<8xf32> to vector<8x1xf32>
    %106 = arith.maximumf %103, %105 : vector<8x1xf32>
    %107 = arith.subf %103, %106 : vector<8x1xf32>
    %108 = math.exp %107 : vector<8x1xf32>
    %109 = vector.broadcast %106 : vector<8x1xf32> to vector<8x8xf32>
    %110 = arith.subf %101, %109 : vector<8x8xf32>
    %111 = math.exp %110 : vector<8x8xf32>
    %c2_71 = arith.constant 2 : index
    %c0_72 = arith.constant 0 : index
    %c0_73 = arith.constant 0 : index
    %112 = vector.load %arg7[%c2_71, %c0_72, %c0_73] : memref<4x8x1xf32, #tpu.memory_space<vmem>>, vector<1x8x1xf32>
    %113 = vector.shape_cast %112 : vector<1x8x1xf32> to vector<8x1xf32>
    %114 = arith.mulf %108, %113 : vector<8x1xf32>
    %cst_74 = arith.constant dense<0.000000e+00> : vector<8xf32>
    %115 = vector.multi_reduction <add>, %111, %cst_74 [1] : vector<8x8xf32> to vector<8xf32>
    %116 = vector.shape_cast %115 : vector<8xf32> to vector<8x1xf32>
    %117 = arith.addf %114, %116 : vector<8x1xf32>
    %c2_75 = arith.constant 2 : index
    %c0_76 = arith.constant 0 : index
    %c0_77 = arith.constant 0 : index
    %118 = vector.load %arg7[%c2_75, %c0_76, %c0_77] : memref<4x8x1xf32, #tpu.memory_space<vmem>>, vector<1x8x1xf32>
    %119 = vector.shape_cast %118 : vector<1x8x1xf32> to vector<8x1xf32>
    %120 = vector.shape_cast %117 : vector<8x1xf32> to vector<1x8x1xf32>
    tpu.vector_store %arg7[%c2_75, %c0_76, %c0_77], %120 {strides = array<i32>} : memref<4x8x1xf32, #tpu.memory_space<vmem>>, vector<1x8x1xf32>,
    %c2_78 = arith.constant 2 : index
    %c0_79 = arith.constant 0 : index
    %c0_80 = arith.constant 0 : index
    %121 = vector.load %arg8[%c2_78, %c0_79, %c0_80] : memref<4x8x8xf32, #tpu.memory_space<vmem>>, vector<1x8x8xf32>
    %122 = vector.shape_cast %121 : vector<1x8x8xf32> to vector<8x8xf32>
    %123 = vector.broadcast %108 : vector<8x1xf32> to vector<8x8xf32>
    %124 = arith.mulf %123, %122 : vector<8x8xf32>
    %125 = arith.truncf %111 : vector<8x8xf32> to vector<8x8xbf16>
    %126 = arith.truncf %98 : vector<8x8xf32> to vector<8x8xbf16>
    %cst_81 = arith.constant dense<0.000000e+00> : vector<8x8xf32>
    %127 = tpu.matmul %125, %126, %cst_81 {dimension_numbers = #tpu.dot_dimension_numbers<[1], [0], [0], [1], [0, 0, 1, 1], [], []>} : vector<8x8xbf16>, vector<8x8xbf16>, vector<8x8xf32> -> vector<8x8xf32>
    %128 = arith.addf %124, %127 : vector<8x8xf32>
    %c2_82 = arith.constant 2 : index
    %c0_83 = arith.constant 0 : index
    %c0_84 = arith.constant 0 : index
    %129 = vector.load %arg8[%c2_82, %c0_83, %c0_84] : memref<4x8x8xf32, #tpu.memory_space<vmem>>, vector<1x8x8xf32>
    %130 = vector.shape_cast %129 : vector<1x8x8xf32> to vector<8x8xf32>
    %131 = vector.shape_cast %128 : vector<8x8xf32> to vector<1x8x8xf32>
    tpu.vector_store %arg8[%c2_82, %c0_83, %c0_84], %131 {strides = array<i32>} : memref<4x8x8xf32, #tpu.memory_space<vmem>>, vector<1x8x8xf32>,
    %c2_85 = arith.constant 2 : index
    %c0_86 = arith.constant 0 : index
    %c0_87 = arith.constant 0 : index
    %132 = vector.load %arg6[%c2_85, %c0_86, %c0_87] : memref<4x8x1xf32, #tpu.memory_space<vmem>>, vector<1x8x1xf32>
    %133 = vector.shape_cast %132 : vector<1x8x1xf32> to vector<8x1xf32>
    %134 = vector.shape_cast %106 : vector<8x1xf32> to vector<1x8x1xf32>
    tpu.vector_store %arg6[%c2_85, %c0_86, %c0_87], %134 {strides = array<i32>} : memref<4x8x1xf32, #tpu.memory_space<vmem>>, vector<1x8x1xf32>,
    %c0_88 = arith.constant 0 : index
    %c0_89 = arith.constant 0 : index
    %c24 = arith.constant 24 : index
    %135 = vector.load %arg3[%c0_88, %c0_89, %c24] : memref<1x8x32xf32, #tpu.memory_space<vmem>>, vector<1x8x8xf32>
    %136 = vector.shape_cast %135 : vector<1x8x8xf32> to vector<8x8xf32>
    %cst_90 = arith.constant 0.353553385 : f32
    %137 = vector.broadcast %cst_90 : f32 to vector<8x8xf32>
    %138 = arith.mulf %136, %137 : vector<8x8xf32>
    %c0_91 = arith.constant 0 : index
    %c0_92 = arith.constant 0 : index
    %c24_93 = arith.constant 24 : index
    %139 = vector.load %arg4[%c0_91, %c0_92, %c24_93] : memref<1x8x64xf32, #tpu.memory_space<vmem>>, vector<1x8x8xf32>
    %140 = vector.shape_cast %139 : vector<1x8x8xf32> to vector<8x8xf32>
    %c0_94 = arith.constant 0 : index
    %c0_95 = arith.constant 0 : index
    %c56 = arith.constant 56 : index
    %141 = vector.load %arg4[%c0_94, %c0_95, %c56] : memref<1x8x64xf32, #tpu.memory_space<vmem>>, vector<1x8x8xf32>
    %142 = vector.shape_cast %141 : vector<1x8x8xf32> to vector<8x8xf32>
    %143 = arith.truncf %138 : vector<8x8xf32> to vector<8x8xbf16>
    %144 = arith.truncf %140 : vector<8x8xf32> to vector<8x8xbf16>
    %cst_96 = arith.constant dense<0.000000e+00> : vector<8x8xf32>
    %145 = tpu.matmul %143, %144, %cst_96 {dimension_numbers = #tpu.dot_dimension_numbers<[1], [1], [0], [0], [0, 0, 1, 0], [], []>} : vector<8x8xbf16>, vector<8x8xbf16>, vector<8x8xf32> -> vector<8x8xf32>
    %c3 = arith.constant 3 : index
    %c0_97 = arith.constant 0 : index
    %c0_98 = arith.constant 0 : index
    %146 = vector.load %arg6[%c3, %c0_97, %c0_98] : memref<4x8x1xf32, #tpu.memory_space<vmem>>, vector<1x8x1xf32>
    %147 = vector.shape_cast %146 : vector<1x8x1xf32> to vector<8x1xf32>
    %cst_99 = arith.constant dense<0xFF800000> : vector<8xf32>
    %148 = vector.multi_reduction <maximumf>, %145, %cst_99 [1] : vector<8x8xf32> to vector<8xf32>
    %149 = vector.shape_cast %148 : vector<8xf32> to vector<8x1xf32>
    %150 = arith.maximumf %147, %149 : vector<8x1xf32>
    %151 = arith.subf %147, %150 : vector<8x1xf32>
    %152 = math.exp %151 : vector<8x1xf32>
    %153 = vector.broadcast %150 : vector<8x1xf32> to vector<8x8xf32>
    %154 = arith.subf %145, %153 : vector<8x8xf32>
    %155 = math.exp %154 : vector<8x8xf32>
    %c3_100 = arith.constant 3 : index
    %c0_101 = arith.constant 0 : index
    %c0_102 = arith.constant 0 : index
    %156 = vector.load %arg7[%c3_100, %c0_101, %c0_102] : memref<4x8x1xf32, #tpu.memory_space<vmem>>, vector<1x8x1xf32>
    %157 = vector.shape_cast %156 : vector<1x8x1xf32> to vector<8x1xf32>
    %158 = arith.mulf %152, %157 : vector<8x1xf32>
    %cst_103 = arith.constant dense<0.000000e+00> : vector<8xf32>
    %159 = vector.multi_reduction <add>, %155, %cst_103 [1] : vector<8x8xf32> to vector<8xf32>
    %160 = vector.shape_cast %159 : vector<8xf32> to vector<8x1xf32>
    %161 = arith.addf %158, %160 : vector<8x1xf32>
    %c3_104 = arith.constant 3 : index
    %c0_105 = arith.constant 0 : index
    %c0_106 = arith.constant 0 : index
    %162 = vector.load %arg7[%c3_104, %c0_105, %c0_106] : memref<4x8x1xf32, #tpu.memory_space<vmem>>, vector<1x8x1xf32>
    %163 = vector.shape_cast %162 : vector<1x8x1xf32> to vector<8x1xf32>
    %164 = vector.shape_cast %161 : vector<8x1xf32> to vector<1x8x1xf32>
    tpu.vector_store %arg7[%c3_104, %c0_105, %c0_106], %164 {strides = array<i32>} : memref<4x8x1xf32, #tpu.memory_space<vmem>>, vector<1x8x1xf32>,
    %c3_107 = arith.constant 3 : index
    %c0_108 = arith.constant 0 : index
    %c0_109 = arith.constant 0 : index
    %165 = vector.load %arg8[%c3_107, %c0_108, %c0_109] : memref<4x8x8xf32, #tpu.memory_space<vmem>>, vector<1x8x8xf32>
    %166 = vector.shape_cast %165 : vector<1x8x8xf32> to vector<8x8xf32>
    %167 = vector.broadcast %152 : vector<8x1xf32> to vector<8x8xf32>
    %168 = arith.mulf %167, %166 : vector<8x8xf32>
    %169 = arith.truncf %155 : vector<8x8xf32> to vector<8x8xbf16>
    %170 = arith.truncf %142 : vector<8x8xf32> to vector<8x8xbf16>
    %cst_110 = arith.constant dense<0.000000e+00> : vector<8x8xf32>
    %171 = tpu.matmul %169, %170, %cst_110 {dimension_numbers = #tpu.dot_dimension_numbers<[1], [0], [0], [1], [0, 0, 1, 1], [], []>} : vector<8x8xbf16>, vector<8x8xbf16>, vector<8x8xf32> -> vector<8x8xf32>
    %172 = arith.addf %168, %171 : vector<8x8xf32>
    %c3_111 = arith.constant 3 : index
    %c0_112 = arith.constant 0 : index
    %c0_113 = arith.constant 0 : index
    %173 = vector.load %arg8[%c3_111, %c0_112, %c0_113] : memref<4x8x8xf32, #tpu.memory_space<vmem>>, vector<1x8x8xf32>
    %174 = vector.shape_cast %173 : vector<1x8x8xf32> to vector<8x8xf32>
    %175 = vector.shape_cast %172 : vector<8x8xf32> to vector<1x8x8xf32>
    tpu.vector_store %arg8[%c3_111, %c0_112, %c0_113], %175 {strides = array<i32>} : memref<4x8x8xf32, #tpu.memory_space<vmem>>, vector<1x8x8xf32>,
    %c3_114 = arith.constant 3 : index
    %c0_115 = arith.constant 0 : index
    %c0_116 = arith.constant 0 : index
    %176 = vector.load %arg6[%c3_114, %c0_115, %c0_116] : memref<4x8x1xf32, #tpu.memory_space<vmem>>, vector<1x8x1xf32>
    %177 = vector.shape_cast %176 : vector<1x8x1xf32> to vector<8x1xf32>
    %178 = vector.shape_cast %150 : vector<8x1xf32> to vector<1x8x1xf32>
    tpu.vector_store %arg6[%c3_114, %c0_115, %c0_116], %178 {strides = array<i32>} : memref<4x8x1xf32, #tpu.memory_space<vmem>>, vector<1x8x1xf32>,
    %c0_i32_117 = arith.constant 0 : i32
    %179 = arith.cmpi eq, %arg2, %c0_i32_117 : i32
    %180 = arith.extui %179 : i1 to i32
    %c0_i32_118 = arith.constant 0 : i32
    %181 = arith.cmpi ne, %180, %c0_i32_118 : i32
    scf.if %181 {
      %c0_119 = arith.constant 0 : index
      %c0_120 = arith.constant 0 : index
      %c0_121 = arith.constant 0 : index
      %182 = vector.load %arg8[%c0_119, %c0_120, %c0_121] : memref<4x8x8xf32, #tpu.memory_space<vmem>>, vector<1x8x8xf32>
      %183 = vector.shape_cast %182 : vector<1x8x8xf32> to vector<8x8xf32>
      %c0_122 = arith.constant 0 : index
      %c0_123 = arith.constant 0 : index
      %c0_124 = arith.constant 0 : index
      %184 = vector.load %arg7[%c0_122, %c0_123, %c0_124] : memref<4x8x1xf32, #tpu.memory_space<vmem>>, vector<1x8x1xf32>
      %185 = vector.shape_cast %184 : vector<1x8x1xf32> to vector<8x1xf32>
      %186 = tpu.reciprocal %185 {approx = true} : vector<8x1xf32> -> vector<8x1xf32>
      %187 = vector.broadcast %186 : vector<8x1xf32> to vector<8x8xf32>
      %188 = arith.mulf %183, %187 : vector<8x8xf32>
      %c1_125 = arith.constant 1 : index
      %c0_126 = arith.constant 0 : index
      %c0_127 = arith.constant 0 : index
      %189 = vector.load %arg8[%c1_125, %c0_126, %c0_127] : memref<4x8x8xf32, #tpu.memory_space<vmem>>, vector<1x8x8xf32>
      %190 = vector.shape_cast %189 : vector<1x8x8xf32> to vector<8x8xf32>
      %c1_128 = arith.constant 1 : index
      %c0_129 = arith.constant 0 : index
      %c0_130 = arith.constant 0 : index
      %191 = vector.load %arg7[%c1_128, %c0_129, %c0_130] : memref<4x8x1xf32, #tpu.memory_space<vmem>>, vector<1x8x1xf32>
      %192 = vector.shape_cast %191 : vector<1x8x1xf32> to vector<8x1xf32>
      %193 = tpu.reciprocal %192 {approx = true} : vector<8x1xf32> -> vector<8x1xf32>
      %194 = vector.broadcast %193 : vector<8x1xf32> to vector<8x8xf32>
      %195 = arith.mulf %190, %194 : vector<8x8xf32>
      %c2_131 = arith.constant 2 : index
      %c0_132 = arith.constant 0 : index
      %c0_133 = arith.constant 0 : index
      %196 = vector.load %arg8[%c2_131, %c0_132, %c0_133] : memref<4x8x8xf32, #tpu.memory_space<vmem>>, vector<1x8x8xf32>
      %197 = vector.shape_cast %196 : vector<1x8x8xf32> to vector<8x8xf32>
      %c2_134 = arith.constant 2 : index
      %c0_135 = arith.constant 0 : index
      %c0_136 = arith.constant 0 : index
      %198 = vector.load %arg7[%c2_134, %c0_135, %c0_136] : memref<4x8x1xf32, #tpu.memory_space<vmem>>, vector<1x8x1xf32>
      %199 = vector.shape_cast %198 : vector<1x8x1xf32> to vector<8x1xf32>
      %200 = tpu.reciprocal %199 {approx = true} : vector<8x1xf32> -> vector<8x1xf32>
      %201 = vector.broadcast %200 : vector<8x1xf32> to vector<8x8xf32>
      %202 = arith.mulf %197, %201 : vector<8x8xf32>
      %c3_137 = arith.constant 3 : index
      %c0_138 = arith.constant 0 : index
      %c0_139 = arith.constant 0 : index
      %203 = vector.load %arg8[%c3_137, %c0_138, %c0_139] : memref<4x8x8xf32, #tpu.memory_space<vmem>>, vector<1x8x8xf32>
      %204 = vector.shape_cast %203 : vector<1x8x8xf32> to vector<8x8xf32>
      %c3_140 = arith.constant 3 : index
      %c0_141 = arith.constant 0 : index
      %c0_142 = arith.constant 0 : index
      %205 = vector.load %arg7[%c3_140, %c0_141, %c0_142] : memref<4x8x1xf32, #tpu.memory_space<vmem>>, vector<1x8x1xf32>
      %206 = vector.shape_cast %205 : vector<1x8x1xf32> to vector<8x1xf32>
      %207 = tpu.reciprocal %206 {approx = true} : vector<8x1xf32> -> vector<8x1xf32>
      %208 = vector.broadcast %207 : vector<8x1xf32> to vector<8x8xf32>
      %209 = arith.mulf %204, %208 : vector<8x8xf32>
      %210 = tpu.concatenate %188, %195, %202, %209 in 1 : vector<8x8xf32>, vector<8x8xf32>, vector<8x8xf32>, vector<8x8xf32> -> vector<8x32xf32>
      %c0_143 = arith.constant 0 : index
      %c0_144 = arith.constant 0 : index
      %c0_145 = arith.constant 0 : index
      %211 = vector.load %arg5[%c0_143, %c0_144, %c0_145] : memref<1x8x32xf32, #tpu.memory_space<vmem>>, vector<1x8x32xf32>
      %212 = vector.shape_cast %211 : vector<1x8x32xf32> to vector<8x32xf32>
      %213 = vector.shape_cast %210 : vector<8x32xf32> to vector<1x8x32xf32>
      tpu.vector_store %arg5[%c0_143, %c0_144, %c0_145], %213 {strides = array<i32>} : memref<1x8x32xf32, #tpu.memory_space<vmem>>, vector<1x8x32xf32>,
    } else {
    }
    return
  }
  func.func @transform_0(%arg0: i32, %arg1: i32, %arg2: i32) -> (i32, i32, i32) {
    %c0_i32 = arith.constant 0 : i32
    %c0_i32_0 = arith.constant 0 : i32
    return %arg0, %arg1, %c0_i32 : i32, i32, i32
  }
  func.func @transform_1(%arg0: i32, %arg1: i32, %arg2: i32) -> (i32, i32, i32) {
    %c0_i32 = arith.constant 0 : i32
    %c0_i32_0 = arith.constant 0 : i32
    return %arg0, %arg2, %c0_i32 : i32, i32, i32
  }
  func.func @transform_2(%arg0: i32, %arg1: i32, %arg2: i32) -> (i32, i32, i32) {
    %c0_i32 = arith.constant 0 : i32
    %c0_i32_0 = arith.constant 0 : i32
    return %arg0, %arg1, %c0_i32 : i32, i32, i32
  }
}

module attributes {stable_mosaic.version = 11 : i64} {
  func.func @_linear_noacc_kernel(%arg0: i32, %arg1: i32, %arg2: memref<16x32xf32, #tpu.memory_space<vmem>>, %arg3: memref<32x64xf32, #tpu.memory_space<vmem>>, %arg4: memref<1x64xf32, #tpu.memory_space<vmem>>, %arg5: memref<16x64xf32, #tpu.memory_space<vmem>>) attributes {dimension_semantics = [#tpu.dimension_semantics<parallel>, #tpu.dimension_semantics<parallel>], iteration_bounds = array<i64: 1, 1>, scalar_prefetch = 0 : i64, scratch_operands = 0 : i64, tpu.core_type = #tpu.core_type<tc>, window_params = [{transform_indices = @transform_0, window_bounds = array<i64: 16, 32>}, {transform_indices = @transform_1, window_bounds = array<i64: 32, 64>}, {transform_indices = @transform_2, window_bounds = array<i64: 1, 64>}, {transform_indices = @transform_3, window_bounds = array<i64: 16, 64>}]} {
    %c0 = arith.constant 0 : index
    %c0_0 = arith.constant 0 : index
    %0 = vector.load %arg2[%c0, %c0_0] : memref<16x32xf32, #tpu.memory_space<vmem>>, vector<16x32xf32>
    %c0_1 = arith.constant 0 : index
    %c0_2 = arith.constant 0 : index
    %1 = vector.load %arg3[%c0_1, %c0_2] : memref<32x64xf32, #tpu.memory_space<vmem>>, vector<32x64xf32>
    %2 = arith.truncf %0 : vector<16x32xf32> to vector<16x32xbf16>
    %3 = arith.truncf %1 : vector<32x64xf32> to vector<32x64xbf16>
    %cst = arith.constant dense<0.000000e+00> : vector<16x64xf32>
    %4 = tpu.matmul %2, %3, %cst {dimension_numbers = #tpu.dot_dimension_numbers<[1], [0], [0], [1], [0, 0, 1, 1], [], []>} : vector<16x32xbf16>, vector<32x64xbf16>, vector<16x64xf32> -> vector<16x64xf32>
    %c0_3 = arith.constant 0 : index
    %c0_4 = arith.constant 0 : index
    %5 = vector.load %arg4[%c0_3, %c0_4] : memref<1x64xf32, #tpu.memory_space<vmem>>, vector<1x64xf32>
    %6 = vector.broadcast %5 : vector<1x64xf32> to vector<16x64xf32>
    %7 = arith.addf %4, %6 : vector<16x64xf32>
    %cst_5 = arith.constant 5.000000e-01 : f32
    %8 = vector.broadcast %cst_5 : f32 to vector<16x64xf32>
    %9 = arith.mulf %8, %7 : vector<16x64xf32>
    %cst_6 = arith.constant 0.707106769 : f32
    %10 = vector.broadcast %cst_6 : f32 to vector<16x64xf32>
    %11 = arith.mulf %7, %10 : vector<16x64xf32>
    %12 = math.erf %11 : vector<16x64xf32>
    %cst_7 = arith.constant 1.000000e+00 : f32
    %13 = vector.broadcast %cst_7 : f32 to vector<16x64xf32>
    %14 = arith.addf %13, %12 : vector<16x64xf32>
    %15 = arith.mulf %9, %14 : vector<16x64xf32>
    %c0_8 = arith.constant 0 : index
    %c0_9 = arith.constant 0 : index
    %16 = vector.load %arg5[%c0_8, %c0_9] : memref<16x64xf32, #tpu.memory_space<vmem>>, vector<16x64xf32>
    tpu.vector_store %arg5[%c0_8, %c0_9], %15 {strides = array<i32>} : memref<16x64xf32, #tpu.memory_space<vmem>>, vector<16x64xf32>,
    return
  }
  func.func @transform_0(%arg0: i32, %arg1: i32) -> (i32, i32) {
    %c0_i32 = arith.constant 0 : i32
    %c0_i32_0 = arith.constant 0 : i32
    return %arg0, %c0_i32 : i32, i32
  }
  func.func @transform_1(%arg0: i32, %arg1: i32) -> (i32, i32) {
    %c0_i32 = arith.constant 0 : i32
    %c0_i32_0 = arith.constant 0 : i32
    return %c0_i32, %arg1 : i32, i32
  }
  func.func @transform_2(%arg0: i32, %arg1: i32) -> (i32, i32) {
    %c0_i32 = arith.constant 0 : i32
    %c0_i32_0 = arith.constant 0 : i32
    return %c0_i32, %arg1 : i32, i32
  }
  func.func @transform_3(%arg0: i32, %arg1: i32) -> (i32, i32) {
    %c0_i32 = arith.constant 0 : i32
    return %arg0, %arg1 : i32, i32
  }
}

module attributes {stable_mosaic.version = 11 : i64} {
  func.func @_linear_add_ln_noacc_kernel(%arg0: i32, %arg1: memref<16x64xf32, #tpu.memory_space<vmem>>, %arg2: memref<64x32xf32, #tpu.memory_space<vmem>>, %arg3: memref<1x32xf32, #tpu.memory_space<vmem>>, %arg4: memref<16x32xf32, #tpu.memory_space<vmem>>, %arg5: memref<1x32xf32, #tpu.memory_space<vmem>>, %arg6: memref<1x32xf32, #tpu.memory_space<vmem>>, %arg7: memref<16x32xf32, #tpu.memory_space<vmem>>) attributes {dimension_semantics = [#tpu.dimension_semantics<parallel>], iteration_bounds = array<i64: 1>, scalar_prefetch = 0 : i64, scratch_operands = 0 : i64, tpu.core_type = #tpu.core_type<tc>, window_params = [{transform_indices = @transform_0, window_bounds = array<i64: 16, 64>}, {pipeline_mode = #tpu.pipeline_mode<synchronous>, transform_indices = @transform_1, window_bounds = array<i64: 64, 32>}, {pipeline_mode = #tpu.pipeline_mode<synchronous>, transform_indices = @transform_2, window_bounds = array<i64: 1, 32>}, {transform_indices = @transform_3, window_bounds = array<i64: 16, 32>}, {pipeline_mode = #tpu.pipeline_mode<synchronous>, transform_indices = @transform_4, window_bounds = array<i64: 1, 32>}, {pipeline_mode = #tpu.pipeline_mode<synchronous>, transform_indices = @transform_5, window_bounds = array<i64: 1, 32>}, {transform_indices = @transform_6, window_bounds = array<i64: 16, 32>}]} {
    %c0 = arith.constant 0 : index
    %c0_0 = arith.constant 0 : index
    %0 = vector.load %arg1[%c0, %c0_0] : memref<16x64xf32, #tpu.memory_space<vmem>>, vector<16x64xf32>
    %c0_1 = arith.constant 0 : index
    %c0_2 = arith.constant 0 : index
    %1 = vector.load %arg2[%c0_1, %c0_2] : memref<64x32xf32, #tpu.memory_space<vmem>>, vector<64x32xf32>
    %2 = arith.truncf %0 : vector<16x64xf32> to vector<16x64xbf16>
    %3 = arith.truncf %1 : vector<64x32xf32> to vector<64x32xbf16>
    %cst = arith.constant dense<0.000000e+00> : vector<16x32xf32>
    %4 = tpu.matmul %2, %3, %cst {dimension_numbers = #tpu.dot_dimension_numbers<[1], [0], [0], [1], [0, 0, 1, 1], [], []>} : vector<16x64xbf16>, vector<64x32xbf16>, vector<16x32xf32> -> vector<16x32xf32>
    %c0_3 = arith.constant 0 : index
    %c0_4 = arith.constant 0 : index
    %5 = vector.load %arg3[%c0_3, %c0_4] : memref<1x32xf32, #tpu.memory_space<vmem>>, vector<1x32xf32>
    %6 = vector.broadcast %5 : vector<1x32xf32> to vector<16x32xf32>
    %7 = arith.addf %4, %6 : vector<16x32xf32>
    %c0_5 = arith.constant 0 : index
    %c0_6 = arith.constant 0 : index
    %8 = vector.load %arg4[%c0_5, %c0_6] : memref<16x32xf32, #tpu.memory_space<vmem>>, vector<16x32xf32>
    %9 = arith.addf %7, %8 : vector<16x32xf32>
    %cst_7 = arith.constant dense<0.000000e+00> : vector<16xf32>
    %10 = vector.multi_reduction <add>, %9, %cst_7 [1] : vector<16x32xf32> to vector<16xf32>
    %11 = vector.shape_cast %10 : vector<16xf32> to vector<16x1xf32>
    %cst_8 = arith.constant 3.200000e+01 : f32
    %12 = vector.broadcast %cst_8 : f32 to vector<16x1xf32>
    %13 = arith.divf %11, %12 : vector<16x1xf32>
    %14 = vector.broadcast %13 : vector<16x1xf32> to vector<16x32xf32>
    %15 = arith.subf %9, %14 : vector<16x32xf32>
    %16 = arith.mulf %15, %15 : vector<16x32xf32>
    %cst_9 = arith.constant dense<0.000000e+00> : vector<16xf32>
    %17 = vector.multi_reduction <add>, %16, %cst_9 [1] : vector<16x32xf32> to vector<16xf32>
    %18 = vector.shape_cast %17 : vector<16xf32> to vector<16x1xf32>
    %cst_10 = arith.constant 3.200000e+01 : f32
    %19 = vector.broadcast %cst_10 : f32 to vector<16x1xf32>
    %20 = arith.divf %18, %19 : vector<16x1xf32>
    %cst_11 = arith.constant 9.99999974E-6 : f32
    %21 = vector.broadcast %cst_11 : f32 to vector<16x1xf32>
    %22 = arith.addf %20, %21 : vector<16x1xf32>
    %23 = math.rsqrt %22 : vector<16x1xf32>
    %24 = vector.broadcast %23 : vector<16x1xf32> to vector<16x32xf32>
    %25 = arith.mulf %15, %24 : vector<16x32xf32>
    %c0_12 = arith.constant 0 : index
    %c0_13 = arith.constant 0 : index
    %26 = vector.load %arg5[%c0_12, %c0_13] : memref<1x32xf32, #tpu.memory_space<vmem>>, vector<1x32xf32>
    %27 = vector.broadcast %26 : vector<1x32xf32> to vector<16x32xf32>
    %28 = arith.mulf %25, %27 : vector<16x32xf32>
    %c0_14 = arith.constant 0 : index
    %c0_15 = arith.constant 0 : index
    %29 = vector.load %arg6[%c0_14, %c0_15] : memref<1x32xf32, #tpu.memory_space<vmem>>, vector<1x32xf32>
    %30 = vector.broadcast %29 : vector<1x32xf32> to vector<16x32xf32>
    %31 = arith.addf %28, %30 : vector<16x32xf32>
    %c0_16 = arith.constant 0 : index
    %c0_17 = arith.constant 0 : index
    %32 = vector.load %arg7[%c0_16, %c0_17] : memref<16x32xf32, #tpu.memory_space<vmem>>, vector<16x32xf32>
    tpu.vector_store %arg7[%c0_16, %c0_17], %31 {strides = array<i32>} : memref<16x32xf32, #tpu.memory_space<vmem>>, vector<16x32xf32>,
    return
  }
  func.func @transform_0(%arg0: i32) -> (i32, i32) {
    %c0_i32 = arith.constant 0 : i32
    %c0_i32_0 = arith.constant 0 : i32
    return %arg0, %c0_i32 : i32, i32
  }
  func.func @transform_1(%arg0: i32) -> (i32, i32) {
    %c0_i32 = arith.constant 0 : i32
    %c0_i32_0 = arith.constant 0 : i32
    %c0_i32_1 = arith.constant 0 : i32
    return %c0_i32, %c0_i32_0 : i32, i32
  }
  func.func @transform_2(%arg0: i32) -> (i32, i32) {
    %c0_i32 = arith.constant 0 : i32
    %c0_i32_0 = arith.constant 0 : i32
    %c0_i32_1 = arith.constant 0 : i32
    return %c0_i32, %c0_i32_0 : i32, i32
  }
  func.func @transform_3(%arg0: i32) -> (i32, i32) {
    %c0_i32 = arith.constant 0 : i32
    %c0_i32_0 = arith.constant 0 : i32
    return %arg0, %c0_i32 : i32, i32
  }
  func.func @transform_4(%arg0: i32) -> (i32, i32) {
    %c0_i32 = arith.constant 0 : i32
    %c0_i32_0 = arith.constant 0 : i32
    %c0_i32_1 = arith.constant 0 : i32
    return %c0_i32, %c0_i32_0 : i32, i32
  }
  func.func @transform_5(%arg0: i32) -> (i32, i32) {
    %c0_i32 = arith.constant 0 : i32
    %c0_i32_0 = arith.constant 0 : i32
    %c0_i32_1 = arith.constant 0 : i32
    return %c0_i32, %c0_i32_0 : i32, i32
  }
  func.func @transform_6(%arg0: i32) -> (i32, i32) {
    %c0_i32 = arith.constant 0 : i32
    %c0_i32_0 = arith.constant 0 : i32
    return %arg0, %c0_i32 : i32, i32
  }
}

module attributes {stable_mosaic.version = 11 : i64} {
  func.func @_ln_kernel(%arg0: i32, %arg1: memref<16x32xf32, #tpu.memory_space<vmem>>, %arg2: memref<1x32xf32, #tpu.memory_space<vmem>>, %arg3: memref<1x32xf32, #tpu.memory_space<vmem>>, %arg4: memref<16x32xf32, #tpu.memory_space<vmem>>) attributes {dimension_semantics = [#tpu.dimension_semantics<parallel>], iteration_bounds = array<i64: 1>, scalar_prefetch = 0 : i64, scratch_operands = 0 : i64, tpu.core_type = #tpu.core_type<tc>, window_params = [{transform_indices = @transform_0, window_bounds = array<i64: 16, 32>}, {pipeline_mode = #tpu.pipeline_mode<synchronous>, transform_indices = @transform_1, window_bounds = array<i64: 1, 32>}, {pipeline_mode = #tpu.pipeline_mode<synchronous>, transform_indices = @transform_2, window_bounds = array<i64: 1, 32>}, {transform_indices = @transform_3, window_bounds = array<i64: 16, 32>}]} {
    %c0 = arith.constant 0 : index
    %c0_0 = arith.constant 0 : index
    %0 = vector.load %arg1[%c0, %c0_0] : memref<16x32xf32, #tpu.memory_space<vmem>>, vector<16x32xf32>
    %cst = arith.constant dense<0.000000e+00> : vector<16xf32>
    %1 = vector.multi_reduction <add>, %0, %cst [1] : vector<16x32xf32> to vector<16xf32>
    %2 = vector.shape_cast %1 : vector<16xf32> to vector<16x1xf32>
    %cst_1 = arith.constant 3.200000e+01 : f32
    %3 = vector.broadcast %cst_1 : f32 to vector<16x1xf32>
    %4 = arith.divf %2, %3 : vector<16x1xf32>
    %5 = vector.broadcast %4 : vector<16x1xf32> to vector<16x32xf32>
    %6 = arith.subf %0, %5 : vector<16x32xf32>
    %7 = arith.mulf %6, %6 : vector<16x32xf32>
    %cst_2 = arith.constant dense<0.000000e+00> : vector<16xf32>
    %8 = vector.multi_reduction <add>, %7, %cst_2 [1] : vector<16x32xf32> to vector<16xf32>
    %9 = vector.shape_cast %8 : vector<16xf32> to vector<16x1xf32>
    %cst_3 = arith.constant 3.200000e+01 : f32
    %10 = vector.broadcast %cst_3 : f32 to vector<16x1xf32>
    %11 = arith.divf %9, %10 : vector<16x1xf32>
    %cst_4 = arith.constant 9.99999974E-6 : f32
    %12 = vector.broadcast %cst_4 : f32 to vector<16x1xf32>
    %13 = arith.addf %11, %12 : vector<16x1xf32>
    %14 = math.rsqrt %13 : vector<16x1xf32>
    %15 = vector.broadcast %14 : vector<16x1xf32> to vector<16x32xf32>
    %16 = arith.mulf %6, %15 : vector<16x32xf32>
    %c0_5 = arith.constant 0 : index
    %c0_6 = arith.constant 0 : index
    %17 = vector.load %arg2[%c0_5, %c0_6] : memref<1x32xf32, #tpu.memory_space<vmem>>, vector<1x32xf32>
    %18 = vector.broadcast %17 : vector<1x32xf32> to vector<16x32xf32>
    %19 = arith.mulf %16, %18 : vector<16x32xf32>
    %c0_7 = arith.constant 0 : index
    %c0_8 = arith.constant 0 : index
    %20 = vector.load %arg3[%c0_7, %c0_8] : memref<1x32xf32, #tpu.memory_space<vmem>>, vector<1x32xf32>
    %21 = vector.broadcast %20 : vector<1x32xf32> to vector<16x32xf32>
    %22 = arith.addf %19, %21 : vector<16x32xf32>
    %c0_9 = arith.constant 0 : index
    %c0_10 = arith.constant 0 : index
    %23 = vector.load %arg4[%c0_9, %c0_10] : memref<16x32xf32, #tpu.memory_space<vmem>>, vector<16x32xf32>
    tpu.vector_store %arg4[%c0_9, %c0_10], %22 {strides = array<i32>} : memref<16x32xf32, #tpu.memory_space<vmem>>, vector<16x32xf32>,
    return
  }
  func.func @transform_0(%arg0: i32) -> (i32, i32) {
    %c0_i32 = arith.constant 0 : i32
    %c0_i32_0 = arith.constant 0 : i32
    return %arg0, %c0_i32 : i32, i32
  }
  func.func @transform_1(%arg0: i32) -> (i32, i32) {
    %c0_i32 = arith.constant 0 : i32
    %c0_i32_0 = arith.constant 0 : i32
    %c0_i32_1 = arith.constant 0 : i32
    return %c0_i32, %c0_i32_0 : i32, i32
  }
  func.func @transform_2(%arg0: i32) -> (i32, i32) {
    %c0_i32 = arith.constant 0 : i32
    %c0_i32_0 = arith.constant 0 : i32
    %c0_i32_1 = arith.constant 0 : i32
    return %c0_i32, %c0_i32_0 : i32, i32
  }
  func.func @transform_3(%arg0: i32) -> (i32, i32) {
    %c0_i32 = arith.constant 0 : i32
    %c0_i32_0 = arith.constant 0 : i32
    return %arg0, %c0_i32 : i32, i32
  }
}

</mosaic_0001>

<bundles_post_ra>
// kernel: _lambda_.22
= control target key start
LH: loop header
LB: loop body
LE: loop exit
PB: predicated region body
PF: predicated region fallthrough
CT: control target
= control target key end

     0   :  { %11 = vsyncpa [#allocation3], 0  ;;  %s583_s0 = inlined_call_operand.hbm [shape: f32[16,32], index: 0, kind: input, shape index: {}]   ;;  %s584_s1 = inlined_call_operand.hbm [shape: f32[32,32], index: 1, kind: input, shape index: {}]   ;;  %s585_s2 = inlined_call_operand.hbm [shape: f32[1,32], index: 2, kind: input, shape index: {}]   ;;  %s586_s3 = inlined_call_operand.hbm [shape: f32[16,32], index: 3, kind: input, shape index: {}]   ;;  %s587_s4 = inlined_call_operand.hbm [shape: f32[1,32], index: 4, kind: input, shape index: {}]   ;;  %s588_s5 = inlined_call_operand.hbm [shape: f32[1,32], index: 5, kind: input, shape index: {}]   ;;  %s589_s6 = inlined_call_operand.hbm [shape: f32[16,32], index: 6, kind: output, shape index: {}]  }
   0x1   :  { %12 = vsyncpa [#allocation6], 0 }
   0x2   :  { %13 = vsyncpa [#allocation9], 0 }
   0x3   :  { %14 = vsyncpa [#allocation12], 0 }
   0x4   :  { %15 = vsyncpa [#allocation4], 0  ;;  %s427_s21 = smov [#allocation5]   ;;  %s428_s23 = smov [#allocation8]  }
   0x5   :  { %s33_s22 = sshll.u32 %s427_s21, 4  ;;  %s55_s24 = sshll.u32 %s428_s23, 4  ;;  %s34_s22 = int_to_ptr.vmem [resolvable:$true] %s33_s22  ;;  %s473_s24 = int_to_ptr.vmem [resolvable:$true] %s55_s24 }
   0x6   :  { %s263_s27 = scalar_lea.hbm %s584_s1, 512 }
   0x7   :  { %p264_p0 = scmp.ne.s32.totalorder %s584_s1, %s263_s27  ;;  %p267_p1 = scmp.lt.u32.totalorder %s263_s27, %s584_s1 }
   0x9   :  { %p269_p2 = pnand %p267_p1, %p264_p0 }
   0xb   :  { %272 = shalt.err (!%p269_p2)
}
   0xc   :  { %s273_s8 = scalar_lea.vmem %s34_s22, 512  ;;  %p278_p4 = scmp.lt.s32.totalorder %s34_s22, %s34_s22 }
   0xd   :  { %p274_p3 = scmp.ne.s32.totalorder %s34_s22, %s273_s8  ;;  %p279_p5 = scmp.lt.s32.totalorder %s273_s8, %s273_s8 }
   0xf   :  { %p280_p6 = por %p279_p5, %p278_p4 }
  0x11   :  { %p281_p7 = pnand %p280_p6, %p274_p3 }
  0x13   :  { %284 = shalt.err (!%p281_p7)
}
  0x14   :  { %s429_s9 = smov 128   ;;  %s430_s10 = smov 8  }
  0x15   :  { %39 = dma.hbm_to_vmem [thread:$0]  %s584_s1, 512, %s34_s22, [#allocation6], %s429_s9, %s429_s9, %s430_s10  }
  0x16   :  { %s285_s15 = scalar_lea.hbm %s586_s3, 256 }
  0x17   :  { %p286_p8 = scmp.ne.s32.totalorder %s586_s3, %s285_s15  ;;  %p289_p9 = scmp.lt.u32.totalorder %s285_s15, %s586_s3 }
  0x19   :  { %p291_p10 = pnand %p289_p9, %p286_p8 }
  0x1b   :  { %294 = shalt.err (!%p291_p10)
}
  0x1c   :  { %s295_s20 = scalar_lea.vmem %s473_s24, 256  ;;  %p300_p12 = scmp.lt.s32.totalorder %s473_s24, %s473_s24 }
  0x1d   :  { %p296_p11 = scmp.ne.s32.totalorder %s473_s24, %s295_s20  ;;  %p301_p13 = scmp.lt.s32.totalorder %s295_s20, %s295_s20 }
  0x1f   :  { %p302_p0 = por %p301_p13, %p300_p12 }
  0x21   :  { %p303_p1 = pnand %p302_p0, %p296_p11 }
  0x23   :  { %306 = shalt.err (!%p303_p1)
}
  0x24   :  { %61 = dma.hbm_to_vmem [thread:$0]  %s586_s3, 256, %s473_s24, [#allocation9], %s429_s9, %s429_s9, %s430_s10  }
  0x25   :  { %s431_s22 = smov [#allocation2]   ;;  %s432_s25 = smov [#allocation7]  }
  0x26   :  { %s21_s23 = sshll.u32 %s431_s22, 4  ;;  %s46_s26 = sshll.u32 %s432_s25, 4  ;;  %s22_s23 = int_to_ptr.vmem [resolvable:$true] %s21_s23  ;;  %s47_s26 = int_to_ptr.vmem [resolvable:$true] %s46_s26 }
  0x27   :  { %s307_s29 = scalar_lea.hbm %s583_s0, 256 }
  0x28   :  { %p308_p2 = scmp.ne.s32.totalorder %s583_s0, %s307_s29  ;;  %p311_p3 = scmp.lt.u32.totalorder %s307_s29, %s583_s0 }
  0x2a   :  { %p313_p4 = pnand %p311_p3, %p308_p2 }
  0x2c   :  { %316 = shalt.err (!%p313_p4)
}
  0x2d   :  { %s317_s3 = scalar_lea.vmem %s22_s23, 256  ;;  %p322_p6 = scmp.lt.s32.totalorder %s22_s23, %s22_s23 }
  0x2e   :  { %p318_p5 = scmp.ne.s32.totalorder %s22_s23, %s317_s3  ;;  %p323_p7 = scmp.lt.s32.totalorder %s317_s3, %s317_s3 }
  0x30   :  { %p324_p8 = por %p323_p7, %p322_p6 }
  0x32   :  { %p325_p9 = pnand %p324_p8, %p318_p5 }
  0x34   :  { %328 = shalt.err (!%p325_p9)
}
  0x35   :  { %27 = dma.hbm_to_vmem [thread:$0]  %s583_s0, 256, %s22_s23, [#allocation3], %s429_s9, %s429_s9, %s430_s10  }
  0x36   :  { %s329_s15 = scalar_lea.hbm %s585_s2, 16 }
  0x37   :  { %p330_p10 = scmp.ne.s32.totalorder %s585_s2, %s329_s15  ;;  %p333_p11 = scmp.lt.u32.totalorder %s329_s15, %s585_s2 }
  0x39   :  { %p335_p12 = pnand %p333_p11, %p330_p10 }
  0x3b   :  { %338 = shalt.err (!%p335_p12)
}
  0x3c   :  { %s339_s20 = scalar_lea.vmem %s47_s26, 16  ;;  %s343_s1 = scalar_lea.vmem %s47_s26, 32 }
  0x3d   :  { %p340_p13 = scmp.ne.s32.totalorder %s47_s26, %s339_s20  ;;  %p344_p0 = scmp.lt.s32.totalorder %s47_s26, %s47_s26 }
  0x3e   :  { %p345_p1 = scmp.lt.s32.totalorder %s343_s1, %s339_s20 }
  0x40   :  { %p346_p2 = por %p345_p1, %p344_p0 }
  0x42   :  { %p347_p3 = pnand %p346_p2, %p340_p13 }
  0x44   :  { %350 = shalt.err (!%p347_p3)
}
  0x45   :  { %49 = dma.hbm_to_vmem [thread:$0]  %s585_s2, 16, %s47_s26, [#allocation6]  }
  0x46   :  { %s433_s22 = smov [#allocation10]   ;;  %s434_s25 = smov [#allocation11]  }
  0x47   :  { %s68_s23 = sshll.u32 %s433_s22, 4  ;;  %s78_s27 = sshll.u32 %s434_s25, 4  ;;  %s69_s23 = int_to_ptr.vmem [resolvable:$true] %s68_s23  ;;  %s79_s27 = int_to_ptr.vmem [resolvable:$true] %s78_s27 }
  0x48   :  { %s351_s30 = scalar_lea.hbm %s587_s4, 16 }
  0x49   :  { %p352_p4 = scmp.ne.s32.totalorder %s587_s4, %s351_s30  ;;  %p355_p5 = scmp.lt.u32.totalorder %s351_s30, %s587_s4 }
  0x4b   :  { %p357_p6 = pnand %p355_p5, %p352_p4 }
  0x4d   :  { %360 = shalt.err (!%p357_p6)
}
  0x4e   :  { %s361_s2 = scalar_lea.vmem %s69_s23, 16  ;;  %s365_s26 = scalar_lea.vmem %s69_s23, 32 }
  0x4f   :  { %p362_p7 = scmp.ne.s32.totalorder %s69_s23, %s361_s2  ;;  %p366_p8 = scmp.lt.s32.totalorder %s69_s23, %s69_s23 }
  0x50   :  { %p367_p9 = scmp.lt.s32.totalorder %s365_s26, %s361_s2 }
  0x52   :  { %p368_p10 = por %p367_p9, %p366_p8 }
  0x54   :  { %p369_p11 = pnand %p368_p10, %p362_p7 }
  0x56   :  { %372 = shalt.err (!%p369_p11)
}
  0x57   :  { %71 = dma.hbm_to_vmem [thread:$0]  %s587_s4, 16, %s69_s23, [#allocation9]  }
  0x58   :  { %s373_s15 = scalar_lea.hbm %s588_s5, 16 }
  0x59   :  { %p374_p12 = scmp.ne.s32.totalorder %s588_s5, %s373_s15  ;;  %p377_p13 = scmp.lt.u32.totalorder %s373_s15, %s588_s5 }
  0x5b   :  { %p379_p0 = pnand %p377_p13, %p374_p12 }
  0x5d   :  { %382 = shalt.err (!%p379_p0)
}
  0x5e   :  { %s383_s20 = scalar_lea.vmem %s79_s27, 16  ;;  %s387_s1 = scalar_lea.vmem %s79_s27, 32 }
  0x5f   :  { %p384_p1 = scmp.ne.s32.totalorder %s79_s27, %s383_s20  ;;  %p388_p2 = scmp.lt.s32.totalorder %s79_s27, %s79_s27 }
  0x60   :  { %p389_p3 = scmp.lt.s32.totalorder %s387_s1, %s383_s20 }
  0x62   :  { %p390_p4 = por %p389_p3, %p388_p2 }
  0x64   :  { %p391_p5 = pnand %p390_p4, %p384_p1 }
  0x66   :  { %394 = shalt.err (!%p391_p5)
}
  0x67   :  { %81 = dma.hbm_to_vmem [thread:$0]  %s588_s5, 16, %s79_s27, [#allocation12]  }
  0x68   :  { %417 = dma.done.wait [#allocation3], 256  }
  0x69   :  { %418 = vsyncadd [#allocation3], 4294967040 }
  0x6a   :  { %419 = dma.done.wait [#allocation6], 528  }
  0x6b   :  { %420 = vsyncadd [#allocation6], 4294966768 }
  0x6c   :  { %421 = dma.done.wait [#allocation9], 272  }
  0x6d   :  { %422 = vsyncadd [#allocation9], 4294967024 }
  0x6e   :  { %423 = dma.done.wait [#allocation12], 16  }
  0x6f   :  { %424 = vsyncadd [#allocation12], 4294967280  ;;  %v435_v0 = vmov 0.0   ;;  %vm436_vm0 = vmmov 0   ;;  %v103_v1 = vld [vmem:[#allocation5] sm:$0xff]  ;;  %v104_v2 = vld [vmem:[#allocation5 + $0x8] sm:$0xff] }
  0x70   :  { %240 = vmatprep.subr.bf16.mxu0 %v435_v0  ;;  %244 = vmatprep.mubr.msk.bf16.mxu0 %vm436_vm0, %v435_v0  ;;  %v105_v3 = vld [vmem:[#allocation5 + $0x10] sm:$0xff]  ;;  %v108_v4 = vpack.c.bf16 %v104_v2, %v103_v1  ;;  %v106_v5 = vld [vmem:[#allocation5 + $0x18] sm:$0xff]  ;;  %vm117_vm1 = vcmask 261120   ;;  %v233_v10 = vld [vmem:[#allocation7] ss:$0 sm:$0xff]  ;;  %s437_s5 = smov [#allocation13]  }
  0x71   :  { %v109_v6 = vpack.c.bf16 %v106_v5, %v105_v3  ;;  %v101_v7 = vld [vmem:[#allocation2] sm:$0xff]  ;;  %v102_v8 = vld [vmem:[#allocation2 + $0x8] sm:$0xff]  ;;  %v162_v12 = vld [vmem:[#allocation8] sm:$0xff]  ;;  %s218_s21 = sshll.u32 %s437_s5, 4  ;;  %s219_s21 = int_to_ptr.vmem [resolvable:$true] %s218_s21 }
  0x72   :  { %241 = vmatpush3.bf16.msra.mxu0 %v108_v4  ;;  %v107_v9 = vpack.c.bf16 %v102_v8, %v101_v7  ;;  %v163_v16 = vld [vmem:[#allocation8 + $0x8] sm:$0xff]  ;;  %v235_v40 = vld [vmem:[#allocation10] ss:$0 sm:$0xff]  ;;  %v236_v42 = vld [vmem:[#allocation11] ss:$0 sm:$0xff]  ;;  %s395_s22 = scalar_lea.vmem %s219_s21, 256  ;;  %p400_p7 = scmp.lt.s32.totalorder %s219_s21, %s219_s21 }
  0x73   :  { %242 = vmatprep.subr.bf16.mxu0 %v435_v0  ;;  %p396_p6 = scmp.ne.s32.totalorder %s219_s21, %s395_s22  ;;  %p401_p8 = scmp.lt.s32.totalorder %s395_s22, %s395_s22 }
  0x75   :  { %p402_p9 = por %p401_p8, %p400_p7 }
  0x76   :  { %243 = vmatpush3.bf16.msra.mxu0 %v109_v6 }
  0x77   :  { %p403_p10 = pnand %p402_p9, %p396_p6 }
  0x79   :  { %245 = vmatmul.mubr.msk.bf16.vlgmr.msra.gmra.mrb[0].mxu0 %vm117_vm1, %v107_v9 }
 0x14c   :  { %v155_v11 = vpop.f32.mrb[0].mxu0 }
 0x14d   :  { %v156_v13 = vadd.f32 %v233_v10, %v155_v11  ;;  %v246_v14 = vpop.f32.mrb[1].mxu0 }
 0x14e   :  { %v158_v15 = vpop.f32.mrb[2].mxu0 }
 0x14f   :  { %v159_v17 = vadd.f32 %v233_v10, %v158_v15  ;;  %v247_v18 = vpop.f32.mrb[3].mxu0  ;;  %v164_v19 = vadd.f32 %v162_v12, %v156_v13 }
 0x151   :  { %v166_v20 = vsel %vm117_vm1, %v164_v19, 0.0  ;;  %v165_v21 = vadd.f32 %v163_v16, %v159_v17 }
 0x152   :  { %167 = vadd.xlane.f32.xlu0 %v166_v20 }
 0x153   :  { %v169_v22 = vsel %vm117_vm1, %v165_v21, 0.0 }
 0x156   :  { %170 = vadd.xlane.f32.xlu0 %v169_v22 }
 0x1df   :  { %v168_v23 = vpop.xlane.xlu0 %167 }
 0x1e0   :  { %v173_v24 = vmul.f32 0.03125, %v168_v23 }
 0x1e2   :  { %v175_v25 = vsub.f32 %v164_v19, %v173_v24 }
 0x1e3   :  { %v171_v26 = vpop.xlane.xlu0 %170 }
 0x1e4   :  { %v174_v27 = vmul.f32 0.03125, %v171_v26  ;;  %v177_v28 = vmul.f32 %v175_v25, %v175_v25 }
 0x1e6   :  { %v176_v29 = vsub.f32 %v165_v21, %v174_v27  ;;  %v179_v30 = vsel %vm117_vm1, %v177_v28, 0.0 }
 0x1e7   :  { %180 = vadd.xlane.f32.xlu1 %v179_v30 }
 0x1e8   :  { %v178_v31 = vmul.f32 %v176_v29, %v176_v29 }
 0x1ea   :  { %v182_v32 = vsel %vm117_vm1, %v178_v31, 0.0 }
 0x1eb   :  { %183 = vadd.xlane.f32.xlu1 %v182_v32 }
 0x274   :  { %v181_v33 = vpop.xlane.xlu1 %180 }
 0x275   :  { %v185_v34 = vmul.f32 0.03125, %v181_v33 }
 0x277   :  { %v187_v35 = vadd.f32 1e-05, %v185_v34 }
 0x278   :  { %v184_v36 = vpop.xlane.xlu1 %183 }
 0x279   :  { %259 = vrsqrt.f32 %v187_v35  ;;  %v186_v37 = vmul.f32 0.03125, %v184_v36 }
 0x27b   :  { %v188_v38 = vadd.f32 1e-05, %v186_v37 }
 0x27d   :  { %261 = vrsqrt.f32 %v188_v38 }
 0x283   :  { %v260_v39 = vpop.eup %259 }
 0x284   :  { %v191_v41 = vmul.f32 %v260_v39, %v175_v25 }
 0x286   :  { %v200_v43 = vmul.f32 %v235_v40, %v191_v41 }
 0x287   :  { %v262_v44 = vpop.eup %261 }
 0x288   :  { %v192_v45 = vmul.f32 %v262_v44, %v176_v29  ;;  %v209_v46 = vadd.f32 %v236_v42, %v200_v43 }
 0x28a   :  { %v201_v47 = vmul.f32 %v235_v40, %v192_v45  ;;  %211 = vst.msk [vmem:[#allocation13] sm:$0xff] %vm117_vm1, %v209_v46 }
 0x28c   :  { %v210_v48 = vadd.f32 %v236_v42, %v201_v47 }
 0x28e   :  { %212 = vst.msk [vmem:[#allocation13 + $0x8] sm:$0xff] %vm117_vm1, %v210_v48 }
 0x28f   :  { %406 = shalt.err (!%p403_p10)
}
 0x290   :  { %s407_s27 = scalar_lea.hbm %s589_s6, 256 }
 0x291   :  { %p408_p11 = scmp.ne.s32.totalorder %s589_s6, %s407_s27  ;;  %p411_p12 = scmp.lt.u32.totalorder %s407_s27, %s589_s6 }
 0x293   :  { %p413_p13 = pnand %p411_p12, %p408_p11 }
 0x295   :  { %416 = shalt.err (!%p413_p13)
}
 0x296   :  { %224 = dma.vmem_to_hbm [thread:$0]  %s219_s21, 256, %s589_s6, [#allocation4], %s429_s9, %s429_s9, %s430_s10  }
 0x297   :  { %425 = dma.done.wait [#allocation4], 256  }
 0x298   :  { %426 = vsyncadd [#allocation4], 4294967040 }
 0x299   :  { %228 = vsyncpa [#allocation3], 1 }
 0x29a   :  { %229 = vsyncpa [#allocation6], 1 }
 0x29b   :  { %230 = vsyncpa [#allocation9], 1 }
 0x29c   :  { %231 = vsyncpa [#allocation12], 1 }
 0x29d   :  { %232 = vsyncpa [#allocation4], 1 }

// kernel: _lambda_.20
= control target key start
LH: loop header
LB: loop body
LE: loop exit
PB: predicated region body
PF: predicated region fallthrough
CT: control target
= control target key end

     0   :  { %8 = vsyncpa [#allocation3], 0  ;;  %s344_s0 = inlined_call_operand.hbm [shape: f32[16,32], index: 0, kind: input, shape index: {}]   ;;  %s345_s1 = inlined_call_operand.hbm [shape: f32[32,96], index: 1, kind: input, shape index: {}]   ;;  %s346_s2 = inlined_call_operand.hbm [shape: f32[1,96], index: 2, kind: input, shape index: {}]   ;;  %s347_s3 = inlined_call_operand.hbm [shape: f32[16,96], index: 3, kind: output, shape index: {}]  }
   0x1   :  { %9 = vsyncpa [#allocation6], 0 }
   0x2   :  { %10 = vsyncpa [#allocation4], 0  ;;  %s252_s12 = smov [#allocation5]   ;;  %s253_s14 = smov [#allocation2]  }
   0x3   :  { %s28_s13 = sshll.u32 %s252_s12, 4  ;;  %s16_s15 = sshll.u32 %s253_s14, 4  ;;  %s29_s13 = int_to_ptr.vmem [resolvable:$true] %s28_s13  ;;  %s280_s15 = int_to_ptr.vmem [resolvable:$true] %s16_s15 }
   0x4   :  { %s158_s18 = scalar_lea.hbm %s345_s1, 512 }
   0x5   :  { %p159_p0 = scmp.ne.s32.totalorder %s345_s1, %s158_s18  ;;  %p162_p1 = scmp.lt.u32.totalorder %s158_s18, %s345_s1 }
   0x7   :  { %p164_p2 = pnand %p162_p1, %p159_p0 }
   0x9   :  { %167 = shalt.err (!%p164_p2)
}
   0xa   :  { %s168_s23 = scalar_lea.vmem %s29_s13, 512  ;;  %p173_p4 = scmp.lt.s32.totalorder %s29_s13, %s29_s13 }
   0xb   :  { %p169_p3 = scmp.ne.s32.totalorder %s29_s13, %s168_s23  ;;  %p174_p5 = scmp.lt.s32.totalorder %s168_s23, %s168_s23 }
   0xd   :  { %p175_p6 = por %p174_p5, %p173_p4 }
   0xf   :  { %p176_p7 = pnand %p175_p6, %p169_p3 }
  0x11   :  { %179 = shalt.err (!%p176_p7)
}
  0x12   :  { %s254_s24 = smov 128   ;;  %s255_s25 = smov 8  }
  0x13   :  { %34 = dma.hbm_to_vmem [thread:$0]  %s345_s1, 512, %s29_s13, [#allocation6], %s254_s24, %s254_s24, %s255_s25  }
  0x14   :  { %s180_s30 = scalar_lea.hbm %s344_s0, 256 }
  0x15   :  { %p181_p8 = scmp.ne.s32.totalorder %s344_s0, %s180_s30  ;;  %p184_p9 = scmp.lt.u32.totalorder %s180_s30, %s344_s0 }
  0x17   :  { %p186_p10 = pnand %p184_p9, %p181_p8 }
  0x19   :  { %189 = shalt.err (!%p186_p10)
}
  0x1a   :  { %s190_s8 = scalar_lea.vmem %s280_s15, 256  ;;  %p195_p12 = scmp.lt.s32.totalorder %s280_s15, %s280_s15 }
  0x1b   :  { %p191_p11 = scmp.ne.s32.totalorder %s280_s15, %s190_s8  ;;  %p196_p13 = scmp.lt.s32.totalorder %s190_s8, %s190_s8 }
  0x1d   :  { %p197_p0 = por %p196_p13, %p195_p12 }
  0x1f   :  { %p198_p1 = pnand %p197_p0, %p191_p11 }
  0x21   :  { %201 = shalt.err (!%p198_p1)
}
  0x22   :  { %22 = dma.hbm_to_vmem [thread:$0]  %s344_s0, 256, %s280_s15, [#allocation3], %s254_s24, %s254_s24, %s255_s25  }
  0x23   :  { %s256_s10 = smov [#allocation7]   ;;  %s202_s14 = scalar_lea.hbm %s346_s2, 16 }
  0x24   :  { %s41_s11 = sshll.u32 %s256_s10, 4  ;;  %p203_p2 = scmp.ne.s32.totalorder %s346_s2, %s202_s14  ;;  %s42_s11 = int_to_ptr.vmem [resolvable:$true] %s41_s11 }
  0x25   :  { %p206_p3 = scmp.lt.u32.totalorder %s202_s14, %s346_s2 }
  0x27   :  { %p208_p4 = pnand %p206_p3, %p203_p2 }
  0x29   :  { %211 = shalt.err (!%p208_p4)
}
  0x2a   :  { %s212_s20 = scalar_lea.vmem %s42_s11, 16  ;;  %s216_s0 = scalar_lea.vmem %s42_s11, 32 }
  0x2b   :  { %p213_p5 = scmp.ne.s32.totalorder %s42_s11, %s212_s20  ;;  %p217_p6 = scmp.lt.s32.totalorder %s42_s11, %s42_s11 }
  0x2c   :  { %p218_p7 = scmp.lt.s32.totalorder %s216_s0, %s212_s20 }
  0x2e   :  { %p219_p8 = por %p218_p7, %p217_p6 }
  0x30   :  { %p220_p9 = pnand %p219_p8, %p213_p5 }
  0x32   :  { %223 = shalt.err (!%p220_p9)
}
  0x33   :  { %44 = dma.hbm_to_vmem [thread:$0]  %s346_s2, 16, %s42_s11, [#allocation6]  }
  0x34   :  { %246 = dma.done.wait [#allocation3], 256  }
  0x35   :  { %247 = vsyncadd [#allocation3], 4294967040 }
  0x36   :  { %248 = dma.done.wait [#allocation6], 528  }
  0x37   :  { %249 = vsyncadd [#allocation6], 4294966768  ;;  %v257_v0 = vmov 0.0   ;;  %vm258_vm0 = vmmov 0   ;;  %v57_v1 = vld [vmem:[#allocation5] sm:$0xff]  ;;  %v58_v2 = vld [vmem:[#allocation5 + $0x8] sm:$0xff] }
  0x38   :  { %142 = vmatprep.subr.bf16.mxu0 %v257_v0  ;;  %146 = vmatprep.mubr.msk.bf16.mxu0 %vm258_vm0, %v257_v0  ;;  %v59_v3 = vld [vmem:[#allocation5 + $0x10] sm:$0xff]  ;;  %v62_v4 = vpack.c.bf16 %v58_v2, %v57_v1  ;;  %v60_v5 = vld [vmem:[#allocation5 + $0x18] sm:$0xff]  ;;  %vm71_vm1 = vcmask 261120   ;;  %v137_v10 = vld [vmem:[#allocation7] ss:$0 sm:$0xff]  ;;  %vm116_vm2 = vcmask 785408  }
  0x39   :  { %v63_v6 = vpack.c.bf16 %v60_v5, %v59_v3  ;;  %v55_v7 = vld [vmem:[#allocation2] sm:$0xff]  ;;  %v56_v8 = vld [vmem:[#allocation2 + $0x8] sm:$0xff]  ;;  %s259_s2 = smov [#allocation8]  }
  0x3a   :  { %143 = vmatpush3.bf16.msra.mxu0 %v62_v4  ;;  %v61_v9 = vpack.c.bf16 %v56_v8, %v55_v7  ;;  %s124_s22 = sshll.u32 %s259_s2, 4  ;;  %s125_s22 = int_to_ptr.vmem [resolvable:$true] %s124_s22 }
  0x3b   :  { %144 = vmatprep.subr.bf16.mxu0 %v257_v0  ;;  %s224_s23 = scalar_lea.vmem %s125_s22, 256  ;;  %p229_p11 = scmp.lt.s32.totalorder %s125_s22, %s125_s22 }
  0x3c   :  { %p225_p10 = scmp.ne.s32.totalorder %s125_s22, %s224_s23  ;;  %p230_p12 = scmp.lt.s32.totalorder %s224_s23, %s224_s23 }
  0x3e   :  { %145 = vmatpush3.bf16.msra.mxu0 %v63_v6  ;;  %p231_p13 = por %p230_p12, %p229_p11 }
  0x40   :  { %p232_p0 = pnand %p231_p13, %p225_p10 }
  0x41   :  { %147 = vmatmul.mubr.msk.bf16.vlgmr.msra.gmra.mrb[0].mxu0 %vm71_vm1, %v61_v9 }
 0x114   :  { %v109_v11 = vpop.f32.mrb[0].mxu0 }
 0x115   :  { %v110_v12 = vadd.f32 %v137_v10, %v109_v11  ;;  %v148_v13 = vpop.f32.mrb[1].mxu0 }
 0x116   :  { %v112_v14 = vpop.f32.mrb[2].mxu0 }
 0x117   :  { %v113_v15 = vadd.f32 %v137_v10, %v112_v14  ;;  %v149_v16 = vpop.f32.mrb[3].mxu0  ;;  %117 = vst.msk [vmem:[#allocation8] sm:$0xff] %vm116_vm2, %v110_v12 }
 0x119   :  { %118 = vst.msk [vmem:[#allocation8 + $0x8] sm:$0xff] %vm116_vm2, %v113_v15 }
 0x11a   :  { %235 = shalt.err (!%p232_p0)
}
 0x11b   :  { %s236_s28 = scalar_lea.hbm %s347_s3, 256 }
 0x11c   :  { %p237_p1 = scmp.ne.s32.totalorder %s347_s3, %s236_s28  ;;  %p240_p2 = scmp.lt.u32.totalorder %s236_s28, %s347_s3 }
 0x11e   :  { %p242_p3 = pnand %p240_p2, %p237_p1 }
 0x120   :  { %245 = shalt.err (!%p242_p3)
}
 0x121   :  { %130 = dma.vmem_to_hbm [thread:$0]  %s125_s22, 256, %s347_s3, [#allocation4], %s254_s24, %s254_s24, %s255_s25  }
 0x122   :  { %250 = dma.done.wait [#allocation4], 256  }
 0x123   :  { %251 = vsyncadd [#allocation4], 4294967040 }
 0x124   :  { %134 = vsyncpa [#allocation3], 1 }
 0x125   :  { %135 = vsyncpa [#allocation6], 1 }
 0x126   :  { %136 = vsyncpa [#allocation4], 1 }

// kernel: _lambda_.33
= control target key start
LH: loop header
LB: loop body
LE: loop exit
PB: predicated region body
PF: predicated region fallthrough
CT: control target
= control target key end

     0   :  { %8 = vsyncpa [#allocation3], 0  ;;  %s344_s0 = inlined_call_operand.hbm [shape: f32[16,32], index: 0, kind: input, shape index: {}]   ;;  %s345_s1 = inlined_call_operand.hbm [shape: f32[32,64], index: 1, kind: input, shape index: {}]   ;;  %s346_s2 = inlined_call_operand.hbm [shape: f32[1,64], index: 2, kind: input, shape index: {}]   ;;  %s347_s3 = inlined_call_operand.hbm [shape: f32[16,64], index: 3, kind: output, shape index: {}]  }
   0x1   :  { %9 = vsyncpa [#allocation6], 0 }
   0x2   :  { %10 = vsyncpa [#allocation4], 0  ;;  %s252_s12 = smov [#allocation5]   ;;  %s253_s14 = smov [#allocation2]  }
   0x3   :  { %s28_s13 = sshll.u32 %s252_s12, 4  ;;  %s16_s15 = sshll.u32 %s253_s14, 4  ;;  %s29_s13 = int_to_ptr.vmem [resolvable:$true] %s28_s13  ;;  %s280_s15 = int_to_ptr.vmem [resolvable:$true] %s16_s15 }
   0x4   :  { %s158_s18 = scalar_lea.hbm %s345_s1, 512 }
   0x5   :  { %p159_p0 = scmp.ne.s32.totalorder %s345_s1, %s158_s18  ;;  %p162_p1 = scmp.lt.u32.totalorder %s158_s18, %s345_s1 }
   0x7   :  { %p164_p2 = pnand %p162_p1, %p159_p0 }
   0x9   :  { %167 = shalt.err (!%p164_p2)
}
   0xa   :  { %s168_s23 = scalar_lea.vmem %s29_s13, 512  ;;  %p173_p4 = scmp.lt.s32.totalorder %s29_s13, %s29_s13 }
   0xb   :  { %p169_p3 = scmp.ne.s32.totalorder %s29_s13, %s168_s23  ;;  %p174_p5 = scmp.lt.s32.totalorder %s168_s23, %s168_s23 }
   0xd   :  { %p175_p6 = por %p174_p5, %p173_p4 }
   0xf   :  { %p176_p7 = pnand %p175_p6, %p169_p3 }
  0x11   :  { %179 = shalt.err (!%p176_p7)
}
  0x12   :  { %s254_s24 = smov 128   ;;  %s255_s25 = smov 8  }
  0x13   :  { %34 = dma.hbm_to_vmem [thread:$0]  %s345_s1, 512, %s29_s13, [#allocation6], %s254_s24, %s254_s24, %s255_s25  }
  0x14   :  { %s180_s30 = scalar_lea.hbm %s344_s0, 256 }
  0x15   :  { %p181_p8 = scmp.ne.s32.totalorder %s344_s0, %s180_s30  ;;  %p184_p9 = scmp.lt.u32.totalorder %s180_s30, %s344_s0 }
  0x17   :  { %p186_p10 = pnand %p184_p9, %p181_p8 }
  0x19   :  { %189 = shalt.err (!%p186_p10)
}
  0x1a   :  { %s190_s8 = scalar_lea.vmem %s280_s15, 256  ;;  %p195_p12 = scmp.lt.s32.totalorder %s280_s15, %s280_s15 }
  0x1b   :  { %p191_p11 = scmp.ne.s32.totalorder %s280_s15, %s190_s8  ;;  %p196_p13 = scmp.lt.s32.totalorder %s190_s8, %s190_s8 }
  0x1d   :  { %p197_p0 = por %p196_p13, %p195_p12 }
  0x1f   :  { %p198_p1 = pnand %p197_p0, %p191_p11 }
  0x21   :  { %201 = shalt.err (!%p198_p1)
}
  0x22   :  { %22 = dma.hbm_to_vmem [thread:$0]  %s344_s0, 256, %s280_s15, [#allocation3], %s254_s24, %s254_s24, %s255_s25  }
  0x23   :  { %s256_s10 = smov [#allocation7]   ;;  %s202_s14 = scalar_lea.hbm %s346_s2, 16 }
  0x24   :  { %s41_s11 = sshll.u32 %s256_s10, 4  ;;  %p203_p2 = scmp.ne.s32.totalorder %s346_s2, %s202_s14  ;;  %s42_s11 = int_to_ptr.vmem [resolvable:$true] %s41_s11 }
  0x25   :  { %p206_p3 = scmp.lt.u32.totalorder %s202_s14, %s346_s2 }
  0x27   :  { %p208_p4 = pnand %p206_p3, %p203_p2 }
  0x29   :  { %211 = shalt.err (!%p208_p4)
}
  0x2a   :  { %s212_s20 = scalar_lea.vmem %s42_s11, 16  ;;  %s216_s0 = scalar_lea.vmem %s42_s11, 32 }
  0x2b   :  { %p213_p5 = scmp.ne.s32.totalorder %s42_s11, %s212_s20  ;;  %p217_p6 = scmp.lt.s32.totalorder %s42_s11, %s42_s11 }
  0x2c   :  { %p218_p7 = scmp.lt.s32.totalorder %s216_s0, %s212_s20 }
  0x2e   :  { %p219_p8 = por %p218_p7, %p217_p6 }
  0x30   :  { %p220_p9 = pnand %p219_p8, %p213_p5 }
  0x32   :  { %223 = shalt.err (!%p220_p9)
}
  0x33   :  { %44 = dma.hbm_to_vmem [thread:$0]  %s346_s2, 16, %s42_s11, [#allocation6]  }
  0x34   :  { %246 = dma.done.wait [#allocation3], 256  }
  0x35   :  { %247 = vsyncadd [#allocation3], 4294967040 }
  0x36   :  { %248 = dma.done.wait [#allocation6], 528  }
  0x37   :  { %249 = vsyncadd [#allocation6], 4294966768  ;;  %v257_v0 = vmov 0.0   ;;  %vm258_vm0 = vmmov 0   ;;  %v57_v1 = vld [vmem:[#allocation5] sm:$0xff]  ;;  %v58_v2 = vld [vmem:[#allocation5 + $0x8] sm:$0xff] }
  0x38   :  { %142 = vmatprep.subr.bf16.mxu0 %v257_v0  ;;  %146 = vmatprep.mubr.msk.bf16.mxu0 %vm258_vm0, %v257_v0  ;;  %v59_v3 = vld [vmem:[#allocation5 + $0x10] sm:$0xff]  ;;  %v62_v4 = vpack.c.bf16 %v58_v2, %v57_v1  ;;  %v60_v5 = vld [vmem:[#allocation5 + $0x18] sm:$0xff]  ;;  %vm71_vm1 = vcmask 261120   ;;  %v137_v10 = vld [vmem:[#allocation7] ss:$0 sm:$0xff]  ;;  %vm116_vm2 = vcmask 523264  }
  0x39   :  { %v63_v6 = vpack.c.bf16 %v60_v5, %v59_v3  ;;  %v55_v7 = vld [vmem:[#allocation2] sm:$0xff]  ;;  %v56_v8 = vld [vmem:[#allocation2 + $0x8] sm:$0xff]  ;;  %s259_s2 = smov [#allocation8]  }
  0x3a   :  { %143 = vmatpush3.bf16.msra.mxu0 %v62_v4  ;;  %v61_v9 = vpack.c.bf16 %v56_v8, %v55_v7  ;;  %s124_s22 = sshll.u32 %s259_s2, 4  ;;  %s125_s22 = int_to_ptr.vmem [resolvable:$true] %s124_s22 }
  0x3b   :  { %144 = vmatprep.subr.bf16.mxu0 %v257_v0  ;;  %s224_s23 = scalar_lea.vmem %s125_s22, 256  ;;  %p229_p11 = scmp.lt.s32.totalorder %s125_s22, %s125_s22 }
  0x3c   :  { %p225_p10 = scmp.ne.s32.totalorder %s125_s22, %s224_s23  ;;  %p230_p12 = scmp.lt.s32.totalorder %s224_s23, %s224_s23 }
  0x3e   :  { %145 = vmatpush3.bf16.msra.mxu0 %v63_v6  ;;  %p231_p13 = por %p230_p12, %p229_p11 }
  0x40   :  { %p232_p0 = pnand %p231_p13, %p225_p10 }
  0x41   :  { %147 = vmatmul.mubr.msk.bf16.vlgmr.msra.gmra.mrb[0].mxu0 %vm71_vm1, %v61_v9 }
 0x114   :  { %v109_v11 = vpop.f32.mrb[0].mxu0 }
 0x115   :  { %v110_v12 = vadd.f32 %v137_v10, %v109_v11  ;;  %v148_v13 = vpop.f32.mrb[1].mxu0 }
 0x116   :  { %v112_v14 = vpop.f32.mrb[2].mxu0 }
 0x117   :  { %v113_v15 = vadd.f32 %v137_v10, %v112_v14  ;;  %v149_v16 = vpop.f32.mrb[3].mxu0  ;;  %117 = vst.msk [vmem:[#allocation8] sm:$0xff] %vm116_vm2, %v110_v12 }
 0x119   :  { %118 = vst.msk [vmem:[#allocation8 + $0x8] sm:$0xff] %vm116_vm2, %v113_v15 }
 0x11a   :  { %235 = shalt.err (!%p232_p0)
}
 0x11b   :  { %s236_s28 = scalar_lea.hbm %s347_s3, 256 }
 0x11c   :  { %p237_p1 = scmp.ne.s32.totalorder %s347_s3, %s236_s28  ;;  %p240_p2 = scmp.lt.u32.totalorder %s236_s28, %s347_s3 }
 0x11e   :  { %p242_p3 = pnand %p240_p2, %p237_p1 }
 0x120   :  { %245 = shalt.err (!%p242_p3)
}
 0x121   :  { %130 = dma.vmem_to_hbm [thread:$0]  %s125_s22, 256, %s347_s3, [#allocation4], %s254_s24, %s254_s24, %s255_s25  }
 0x122   :  { %250 = dma.done.wait [#allocation4], 256  }
 0x123   :  { %251 = vsyncadd [#allocation4], 4294967040 }
 0x124   :  { %134 = vsyncpa [#allocation3], 1 }
 0x125   :  { %135 = vsyncpa [#allocation6], 1 }
 0x126   :  { %136 = vsyncpa [#allocation4], 1 }

// kernel: _lambda_.21
= control target key start
LH: loop header
LB: loop body
LE: loop exit
PB: predicated region body
PF: predicated region fallthrough
CT: control target
= control target key end

     0   :  { %7 = vsyncpa [#allocation6], 0  ;;  %s1767_s0 = inlined_call_operand.hbm [shape: f32[2,8,96], index: 0, kind: input, shape index: {}, may-alias: {0,1}]   ;;  %s1768_s1 = inlined_call_operand.hbm [shape: f32[2,8,96], index: 1, kind: input, shape index: {}, may-alias: {0,1}]   ;;  %s1769_s2 = inlined_call_operand.hbm [shape: f32[2,8,32], index: 2, kind: output, shape index: {}]  }
   0x1   :  { %9 = vsyncpa [#allocation6 + $0x1], 0 }
   0x2   :  { %10 = vsyncpa [#allocation9], 0 }
   0x3   :  { %12 = vsyncpa [#allocation9 + $0x1], 0 }
   0x4   :  { %13 = vsyncpa [#allocation7], 0 }
   0x5   :  { %15 = vsyncpa [#allocation7 + $0x1], 0  ;;  %s1397_s9 = smov 0   ;;  %s1399_s10 = smov 0  }
   0x6   :  { %s1401_s11 = smov 0   ;;  %s1403_s12 = smov 0  }
   0x7   :  { %s1405_s13 = smov 0   ;;  %s1407_s14 = smov 0  }
   0x8 LB: > { %s1014_s15 = sadd.s32 4294967295, %s1359_s14   ;;  %s1015_s16 = sadd.s32 4294967294, %s1359_s14   ;;  %s1359_s14 = sphi %s1407_s14, %s21_s14   ;;  %s1355_s13 = sphi %s1405_s13, %s1789_s13   ;;  %s1351_s12 = sphi %s1403_s12, %s1788_s12   ;;  %s1347_s11 = sphi %s1401_s11, %s1787_s11   ;;  %s1343_s10 = sphi %s1399_s10, %s1786_s10   ;;  %s1339_s9 = sphi %s1397_s9, %s1785_s9  }
   0x9   : > { %s40_s17 = sadd.s32 1, %s1355_s13  ;;  %s49_s18 = sadd.s32 1, %s1347_s11 }
   0xa   : > { %p42_p0 = scmp.ge.s32.totalorder %s40_s17, 2  ;;  %p56_p1 = scmp.ne.s32.totalorder %s1347_s11, %s1343_s10 }
   0xb   : > { %p57_p2 = scmp.eq.s32.totalorder %s1359_s14, 0  ;;  %p62_p3 = scmp.ne.s32.totalorder %s1343_s10, %s1339_s9 }
   0xc   : > { %s1791_s17 = smov (%p42_p0, %s40_s17), 0  ;;  %p63_p5 = scmp.eq.s32.totalorder %s1014_s15, 0 }
   0xd   : > { %p1438_p4 = por %p57_p2, %p56_p1  ;;  %s44_s20 = ssub.s32 %s1355_s13, %s1791_s17 }
   0xe   : > { %p116_p6 = scmp.eq.s32.totalorder %s1014_s15, 1  ;;  %p47_p7 = scmp.eq.s32.totalorder %s44_s20, 0 }
   0xf   : > { %p1444_p8 = por %p63_p5, %p62_p3  ;;  %p122_p10 = scmp.eq.s32.totalorder %s1015_s16, 1 }
  0x10   : > { %p1448_p9 = por %p116_p6, %p56_p1  ;;  %p1119_p13 = scmp.lt.s32.totalorder %s1359_s14, 2 }
  0x11   : > { %s1773_s21 = scalar_select %p1444_p8, 1, 0 }
  0x12   : > { %s1774_s22 = scalar_select %p1448_p9, 1, 0 }
  0x13   : > { %s1453_s23 = scalar_select %p47_p7, %s1347_s11, %s49_s18  }
  0x14   : > { %p1455_p11 = por %p122_p10, %p62_p3  ;;  %s1462_s25 = sand.u32 1, %s1347_s11  }
  0x15   : > { %s1018_s26 = sshll.u32 %s1462_s25, 3  ;;  %s1019_s27 = sshll.u32 %s1355_s13, 7 }
  0x16   : > { %s1775_s24 = scalar_select %p1455_p11, 1, 0 }
  0x17   : > { %s1471_s30 = scalar_lea.hbm %s1767_s0, %s1019_s27  ;;  %s146_s3 = scalar_lea.vmem [#allocation5], %s1018_s26 }
  0x18   : > { %s154_s4 = sshll.u32 %s146_s3, 4  ;;  %p1479_p0 = pnand %p1119_p13, %p1438_p4  ;;  %s1475_s4 = int_to_ptr.vmem [resolvable:$true] %s154_s4 }
  0x19   : > { %s143_s6 = scalar_lea.sflag [#allocation6], %s1462_s25  ;;  %s1213_s7 = scalar_lea.hbm %s1471_s30, 128 }
  0x1a   : > { %p1214_p3 = scmp.ne.s32.totalorder %s1471_s30, %s1213_s7  ;;  %p1215_p5 = pneg %p1479_p0 }
  0x1b   : > { %s1218_s16 = scalar_lea.hbm %s1767_s0, 256  ;;  %p1219_p4 = scmp.lt.u32.totalorder %s1471_s30, %s1767_s0 }
  0x1c   : > { %p1216_p6 = pnand %p1215_p5, %p1214_p3  ;;  %p1220_p10 = scmp.lt.u32.totalorder %s1218_s16, %s1213_s7 }
  0x1d   : > { %p1222_p12 = scmp.lt.u32.totalorder %s1213_s7, %s1471_s30 }
  0x1e   : > { %p1217_p7 = pneg %p1216_p6  ;;  %p1221_p13 = por %p1220_p10, %p1219_p4 }
  0x20   : > { %p1223_p1 = por %p1222_p12, %p1221_p13 }
  0x22   : > { %p1224_p2 = pnand %p1223_p1, %p1217_p7 }
  0x24   : > { %1227 = shalt.err (!%p1224_p2)
}
  0x25   : > { %s1228_s20 = scalar_lea.vmem %s1475_s4, 128  ;;  %s1361_s28 = smov [#allocation5]  }
  0x26   : > { %p1229_p3 = scmp.ne.s32.totalorder %s1475_s4, %s1228_s20  ;;  %s1233_s29 = sshll.u32 %s1361_s28, 4  ;;  %s1234_s29 = int_to_ptr.vmem [resolvable:$false] %s1233_s29 }
  0x27   : > { %s1235_s3 = scalar_lea.vmem %s1234_s29, 256  ;;  %p1236_p9 = scmp.lt.s32.totalorder %s1475_s4, %s1234_s29 }
  0x28   : > { %p1231_p6 = pnand %p1229_p3, %p1215_p5  ;;  %p1237_p4 = scmp.lt.s32.totalorder %s1235_s3, %s1228_s20 }
  0x2a   : > { %p1232_p11 = pneg %p1231_p6  ;;  %p1238_p10 = por %p1237_p4, %p1236_p9 }
  0x2c   : > { %p1239_p12 = pnand %p1238_p10, %p1232_p11 }
  0x2e   : > { %1242 = shalt.err (!%p1239_p12)
}
  0x2f   : > { %1111 = dma.hbm_to_vmem [thread:$0]  (!%p1479_p0), %s1471_s30, 128, %s1475_s4, %s143_s6  }
  0x30   : > { %p1777_p1 = scmp.lt.s32.totalorder %s1359_s14, 3  ;;  %p1778_p2 = scmp.ge.s32.totalorder %s1359_s14, 1 }
  0x31   : > { %s1524_s16 = scalar_lea.hbm %s1768_s1, %s1019_s27  ;;  %s165_s18 = scalar_lea.vmem [#allocation8], %s1018_s26 }
  0x32   : > { %p1515_p7 = pnand %p1778_p2, %p1777_p1  ;;  %s173_s19 = sshll.u32 %s165_s18, 4  ;;  %s174_s19 = int_to_ptr.vmem [resolvable:$true] %s173_s19 }
  0x33   : > { %s162_s30 = scalar_lea.sflag [#allocation9], %s1462_s25  ;;  %s1243_s4 = scalar_lea.hbm %s1524_s16, 128 }
  0x34   : > { %s1779_s7 = scalar_select %p1515_p7, 1, 0 }
  0x35   : > { %p1244_p9 = scmp.ne.s32.totalorder %s1524_s16, %s1243_s4  ;;  %s1248_s27 = scalar_lea.hbm %s1768_s1, 256 }
  0x36   : > { %p1249_p3 = scmp.lt.u32.totalorder %s1524_s16, %s1768_s1  ;;  %p1250_p6 = scmp.lt.u32.totalorder %s1248_s27, %s1243_s4 }
  0x37   : > { %p1246_p11 = pnand %p1244_p9, %p1215_p5  ;;  %p1252_p10 = scmp.lt.u32.totalorder %s1243_s4, %s1524_s16 }
  0x38   : > { %p1251_p4 = por %p1250_p6, %p1249_p3 }
  0x39   : > { %p1247_p13 = pneg %p1246_p11 }
  0x3a   : > { %p1253_p12 = por %p1252_p10, %p1251_p4 }
  0x3c   : > { %p1254_p1 = pnand %p1253_p12, %p1247_p13 }
  0x3e   : > { %1257 = shalt.err (!%p1254_p1)
}
  0x3f   : > { %s1258_s25 = scalar_lea.vmem %s174_s19, 128  ;;  %s1362_s26 = smov [#allocation8]  }
  0x40   : > { %p1259_p2 = scmp.ne.s32.totalorder %s174_s19, %s1258_s25  ;;  %s1263_s3 = sshll.u32 %s1362_s26, 4  ;;  %s1264_s3 = int_to_ptr.vmem [resolvable:$false] %s1263_s3 }
  0x41   : > { %s1265_s8 = scalar_lea.vmem %s1264_s3, 256  ;;  %p1266_p8 = scmp.lt.s32.totalorder %s174_s19, %s1264_s3 }
  0x42   : > { %p1261_p9 = pnand %p1259_p2, %p1215_p5  ;;  %p1267_p7 = scmp.lt.s32.totalorder %s1265_s8, %s1258_s25 }
  0x44   : > { %p1262_p11 = pneg %p1261_p9  ;;  %p1268_p3 = por %p1267_p7, %p1266_p8 }
  0x46   : > { %p1269_p6 = pnand %p1268_p3, %p1262_p11 }
  0x48   : > { %1272 = shalt.err (!%p1269_p6)
}
  0x49   : > { %1114 = dma.hbm_to_vmem [thread:$0]  (!%p1479_p0), %s1524_s16, 128, %s174_s19, %s162_s30  }
  0x4a   : > { %p1780_p13 = scmp.ne.s32.totalorder %s1779_s7, 0 }
  0x4b   : > { %s1551_s15 = sand.u32 (!%p1780_p13), 1, %s1343_s10   ;;  %p1781_p8 = scmp.ne.s32.totalorder (!%p1780_p13), %s1773_s21, 0 }
  0x4c   : > { %182 = sbr.rel (%p1780_p13) target bundleno = 1664 (0x680), region = 28  ;;  %s1554_s18 = sshll.u32 (!%p1780_p13), %s1551_s15, 3 }
  0x4d   : > { %s185_s4 = scalar_lea.sflag (!%p1780_p13), [#allocation6], %s1551_s15  ;;  %s188_s6 = scalar_lea.vmem (!%p1780_p13), [#allocation5], %s1554_s18 }
  0x53   : > { %1326 = dma.done.wait (%p1781_p8), %s185_s4, 128  }
  0x54   : > { %1328 = vsyncadd (%p1781_p8), %s185_s4, 4294967168  ;;  %s194_s5 = scalar_lea.sflag [#allocation9], %s1551_s15  ;;  %s197_s7 = scalar_lea.vmem [#allocation8], %s1554_s18 }
  0x55   : > { %1330 = dma.done.wait (%p1781_p8), %s194_s5, 128  }
  0x56   : > { %1332 = vsyncadd (%p1781_p8), %s194_s5, 4294967168  ;;  %vm237_vm0 = vcmask 64512   ;;  %v1363_v0 = vmov 0.0   ;;  %vm1364_vm1 = vmmov 0   ;;  %v260_v1 = vld [vmem:[%s197_s7] sm:$0xff]  ;;  %s1365_s21 = smov 96   ;;  %v249_v9 = vlaneseq }
  0x57   : > { %1054 = vmatprep.subr.bf16.mxu0 %v1363_v0  ;;  %238 = vst.msk [vmem:[#allocation4] sm:$0xff] %vm237_vm0, %v1363_v0  ;;  %239 = vst.msk [vmem:[#allocation4 + $0x8] sm:$0xff] %vm237_vm0, %v1363_v0  ;;  %1056 = vmatprep.mubr.msk.bf16.mxu0 %vm1364_vm1, %v1363_v0  ;;  %v1582_v2 = vpack.c.bf16 %v260_v1, %v260_v1  ;;  %v258_v3 = vld [vmem:[%s188_s6] sm:$0xff]  ;;  %vm228_vm2 = vcmask 7168   ;;  %v1366_v8 = vmov -inf   ;;  %v1367_v18 = vmov 0  }
  0x58   : > { %240 = vst.msk [vmem:[#allocation4 + $0x10] sm:$0xff] %vm237_vm0, %v1363_v0  ;;  %241 = vst.msk [vmem:[#allocation4 + $0x18] sm:$0xff] %vm237_vm0, %v1363_v0  ;;  %1060 = vmatprep.subr.bf16.mxu1 %v1363_v0  ;;  %1062 = vmatprep.mubr.msk.bf16.mxu1 %vm1364_vm1, %v1363_v0  ;;  %v259_v6 = vmul.f32 0.35355338, %v258_v3  ;;  %v1602_v10 = vshrl.u32 %v249_v9, 7  ;;  %v1604_v11 = vand.u32 127, %v249_v9 }
  0x59   : > { %264 = vrot.lane.b32.xlu0 %v1582_v2, %s1365_s21  ;;  %229 = vst.msk [vmem:[#allocation2] sm:$0xff] %vm228_vm2, %v1366_v8  ;;  %230 = vst.msk [vmem:[#allocation2 + $0x8] sm:$0xff] %vm228_vm2, %v1366_v8  ;;  %1187 = vset.pattern.permute.xlu1 %v1367_v18  ;;  %s1368_s16 = smov 64   ;;  %s1369_s19 = smov 88   ;;  %vm351_vm4 = vcmask 1043456   ;;  %vm886_vm5 = vcmask 130048  }
  0x5a   : > { %v261_v7 = vpack.c.bf16 %v259_v6, %v259_v6  ;;  %231 = vst.msk [vmem:[#allocation2 + $0x10] sm:$0xff] %vm228_vm2, %v1366_v8  ;;  %232 = vst.msk [vmem:[#allocation2 + $0x18] sm:$0xff] %vm228_vm2, %v1366_v8  ;;  %vm257_vm3 = vcmp.gt.s32.totalorder %v1604_v11, %v1602_v10  ;;  %1188 = vset.pattern.permute.xlu0 %v1367_v18  ;;  %s1370_s30 = smov 120   ;;  %s1371_s20 = smov 80   ;;  %vm888_vm6 = vcmask 195584   ;;  %vm890_vm7 = vcmask 261120  }
  0x5b   : > { %233 = vst.msk [vmem:[#allocation3] sm:$0xff] %vm228_vm2, %v1363_v0  ;;  %234 = vst.msk [vmem:[#allocation3 + $0x8] sm:$0xff] %vm228_vm2, %v1363_v0  ;;  %s1372_s27 = smov 112   ;;  %s1373_s28 = smov 72  }
  0x5c   : > { %235 = vst.msk [vmem:[#allocation3 + $0x10] sm:$0xff] %vm228_vm2, %v1363_v0  ;;  %236 = vst.msk [vmem:[#allocation3 + $0x18] sm:$0xff] %vm228_vm2, %v1363_v0  ;;  %s1374_s29 = smov 104   ;;  %s1375_s25 = smov 56  }
  0x5d   : > { %s1376_s26 = smov 40   ;;  %s1377_s3 = smov 48  }
  0x5e   : > { %s1378_s8 = smov 8   ;;  %s1379_s4 = smov 16  }
  0x5f   : > { %s1380_s6 = smov 24   ;;  %s1035_s5 = sshll.u32 %s1351_s12, 7 }
  0x60   : > { %v1612_v19 = vld [vmem:[#allocation2] sm:$0xff]  ;;  %v1661_v61 = vld [vmem:[#allocation2 + $0x8] sm:$0xff]  ;;  %s222_s7 = scalar_lea.vmem [#allocation10], %s1554_s18  ;;  %s893_s12 = scalar_lea.sflag [#allocation7], %s1551_s15 }
  0x61   : > { %v1671_v3 = vld [vmem:[#allocation2 + $0x10] sm:$0xff]  ;;  %s907_s21 = sshll.u32 %s222_s7, 4  ;;  %p1782_p5 = scmp.ne.s32.totalorder %s1774_s22, 0  ;;  %s1720_s21 = int_to_ptr.vmem [resolvable:$true] %s907_s21 }
  0x62   : > { %s1273_s18 = scalar_lea.vmem %s1720_s21, 128 }
  0x63   : > { %p1274_p0 = scmp.ne.s32.totalorder %s1720_s21, %s1273_s18 }
  0x65   : > { %p1275_p7 = pnand %p1274_p0, %p1782_p5 }
  0x67   : > { %p1276_p4 = pneg %p1275_p7 }
  0xcb   : > { %v265_v4 = vpop.permute.xlu0 %264 }
  0xcc   : > { %v271_v5 = vsel %vm237_vm0, %v265_v4, 0 }
  0xcd   : > { %1055 = vmatpush3.bf16.xpose.msra.mxu0 %v271_v5 }
  0xce   : > { %1072 = vmatprep.subr.bf16.mxu0 %v1363_v0 }
  0xd4   : > { %1057 = vmatmul.mubr.msk.bf16.vlgmr.msra.gmra.mrb[0].mxu0 %vm237_vm0, %v261_v7 }
  0xd5   : > { %1074 = vmatprep.mubr.msk.bf16.mxu0 %vm1364_vm1, %v1363_v0 }
 0x1a7   : > { %v307_v12 = vpop.f32.mrb[0].mxu0 }
 0x1a8   : > { %v313_v13 = vsel %vm257_vm3, -inf, %v307_v12  ;;  %v1058_v14 = vpop.f32.mrb[1].mxu0 }
 0x1a9   : > { %v310_v15 = vpop.f32.mrb[2].mxu0  ;;  %v315_v16 = vsel %vm237_vm0, %v313_v13, -inf }
 0x1aa   : > { %316 = vmax.xlane.f32.xlu0 %v315_v16  ;;  %v1059_v17 = vpop.f32.mrb[3].mxu0 }
 0x237   : > { %v317_v20 = vpop.xlane.xlu0 %316 }
 0x238   : > { %v1615_v21 = vmax.f32 %v1612_v19, %v317_v20 }
 0x23a   : > { %v319_v22 = vsub.f32 %v1612_v19, %v1615_v21  ;;  %397 = vst.msk [vmem:[#allocation2] sm:$0xff] %vm228_vm2, %v1615_v21  ;;  %324 = vperm.xlu1 %1187, %v1615_v21  }
 0x23e   : > { %346 = vrot.lane.b32.xlu1 %v1582_v2, %s1368_s16 }
 0x242   : > { %407 = vrot.lane.b32.xlu1 %v1582_v2, %s1369_s19 }
 0x246   : > { %404 = vrot.lane.b32.xlu1 %v261_v7, %s1370_s30  ;;  %s1718_s30 = scalar_lea.hbm %s1769_s2, %s1035_s5 }
 0x24a   : > { %550 = vrot.lane.b32.xlu1 %v1582_v2, %s1371_s20  ;;  %s1381_s20 = smov [#allocation10]  }
 0x24e   : > { %547 = vrot.lane.b32.xlu1 %v261_v7, %s1372_s27  ;;  %s1277_s27 = sshll.u32 %s1381_s20, 4  ;;  %s1278_s27 = int_to_ptr.vmem [resolvable:$false] %s1277_s27 }
 0x24f   : > { %p1280_p10 = scmp.lt.s32.totalorder %s1720_s21, %s1278_s27 }
 0x252   : > { %693 = vrot.lane.b32.xlu1 %v1582_v2, %s1373_s28  ;;  %s1279_s28 = scalar_lea.vmem %s1278_s27, 256 }
 0x253   : > { %p1281_p12 = scmp.lt.s32.totalorder %s1279_s28, %s1273_s18 }
 0x255   : > { %p1282_p1 = por %p1281_p12, %p1280_p10 }
 0x256   : > { %690 = vrot.lane.b32.xlu1 %v261_v7, %s1374_s29  ;;  %v743_v7 = vld [vmem:[#allocation2 + $0x18] sm:$0xff] }
 0x257   : > { %p1283_p2 = pnand %p1282_p1, %p1276_p4 }
 0x2b9   : > { %v325_v23 = vpop.permute.xlu1 %324 }
 0x2ba   : > { %v327_v24 = vsub.f32 %v313_v13, %v325_v23 }
 0x2bc   : > { %v328_v25 = vmul.f32 1.442695, %v327_v24 }
 0x2bd   : > { %v347_v26 = vpop.permute.xlu1 %346 }
 0x2be   : > { %1189 = vpow2.f32 %v328_v25  ;;  %v353_v27 = vsel %vm351_vm4, %v347_v26, 0 }
 0x2bf   : > { %1061 = vmatpush3.bf16.msra.mxu1 %v353_v27 }
 0x2c0   : > { %1066 = vmatprep.subr.bf16.mxu1 %v1363_v0 }
 0x2c1   : > { %v408_v28 = vpop.permute.xlu1 %407 }
 0x2c2   : > { %v413_v31 = vsel %vm237_vm0, %v408_v28, 0 }
 0x2c5   : > { %v405_v29 = vpop.permute.xlu1 %404 }
 0x2c8   : > { %v1628_v30 = vpop.eup %1189 }
 0x2c9   : > { %v345_v32 = vpack.c.bf16 %v1628_v30, %v1628_v30  ;;  %v551_v33 = vpop.permute.xlu1 %550  ;;  %v332_v11 = vsel %vm237_vm0, %v1628_v30, 0.0 }
 0x2ca   : > { %v556_v35 = vsel %vm237_vm0, %v551_v33, 0 }
 0x2cb   : > { %1063 = vmatmul.mubr.msk.bf16.vlgmr.msra.gmra.mrb[0].mxu1 %vm237_vm0, %v345_v32 }
 0x2cc   : > { %1067 = vmatpush3.bf16.xpose.msra.mxu1 %v413_v31  ;;  %1068 = vmatprep.mubr.msk.bf16.mxu1 %vm1364_vm1, %v1363_v0 }
 0x2cd   : > { %1078 = vmatprep.subr.bf16.mxu1 %v1363_v0  ;;  %v548_v34 = vpop.permute.xlu1 %547 }
 0x2d1   : > { %v694_v36 = vpop.permute.xlu1 %693 }
 0x2d2   : > { %v699_v37 = vsel %vm237_vm0, %v694_v36, 0  ;;  %v320_v36 = vmul.f32 1.442695, %v319_v22 }
 0x2d3   : > { %1069 = vmatmul.mubr.msk.bf16.vlgmr.msra.gmra.mrb[4].mxu1 %vm237_vm0, %v405_v29 }
 0x2d4   : > { %1079 = vmatpush3.bf16.xpose.msra.mxu1 %v556_v35  ;;  %1080 = vmatprep.mubr.msk.bf16.mxu1 %vm1364_vm1, %v1363_v0 }
 0x2d5   : > { %1090 = vmatprep.subr.bf16.mxu1 %v1363_v0  ;;  %v691_v38 = vpop.permute.xlu1 %690 }
 0x2db   : > { %1081 = vmatmul.mubr.msk.bf16.vlgmr.msra.gmra.mrb[8].mxu1 %vm237_vm0, %v548_v34 }
 0x2dc   : > { %1091 = vmatpush3.bf16.xpose.msra.mxu1 %v699_v37  ;;  %1092 = vmatprep.mubr.msk.bf16.mxu1 %vm1364_vm1, %v1363_v0 }
 0x2e3   : > { %1093 = vmatmul.mubr.msk.bf16.vlgmr.msra.gmra.mrb[12].mxu1 %vm237_vm0, %v691_v38 }
 0x39e   : > { %v1647_v39 = vpop.f32.mrb[0].mxu1 }
 0x39f   : > { %v1064_v40 = vpop.f32.mrb[1].mxu1 }
 0x3a0   : > { %v392_v41 = vpop.f32.mrb[2].mxu1 }
 0x3a1   : > { %v1065_v42 = vpop.f32.mrb[3].mxu1 }
 0x3a6   : > { %v449_v43 = vpop.f32.mrb[4].mxu1 }
 0x3a7   : > { %v455_v44 = vsel %vm257_vm3, -inf, %v449_v43  ;;  %v1070_v45 = vpop.f32.mrb[5].mxu1  ;;  %v330_v43 = vld [vmem:[#allocation3] sm:$0xff] }
 0x3a8   : > { %v452_v46 = vpop.f32.mrb[6].mxu1  ;;  %v458_v47 = vsel %vm237_vm0, %v455_v44, -inf }
 0x3a9   : > { %459 = vmax.xlane.f32.xlu1 %v458_v47  ;;  %v1071_v48 = vpop.f32.mrb[7].mxu1 }
 0x3ae   : > { %v592_v49 = vpop.f32.mrb[8].mxu1 }
 0x3af   : > { %v598_v50 = vsel %vm257_vm3, -inf, %v592_v49  ;;  %v1082_v51 = vpop.f32.mrb[9].mxu1  ;;  %v474_v49 = vld [vmem:[#allocation3 + $0x8] sm:$0xff] }
 0x3b0   : > { %v595_v52 = vpop.f32.mrb[10].mxu1  ;;  %v601_v53 = vsel %vm237_vm0, %v598_v50, -inf }
 0x3b1   : > { %602 = vmax.xlane.f32.xlu0 %v601_v53  ;;  %v1083_v54 = vpop.f32.mrb[11].mxu1  ;;  %v617_v53 = vld [vmem:[#allocation3 + $0x10] sm:$0xff] }
 0x3b6   : > { %v735_v55 = vpop.f32.mrb[12].mxu1 }
 0x3b7   : > { %v741_v56 = vsel %vm257_vm3, -inf, %v735_v55  ;;  %v1094_v57 = vpop.f32.mrb[13].mxu1 }
 0x3b8   : > { %v738_v58 = vpop.f32.mrb[14].mxu1  ;;  %v744_v59 = vsel %vm237_vm0, %v741_v56, -inf }
 0x3b9   : > { %745 = vmax.xlane.f32.xlu0 %v744_v59  ;;  %v1095_v60 = vpop.f32.mrb[15].mxu1  ;;  %v760_v58 = vld [vmem:[#allocation3 + $0x18] sm:$0xff]  ;;  %v338_v59 = vld [vmem:[#allocation4] sm:$0xff] }
 0x436   : > { %v460_v62 = vpop.xlane.xlu1 %459 }
 0x437   : > { %v1664_v63 = vmax.f32 %v1661_v61, %v460_v62 }
 0x439   : > { %v462_v1 = vsub.f32 %v1661_v61, %v1664_v63  ;;  %540 = vst.msk [vmem:[#allocation2 + $0x8] sm:$0xff] %vm228_vm2, %v1664_v63  ;;  %467 = vperm.xlu0 %1188, %v1664_v63  }
 0x43b   : > { %v463_v40 = vmul.f32 1.442695, %v462_v1 }
 0x43d   : > { %490 = vrot.lane.b32.xlu0 %v1582_v2, %s1375_s25 }
 0x43e   : > { %v603_v4 = vpop.xlane.xlu0 %602 }
 0x43f   : > { %v604_v5 = vmax.f32 %v1671_v3, %v603_v4 }
 0x441   : > { %v605_v6 = vsub.f32 %v1671_v3, %v604_v5  ;;  %683 = vst.msk [vmem:[#allocation2 + $0x10] sm:$0xff] %vm228_vm2, %v604_v5  ;;  %610 = vperm.xlu1 %1187, %v604_v5   ;;  %776 = vrot.lane.b32.xlu0 %v1582_v2, %s1376_s26 }
 0x443   : > { %v606_v42 = vmul.f32 1.442695, %v605_v6 }
 0x446   : > { %v746_v8 = vpop.xlane.xlu0 %745 }
 0x447   : > { %v747_v9 = vmax.f32 %v743_v7, %v746_v8 }
 0x449   : > { %v748_v10 = vsub.f32 %v743_v7, %v747_v9  ;;  %826 = vst.msk [vmem:[#allocation2 + $0x18] sm:$0xff] %vm228_vm2, %v747_v9  ;;  %753 = vperm.xlu1 %1187, %v747_v9   ;;  %v482_v9 = vld [vmem:[#allocation4 + $0x8] sm:$0xff] }
 0x44b   : > { %v749_v41 = vmul.f32 1.442695, %v748_v10 }
 0x44d   : > { %633 = vrot.lane.b32.xlu1 %v1582_v2, %s1377_s3 }
 0x471   : > { %333 = vadd.xlane.f32.xlu1 %v332_v11 }
 0x4b8   : > { %v468_v12 = vpop.permute.xlu0 %467 }
 0x4b9   : > { %v470_v13 = vsub.f32 %v455_v44, %v468_v12 }
 0x4bb   : > { %v471_v14 = vmul.f32 1.442695, %v470_v13 }
 0x4bc   : > { %v491_v15 = vpop.permute.xlu0 %490 }
 0x4bd   : > { %1191 = vpow2.f32 %v471_v14  ;;  %v496_v16 = vsel %vm351_vm4, %v491_v15, 0 }
 0x4be   : > { %1073 = vmatpush3.bf16.msra.mxu0 %v496_v16  ;;  %v625_v16 = vld [vmem:[#allocation4 + $0x10] sm:$0xff] }
 0x4bf   : > { %1084 = vmatprep.subr.bf16.mxu0 %v1363_v0 }
 0x4c0   : > { %v611_v17 = vpop.permute.xlu1 %610  ;;  %v777_v30 = vpop.permute.xlu0 %776 }
 0x4c1   : > { %v613_v18 = vsub.f32 %v598_v50, %v611_v17  ;;  %v782_v34 = vsel %vm351_vm4, %v777_v30, 0 }
 0x4c3   : > { %v614_v20 = vmul.f32 1.442695, %v613_v18 }
 0x4c5   : > { %1193 = vpow2.f32 %v614_v20 }
 0x4c7   : > { %v1192_v23 = vpop.eup %1191 }
 0x4c8   : > { %v754_v2 = vpop.permute.xlu1 %753  ;;  %v476_v24 = vsel %vm237_vm0, %v1192_v23, 0.0  ;;  %v489_v25 = vpack.c.bf16 %v1192_v23, %v1192_v23 }
 0x4c9   : > { %v756_v26 = vsub.f32 %v741_v56, %v754_v2  ;;  %477 = vadd.xlane.f32.xlu0 %v476_v24 }
 0x4ca   : > { %1075 = vmatmul.mubr.msk.bf16.vlgmr.msra.gmra.mrb[4].mxu0 %vm237_vm0, %v489_v25 }
 0x4cb   : > { %v757_v27 = vmul.f32 1.442695, %v756_v26  ;;  %1086 = vmatprep.mubr.msk.bf16.mxu0 %vm1364_vm1, %v1363_v0  ;;  %v768_v26 = vld [vmem:[#allocation4 + $0x18] sm:$0xff] }
 0x4cc   : > { %v634_v28 = vpop.permute.xlu1 %633 }
 0x4cd   : > { %1195 = vpow2.f32 %v757_v27  ;;  %v639_v29 = vsel %vm351_vm4, %v634_v28, 0 }
 0x4ce   : > { %1085 = vmatpush3.bf16.msra.mxu0 %v639_v29  ;;  %1197 = vpow2.f32 %v320_v36 }
 0x4cf   : > { %v1194_v31 = vpop.eup %1193  ;;  %1096 = vmatprep.subr.bf16.mxu0 %v1363_v0  ;;  %1199 = vpow2.f32 %v463_v40 }
 0x4d0   : > { %v619_v32 = vsel %vm237_vm0, %v1194_v31, 0.0  ;;  %v632_v33 = vpack.c.bf16 %v1194_v31, %v1194_v31  ;;  %1201 = vpow2.f32 %v749_v41 }
 0x4d1   : > { %620 = vadd.xlane.f32.xlu0 %v619_v32  ;;  %1203 = vpow2.f32 %v606_v42 }
 0x4d2   : > { %1087 = vmatmul.mubr.msk.bf16.vlgmr.msra.gmra.mrb[8].mxu0 %vm237_vm0, %v632_v33 }
 0x4d3   : > { %1097 = vmatpush3.bf16.msra.mxu0 %v782_v34  ;;  %1098 = vmatprep.mubr.msk.bf16.mxu0 %vm1364_vm1, %v1363_v0 }
 0x4d7   : > { %v1196_v35 = vpop.eup %1195 }
 0x4d8   : > { %v762_v37 = vsel %vm237_vm0, %v1196_v35, 0.0  ;;  %v775_v38 = vpack.c.bf16 %v1196_v35, %v1196_v35  ;;  %v1198_v0 = vpop.eup %1197 }
 0x4d9   : > { %763 = vadd.xlane.f32.xlu1 %v762_v37  ;;  %v1200_v19 = vpop.eup %1199  ;;  %v331_v44 = vmul.f32 %v1198_v0, %v330_v43 }
 0x4da   : > { %1099 = vmatmul.mubr.msk.bf16.vlgmr.msra.gmra.mrb[12].mxu0 %vm237_vm0, %v775_v38  ;;  %v1202_v21 = vpop.eup %1201  ;;  %v475_v50 = vmul.f32 %v1200_v19, %v474_v49 }
 0x4db   : > { %v1204_v22 = vpop.eup %1203  ;;  %v761_v60 = vmul.f32 %v1202_v21, %v760_v58 }
 0x4dc   : > { %v618_v54 = vmul.f32 %v1204_v22, %v617_v53 }
 0x4e7   : > { %341 = vperm.xlu0 %1188, %v1198_v0  }
 0x4ea   : > { %485 = vperm.xlu1 %1187, %v1200_v19  }
 0x4eb   : > { %771 = vperm.xlu0 %1188, %v1202_v21  }
 0x4ee   : > { %628 = vperm.xlu1 %1187, %v1204_v22  }
 0x4fe   : > { %v334_v45 = vpop.xlane.xlu1 %333 }
 0x4ff   : > { %v335_v46 = vadd.f32 %v334_v45, %v331_v44 }
 0x501   : > { %337 = vst.msk [vmem:[#allocation3] sm:$0xff] %vm228_vm2, %v335_v46 }
 0x508   : > { %v831_v47 = vld [vmem:[#allocation3] sm:$0xff] }
 0x509   : > { %1205 = vrcp.f32 %v831_v47 }
 0x513   : > { %v1206_v48 = vpop.eup %1205 }
 0x514   : > { %835 = vperm.xlu1 %1187, %v1206_v48  }
 0x556   : > { %v478_v51 = vpop.xlane.xlu0 %477 }
 0x557   : > { %v479_v52 = vadd.f32 %v478_v51, %v475_v50 }
 0x559   : > { %480 = vst.msk [vmem:[#allocation3 + $0x8] sm:$0xff] %vm228_vm2, %v479_v52 }
 0x55e   : > { %v621_v55 = vpop.xlane.xlu0 %620 }
 0x55f   : > { %v622_v56 = vadd.f32 %v621_v55, %v618_v54 }
 0x560   : > { %v842_v57 = vld [vmem:[#allocation3 + $0x8] sm:$0xff] }
 0x561   : > { %623 = vst.msk [vmem:[#allocation3 + $0x10] sm:$0xff] %vm228_vm2, %v622_v56  ;;  %1207 = vrcp.f32 %v842_v57 }
 0x566   : > { %v764_v61 = vpop.xlane.xlu1 %763  ;;  %v342_v62 = vpop.permute.xlu0 %341 }
 0x567   : > { %v765_v63 = vadd.f32 %v764_v61, %v761_v60  ;;  %v344_v1 = vmul.f32 %v342_v62, %v338_v59 }
 0x568   : > { %v853_v3 = vld [vmem:[#allocation3 + $0x10] sm:$0xff] }
 0x569   : > { %766 = vst.msk [vmem:[#allocation3 + $0x18] sm:$0xff] %vm228_vm2, %v765_v63  ;;  %v395_v4 = vadd.f32 %v1647_v39, %v344_v1  ;;  %1209 = vrcp.f32 %v853_v3 }
 0x56a   : > { %v486_v10 = vpop.permute.xlu1 %485  ;;  %v772_v27 = vpop.permute.xlu0 %771 }
 0x56b   : > { %v1208_v5 = vpop.eup %1207  ;;  %396 = vst.msk [vmem:[#allocation4] sm:$0xff] %vm237_vm0, %v395_v4  ;;  %v488_v11 = vmul.f32 %v486_v10, %v482_v9  ;;  %v774_v28 = vmul.f32 %v772_v27, %v768_v26 }
 0x56c   : > { %846 = vperm.xlu0 %1188, %v1208_v5  }
 0x56e   : > { %v629_v17 = vpop.permute.xlu1 %628 }
 0x56f   : > { %v631_v18 = vmul.f32 %v629_v17, %v625_v16 }
 0x570   : > { %v864_v6 = vld [vmem:[#allocation3 + $0x18] sm:$0xff] }
 0x571   : > { %1211 = vrcp.f32 %v864_v6 }
 0x572   : > { %v830_v21 = vld [vmem:[#allocation4] sm:$0xff] }
 0x573   : > { %v1210_v7 = vpop.eup %1209 }
 0x574   : > { %857 = vperm.xlu1 %1187, %v1210_v7  }
 0x57b   : > { %v1212_v8 = vpop.eup %1211 }
 0x57c   : > { %868 = vperm.xlu0 %1188, %v1212_v8  }
 0x593   : > { %v836_v37 = vpop.permute.xlu1 %835 }
 0x594   : > { %v838_v43 = vmul.f32 %v836_v37, %v830_v21 }
 0x59d   : > { %v532_v12 = vpop.f32.mrb[4].mxu0 }
 0x59e   : > { %v538_v13 = vadd.f32 %v532_v12, %v488_v11  ;;  %v1076_v14 = vpop.f32.mrb[5].mxu0 }
 0x59f   : > { %v535_v15 = vpop.f32.mrb[6].mxu0 }
 0x5a0   : > { %539 = vst.msk [vmem:[#allocation4 + $0x8] sm:$0xff] %vm237_vm0, %v538_v13  ;;  %v1077_v39 = vpop.f32.mrb[7].mxu0 }
 0x5a5   : > { %v675_v20 = vpop.f32.mrb[8].mxu0 }
 0x5a6   : > { %v681_v23 = vadd.f32 %v675_v20, %v631_v18  ;;  %v1088_v2 = vpop.f32.mrb[9].mxu0 }
 0x5a7   : > { %v678_v24 = vpop.f32.mrb[10].mxu0  ;;  %v840_v34 = vld [vmem:[#allocation4 + $0x8] sm:$0xff] }
 0x5a8   : > { %682 = vst.msk [vmem:[#allocation4 + $0x10] sm:$0xff] %vm237_vm0, %v681_v23  ;;  %v1089_v25 = vpop.f32.mrb[11].mxu0 }
 0x5ad   : > { %v818_v29 = vpop.f32.mrb[12].mxu0 }
 0x5ae   : > { %v824_v30 = vadd.f32 %v818_v29, %v774_v28  ;;  %v1100_v31 = vpop.f32.mrb[13].mxu0 }
 0x5af   : > { %v821_v32 = vpop.f32.mrb[14].mxu0  ;;  %v851_v38 = vld [vmem:[#allocation4 + $0x10] sm:$0xff] }
 0x5b0   : > { %825 = vst.msk [vmem:[#allocation4 + $0x18] sm:$0xff] %vm237_vm0, %v824_v30  ;;  %v1101_v33 = vpop.f32.mrb[15].mxu0 }
 0x5b7   : > { %v862_v42 = vld [vmem:[#allocation4 + $0x18] sm:$0xff] }
 0x5eb   : > { %v847_v35 = vpop.permute.xlu0 %846 }
 0x5ec   : > { %v849_v36 = vmul.f32 %v847_v35, %v840_v34 }
 0x5ee   : > { %873 = vrot.lane.b32.xlu1 %v849_v36, %s1378_s8 }
 0x5f3   : > { %v858_v40 = vpop.permute.xlu1 %857 }
 0x5f4   : > { %v860_v41 = vmul.f32 %v858_v40, %v851_v38 }
 0x5f6   : > { %877 = vrot.lane.b32.xlu0 %v860_v41, %s1379_s4 }
 0x5fb   : > { %v869_v0 = vpop.permute.xlu0 %868 }
 0x5fc   : > { %v871_v19 = vmul.f32 %v869_v0, %v862_v42 }
 0x5fe   : > { %881 = vrot.lane.b32.xlu1 %v871_v19, %s1380_s6 }
 0x660   : > { %v874_v22 = vpop.permute.xlu1 %873 }
 0x661   : > { %v885_v45 = vsel %vm237_vm0, %v838_v43, %v874_v22 }
 0x668   : > { %v878_v44 = vpop.permute.xlu0 %877 }
 0x669   : > { %v887_v46 = vsel %vm886_vm5, %v885_v45, %v878_v44 }
 0x670   : > { %v882_v47 = vpop.permute.xlu1 %881 }
 0x671   : > { %v889_v48 = vsel %vm888_vm6, %v887_v46, %v882_v47 }
 0x672   : > { %891 = vst.msk [vmem:[%s222_s7] sm:$0xff] %vm890_vm7, %v889_v48 }
 0x673   : > { %1286 = shalt.err (!%p1283_p2)
}
 0x674   : > { %s1287_s15 = scalar_lea.hbm %s1718_s30, 128  ;;  %s1291_s26 = scalar_lea.hbm %s1769_s2, 256 }
 0x675   : > { %p1288_p9 = scmp.ne.s32.totalorder %s1718_s30, %s1287_s15  ;;  %p1292_p6 = scmp.lt.u32.totalorder %s1718_s30, %s1769_s2 }
 0x676   : > { %p1293_p13 = scmp.lt.u32.totalorder %s1291_s26, %s1287_s15  ;;  %p1295_p0 = scmp.lt.u32.totalorder %s1287_s15, %s1718_s30 }
 0x677   : > { %p1289_p11 = pnand %p1288_p9, %p1782_p5 }
 0x678   : > { %p1294_p8 = por %p1293_p13, %p1292_p6 }
 0x679   : > { %p1290_p3 = pneg %p1289_p11 }
 0x67a   : > { %p1296_p7 = por %p1295_p0, %p1294_p8 }
 0x67c   : > { %p1297_p4 = pnand %p1296_p7, %p1290_p3 }
 0x67e   : > { %1300 = shalt.err (!%p1297_p4)
}
 0x67f   : > { %1106 = dma.vmem_to_hbm [thread:$0]  (%p1782_p5), %s1720_s21, 128, %s1718_s30, %s893_s12  }
 0x680 PF: > { %s919_s4 = sand.u32 1, %s1339_s9   ;;  %p1783_p10 = scmp.ne.s32.totalorder %s1775_s24, 0 }
 0x681   : > { %p1784_p12 = scmp.ge.s32.totalorder %s1359_s14, 2  ;;  %s920_s6 = scalar_lea.sflag [#allocation7], %s919_s4 }
 0x683   : > { %p1116_p1 = pnand %p1784_p12, %p1783_p10 }
 0x685   : > { %1334 = dma.done.wait (!%p1116_p1), %s920_s6, 128  }
 0x686   : > { %1336 = vsyncadd (!%p1116_p1), %s920_s6, 4294967168  ;;  %s21_s14 = sadd.s32 1, %s1359_s14   ;;  %s1785_s9 = smov %s1343_s10 }
 0x687   : > { %p18_p2 = scmp.ge.s32.totalorder %s21_s14, 4   ;;  %s1786_s10 = smov %s1347_s11 }
 0x688   : > { %s1787_s11 = smov %s1453_s23  ;;  %s1788_s12 = smov %s1355_s13 }
 0x689   : > { %s1789_s13 = smov %s1791_s17  ;;  %20 = sbr.rel (!%p18_p2) target bundleno = 8 (0x8), region = 113 }
 0x690   :  { %925 = vsyncpa [#allocation6], 1 }
 0x691   :  { %927 = vsyncpa [#allocation6 + $0x1], 1 }
 0x692   :  { %928 = vsyncpa [#allocation9], 1 }
 0x693   :  { %930 = vsyncpa [#allocation9 + $0x1], 1 }
 0x694   :  { %931 = vsyncpa [#allocation7], 1 }
 0x695   :  { %933 = vsyncpa [#allocation7 + $0x1], 1 }

// kernel: _lambda_.23
= control target key start
LH: loop header
LB: loop body
LE: loop exit
PB: predicated region body
PF: predicated region fallthrough
CT: control target
= control target key end

     0   :  { %8 = vsyncpa [#allocation3], 0  ;;  %s343_s0 = inlined_call_operand.hbm [shape: f32[16,32], index: 0, kind: input, shape index: {}]   ;;  %s344_s1 = inlined_call_operand.hbm [shape: f32[32,32], index: 1, kind: input, shape index: {}]   ;;  %s345_s2 = inlined_call_operand.hbm [shape: f32[1,32], index: 2, kind: input, shape index: {}]   ;;  %s346_s3 = inlined_call_operand.hbm [shape: f32[16,32], index: 3, kind: output, shape index: {}]  }
   0x1   :  { %9 = vsyncpa [#allocation6], 0 }
   0x2   :  { %10 = vsyncpa [#allocation4], 0  ;;  %s251_s12 = smov [#allocation5]   ;;  %s252_s14 = smov [#allocation2]  }
   0x3   :  { %s28_s13 = sshll.u32 %s251_s12, 4  ;;  %s16_s15 = sshll.u32 %s252_s14, 4  ;;  %s29_s13 = int_to_ptr.vmem [resolvable:$true] %s28_s13  ;;  %s279_s15 = int_to_ptr.vmem [resolvable:$true] %s16_s15 }
   0x4   :  { %s157_s18 = scalar_lea.hbm %s344_s1, 512 }
   0x5   :  { %p158_p0 = scmp.ne.s32.totalorder %s344_s1, %s157_s18  ;;  %p161_p1 = scmp.lt.u32.totalorder %s157_s18, %s344_s1 }
   0x7   :  { %p163_p2 = pnand %p161_p1, %p158_p0 }
   0x9   :  { %166 = shalt.err (!%p163_p2)
}
   0xa   :  { %s167_s23 = scalar_lea.vmem %s29_s13, 512  ;;  %p172_p4 = scmp.lt.s32.totalorder %s29_s13, %s29_s13 }
   0xb   :  { %p168_p3 = scmp.ne.s32.totalorder %s29_s13, %s167_s23  ;;  %p173_p5 = scmp.lt.s32.totalorder %s167_s23, %s167_s23 }
   0xd   :  { %p174_p6 = por %p173_p5, %p172_p4 }
   0xf   :  { %p175_p7 = pnand %p174_p6, %p168_p3 }
  0x11   :  { %178 = shalt.err (!%p175_p7)
}
  0x12   :  { %s253_s24 = smov 128   ;;  %s254_s25 = smov 8  }
  0x13   :  { %34 = dma.hbm_to_vmem [thread:$0]  %s344_s1, 512, %s29_s13, [#allocation6], %s253_s24, %s253_s24, %s254_s25  }
  0x14   :  { %s179_s30 = scalar_lea.hbm %s343_s0, 256 }
  0x15   :  { %p180_p8 = scmp.ne.s32.totalorder %s343_s0, %s179_s30  ;;  %p183_p9 = scmp.lt.u32.totalorder %s179_s30, %s343_s0 }
  0x17   :  { %p185_p10 = pnand %p183_p9, %p180_p8 }
  0x19   :  { %188 = shalt.err (!%p185_p10)
}
  0x1a   :  { %s189_s8 = scalar_lea.vmem %s279_s15, 256  ;;  %p194_p12 = scmp.lt.s32.totalorder %s279_s15, %s279_s15 }
  0x1b   :  { %p190_p11 = scmp.ne.s32.totalorder %s279_s15, %s189_s8  ;;  %p195_p13 = scmp.lt.s32.totalorder %s189_s8, %s189_s8 }
  0x1d   :  { %p196_p0 = por %p195_p13, %p194_p12 }
  0x1f   :  { %p197_p1 = pnand %p196_p0, %p190_p11 }
  0x21   :  { %200 = shalt.err (!%p197_p1)
}
  0x22   :  { %22 = dma.hbm_to_vmem [thread:$0]  %s343_s0, 256, %s279_s15, [#allocation3], %s253_s24, %s253_s24, %s254_s25  }
  0x23   :  { %s255_s10 = smov [#allocation7]   ;;  %s201_s14 = scalar_lea.hbm %s345_s2, 16 }
  0x24   :  { %s41_s11 = sshll.u32 %s255_s10, 4  ;;  %p202_p2 = scmp.ne.s32.totalorder %s345_s2, %s201_s14  ;;  %s42_s11 = int_to_ptr.vmem [resolvable:$true] %s41_s11 }
  0x25   :  { %p205_p3 = scmp.lt.u32.totalorder %s201_s14, %s345_s2 }
  0x27   :  { %p207_p4 = pnand %p205_p3, %p202_p2 }
  0x29   :  { %210 = shalt.err (!%p207_p4)
}
  0x2a   :  { %s211_s20 = scalar_lea.vmem %s42_s11, 16  ;;  %s215_s0 = scalar_lea.vmem %s42_s11, 32 }
  0x2b   :  { %p212_p5 = scmp.ne.s32.totalorder %s42_s11, %s211_s20  ;;  %p216_p6 = scmp.lt.s32.totalorder %s42_s11, %s42_s11 }
  0x2c   :  { %p217_p7 = scmp.lt.s32.totalorder %s215_s0, %s211_s20 }
  0x2e   :  { %p218_p8 = por %p217_p7, %p216_p6 }
  0x30   :  { %p219_p9 = pnand %p218_p8, %p212_p5 }
  0x32   :  { %222 = shalt.err (!%p219_p9)
}
  0x33   :  { %44 = dma.hbm_to_vmem [thread:$0]  %s345_s2, 16, %s42_s11, [#allocation6]  }
  0x34   :  { %245 = dma.done.wait [#allocation3], 256  }
  0x35   :  { %246 = vsyncadd [#allocation3], 4294967040 }
  0x36   :  { %247 = dma.done.wait [#allocation6], 528  }
  0x37   :  { %248 = vsyncadd [#allocation6], 4294966768  ;;  %v256_v0 = vmov 0.0   ;;  %vm257_vm0 = vmmov 0   ;;  %v57_v1 = vld [vmem:[#allocation5] sm:$0xff]  ;;  %v58_v2 = vld [vmem:[#allocation5 + $0x8] sm:$0xff] }
  0x38   :  { %141 = vmatprep.subr.bf16.mxu0 %v256_v0  ;;  %145 = vmatprep.mubr.msk.bf16.mxu0 %vm257_vm0, %v256_v0  ;;  %v59_v3 = vld [vmem:[#allocation5 + $0x10] sm:$0xff]  ;;  %v62_v4 = vpack.c.bf16 %v58_v2, %v57_v1  ;;  %v60_v5 = vld [vmem:[#allocation5 + $0x18] sm:$0xff]  ;;  %vm71_vm1 = vcmask 261120   ;;  %v136_v10 = vld [vmem:[#allocation7] ss:$0 sm:$0xff]  ;;  %s258_s2 = smov [#allocation8]  }
  0x39   :  { %v63_v6 = vpack.c.bf16 %v60_v5, %v59_v3  ;;  %v55_v7 = vld [vmem:[#allocation2] sm:$0xff]  ;;  %v56_v8 = vld [vmem:[#allocation2 + $0x8] sm:$0xff]  ;;  %s123_s22 = sshll.u32 %s258_s2, 4  ;;  %s124_s22 = int_to_ptr.vmem [resolvable:$true] %s123_s22 }
  0x3a   :  { %142 = vmatpush3.bf16.msra.mxu0 %v62_v4  ;;  %v61_v9 = vpack.c.bf16 %v56_v8, %v55_v7  ;;  %s223_s23 = scalar_lea.vmem %s124_s22, 256  ;;  %p228_p11 = scmp.lt.s32.totalorder %s124_s22, %s124_s22 }
  0x3b   :  { %143 = vmatprep.subr.bf16.mxu0 %v256_v0  ;;  %p224_p10 = scmp.ne.s32.totalorder %s124_s22, %s223_s23  ;;  %p229_p12 = scmp.lt.s32.totalorder %s223_s23, %s223_s23 }
  0x3d   :  { %p230_p13 = por %p229_p12, %p228_p11 }
  0x3e   :  { %144 = vmatpush3.bf16.msra.mxu0 %v63_v6 }
  0x3f   :  { %p231_p0 = pnand %p230_p13, %p224_p10 }
  0x41   :  { %146 = vmatmul.mubr.msk.bf16.vlgmr.msra.gmra.mrb[0].mxu0 %vm71_vm1, %v61_v9 }
 0x114   :  { %v109_v11 = vpop.f32.mrb[0].mxu0 }
 0x115   :  { %v110_v12 = vadd.f32 %v136_v10, %v109_v11  ;;  %v147_v13 = vpop.f32.mrb[1].mxu0 }
 0x116   :  { %v112_v14 = vpop.f32.mrb[2].mxu0 }
 0x117   :  { %116 = vst.msk [vmem:[#allocation8] sm:$0xff] %vm71_vm1, %v110_v12  ;;  %v113_v15 = vadd.f32 %v136_v10, %v112_v14  ;;  %v148_v16 = vpop.f32.mrb[3].mxu0 }
 0x119   :  { %117 = vst.msk [vmem:[#allocation8 + $0x8] sm:$0xff] %vm71_vm1, %v113_v15 }
 0x11a   :  { %234 = shalt.err (!%p231_p0)
}
 0x11b   :  { %s235_s28 = scalar_lea.hbm %s346_s3, 256 }
 0x11c   :  { %p236_p1 = scmp.ne.s32.totalorder %s346_s3, %s235_s28  ;;  %p239_p2 = scmp.lt.u32.totalorder %s235_s28, %s346_s3 }
 0x11e   :  { %p241_p3 = pnand %p239_p2, %p236_p1 }
 0x120   :  { %244 = shalt.err (!%p241_p3)
}
 0x121   :  { %129 = dma.vmem_to_hbm [thread:$0]  %s124_s22, 256, %s346_s3, [#allocation4], %s253_s24, %s253_s24, %s254_s25  }
 0x122   :  { %249 = dma.done.wait [#allocation4], 256  }
 0x123   :  { %250 = vsyncadd [#allocation4], 4294967040 }
 0x124   :  { %133 = vsyncpa [#allocation3], 1 }
 0x125   :  { %134 = vsyncpa [#allocation6], 1 }
 0x126   :  { %135 = vsyncpa [#allocation4], 1 }

// kernel: _lambda_.27
= control target key start
LH: loop header
LB: loop body
LE: loop exit
PB: predicated region body
PF: predicated region fallthrough
CT: control target
= control target key end

     0   :  { %8 = vsyncpa [#allocation3], 0  ;;  %s358_s0 = inlined_call_operand.hbm [shape: f32[16,32], index: 0, kind: input, shape index: {}]   ;;  %s359_s1 = inlined_call_operand.hbm [shape: f32[32,64], index: 1, kind: input, shape index: {}]   ;;  %s360_s2 = inlined_call_operand.hbm [shape: f32[1,64], index: 2, kind: input, shape index: {}]   ;;  %s361_s3 = inlined_call_operand.hbm [shape: f32[16,64], index: 3, kind: output, shape index: {}]  }
   0x1   :  { %9 = vsyncpa [#allocation6], 0 }
   0x2   :  { %10 = vsyncpa [#allocation4], 0  ;;  %s266_s12 = smov [#allocation5]   ;;  %s267_s14 = smov [#allocation2]  }
   0x3   :  { %s28_s13 = sshll.u32 %s266_s12, 4  ;;  %s16_s15 = sshll.u32 %s267_s14, 4  ;;  %s29_s13 = int_to_ptr.vmem [resolvable:$true] %s28_s13  ;;  %s294_s15 = int_to_ptr.vmem [resolvable:$true] %s16_s15 }
   0x4   :  { %s172_s18 = scalar_lea.hbm %s359_s1, 512 }
   0x5   :  { %p173_p0 = scmp.ne.s32.totalorder %s359_s1, %s172_s18  ;;  %p176_p1 = scmp.lt.u32.totalorder %s172_s18, %s359_s1 }
   0x7   :  { %p178_p2 = pnand %p176_p1, %p173_p0 }
   0x9   :  { %181 = shalt.err (!%p178_p2)
}
   0xa   :  { %s182_s23 = scalar_lea.vmem %s29_s13, 512  ;;  %p187_p4 = scmp.lt.s32.totalorder %s29_s13, %s29_s13 }
   0xb   :  { %p183_p3 = scmp.ne.s32.totalorder %s29_s13, %s182_s23  ;;  %p188_p5 = scmp.lt.s32.totalorder %s182_s23, %s182_s23 }
   0xd   :  { %p189_p6 = por %p188_p5, %p187_p4 }
   0xf   :  { %p190_p7 = pnand %p189_p6, %p183_p3 }
  0x11   :  { %193 = shalt.err (!%p190_p7)
}
  0x12   :  { %s268_s24 = smov 128   ;;  %s269_s25 = smov 8  }
  0x13   :  { %34 = dma.hbm_to_vmem [thread:$0]  %s359_s1, 512, %s29_s13, [#allocation6], %s268_s24, %s268_s24, %s269_s25  }
  0x14   :  { %s194_s30 = scalar_lea.hbm %s358_s0, 256 }
  0x15   :  { %p195_p8 = scmp.ne.s32.totalorder %s358_s0, %s194_s30  ;;  %p198_p9 = scmp.lt.u32.totalorder %s194_s30, %s358_s0 }
  0x17   :  { %p200_p10 = pnand %p198_p9, %p195_p8 }
  0x19   :  { %203 = shalt.err (!%p200_p10)
}
  0x1a   :  { %s204_s8 = scalar_lea.vmem %s294_s15, 256  ;;  %p209_p12 = scmp.lt.s32.totalorder %s294_s15, %s294_s15 }
  0x1b   :  { %p205_p11 = scmp.ne.s32.totalorder %s294_s15, %s204_s8  ;;  %p210_p13 = scmp.lt.s32.totalorder %s204_s8, %s204_s8 }
  0x1d   :  { %p211_p0 = por %p210_p13, %p209_p12 }
  0x1f   :  { %p212_p1 = pnand %p211_p0, %p205_p11 }
  0x21   :  { %215 = shalt.err (!%p212_p1)
}
  0x22   :  { %22 = dma.hbm_to_vmem [thread:$0]  %s358_s0, 256, %s294_s15, [#allocation3], %s268_s24, %s268_s24, %s269_s25  }
  0x23   :  { %s270_s10 = smov [#allocation7]   ;;  %s216_s14 = scalar_lea.hbm %s360_s2, 16 }
  0x24   :  { %s41_s11 = sshll.u32 %s270_s10, 4  ;;  %p217_p2 = scmp.ne.s32.totalorder %s360_s2, %s216_s14  ;;  %s42_s11 = int_to_ptr.vmem [resolvable:$true] %s41_s11 }
  0x25   :  { %p220_p3 = scmp.lt.u32.totalorder %s216_s14, %s360_s2 }
  0x27   :  { %p222_p4 = pnand %p220_p3, %p217_p2 }
  0x29   :  { %225 = shalt.err (!%p222_p4)
}
  0x2a   :  { %s226_s20 = scalar_lea.vmem %s42_s11, 16  ;;  %s230_s0 = scalar_lea.vmem %s42_s11, 32 }
  0x2b   :  { %p227_p5 = scmp.ne.s32.totalorder %s42_s11, %s226_s20  ;;  %p231_p6 = scmp.lt.s32.totalorder %s42_s11, %s42_s11 }
  0x2c   :  { %p232_p7 = scmp.lt.s32.totalorder %s230_s0, %s226_s20 }
  0x2e   :  { %p233_p8 = por %p232_p7, %p231_p6 }
  0x30   :  { %p234_p9 = pnand %p233_p8, %p227_p5 }
  0x32   :  { %237 = shalt.err (!%p234_p9)
}
  0x33   :  { %44 = dma.hbm_to_vmem [thread:$0]  %s360_s2, 16, %s42_s11, [#allocation6]  }
  0x34   :  { %260 = dma.done.wait [#allocation3], 256  }
  0x35   :  { %261 = vsyncadd [#allocation3], 4294967040 }
  0x36   :  { %262 = dma.done.wait [#allocation6], 528  }
  0x37   :  { %263 = vsyncadd [#allocation6], 4294966768  ;;  %v271_v0 = vmov 0.0   ;;  %vm272_vm0 = vmmov 0   ;;  %v57_v1 = vld [vmem:[#allocation5] sm:$0xff]  ;;  %v58_v2 = vld [vmem:[#allocation5 + $0x8] sm:$0xff] }
  0x38   :  { %152 = vmatprep.subr.bf16.mxu0 %v271_v0  ;;  %156 = vmatprep.mubr.msk.bf16.mxu0 %vm272_vm0, %v271_v0  ;;  %v59_v3 = vld [vmem:[#allocation5 + $0x10] sm:$0xff]  ;;  %v62_v4 = vpack.c.bf16 %v58_v2, %v57_v1  ;;  %v60_v5 = vld [vmem:[#allocation5 + $0x18] sm:$0xff]  ;;  %vm71_vm1 = vcmask 261120   ;;  %v147_v10 = vld [vmem:[#allocation7] ss:$0 sm:$0xff]  ;;  %vm126_vm2 = vcmask 523264  }
  0x39   :  { %v63_v6 = vpack.c.bf16 %v60_v5, %v59_v3  ;;  %v55_v7 = vld [vmem:[#allocation2] sm:$0xff]  ;;  %v56_v8 = vld [vmem:[#allocation2 + $0x8] sm:$0xff]  ;;  %s273_s2 = smov [#allocation8]  }
  0x3a   :  { %153 = vmatpush3.bf16.msra.mxu0 %v62_v4  ;;  %v61_v9 = vpack.c.bf16 %v56_v8, %v55_v7  ;;  %s134_s22 = sshll.u32 %s273_s2, 4  ;;  %s135_s22 = int_to_ptr.vmem [resolvable:$true] %s134_s22 }
  0x3b   :  { %154 = vmatprep.subr.bf16.mxu0 %v271_v0  ;;  %s238_s23 = scalar_lea.vmem %s135_s22, 256  ;;  %p243_p11 = scmp.lt.s32.totalorder %s135_s22, %s135_s22 }
  0x3c   :  { %p239_p10 = scmp.ne.s32.totalorder %s135_s22, %s238_s23  ;;  %p244_p12 = scmp.lt.s32.totalorder %s238_s23, %s238_s23 }
  0x3e   :  { %155 = vmatpush3.bf16.msra.mxu0 %v63_v6  ;;  %p245_p13 = por %p244_p12, %p243_p11 }
  0x40   :  { %p246_p0 = pnand %p245_p13, %p239_p10 }
  0x41   :  { %157 = vmatmul.mubr.msk.bf16.vlgmr.msra.gmra.mrb[0].mxu0 %vm71_vm1, %v61_v9 }
 0x114   :  { %v109_v11 = vpop.f32.mrb[0].mxu0 }
 0x115   :  { %v110_v12 = vadd.f32 %v147_v10, %v109_v11  ;;  %v158_v13 = vpop.f32.mrb[1].mxu0 }
 0x116   :  { %v112_v14 = vpop.f32.mrb[2].mxu0 }
 0x117   :  { %v118_v15 = vmul.f32 0.70710677, %v110_v12  ;;  %v113_v16 = vadd.f32 %v147_v10, %v112_v14  ;;  %v159_v17 = vpop.f32.mrb[3].mxu0  ;;  %v116_v20 = vmul.f32 0.5, %v110_v12 }
 0x119   :  { %168 = verf.f32 %v118_v15  ;;  %v119_v18 = vmul.f32 0.70710677, %v113_v16  ;;  %v117_v24 = vmul.f32 0.5, %v113_v16 }
 0x11b   :  { %170 = verf.f32 %v119_v18 }
 0x123   :  { %v169_v19 = vpop.eup %168 }
 0x124   :  { %v122_v21 = vadd.f32 1.0, %v169_v19 }
 0x125   :  { %v171_v22 = vpop.eup %170 }
 0x126   :  { %v124_v23 = vmul.f32 %v122_v21, %v116_v20  ;;  %v123_v25 = vadd.f32 1.0, %v171_v22 }
 0x128   :  { %v125_v26 = vmul.f32 %v123_v25, %v117_v24  ;;  %127 = vst.msk [vmem:[#allocation8] sm:$0xff] %vm126_vm2, %v124_v23 }
 0x12a   :  { %128 = vst.msk [vmem:[#allocation8 + $0x8] sm:$0xff] %vm126_vm2, %v125_v26 }
 0x12b   :  { %249 = shalt.err (!%p246_p0)
}
 0x12c   :  { %s250_s28 = scalar_lea.hbm %s361_s3, 256 }
 0x12d   :  { %p251_p1 = scmp.ne.s32.totalorder %s361_s3, %s250_s28  ;;  %p254_p2 = scmp.lt.u32.totalorder %s250_s28, %s361_s3 }
 0x12f   :  { %p256_p3 = pnand %p254_p2, %p251_p1 }
 0x131   :  { %259 = shalt.err (!%p256_p3)
}
 0x132   :  { %140 = dma.vmem_to_hbm [thread:$0]  %s135_s22, 256, %s361_s3, [#allocation4], %s268_s24, %s268_s24, %s269_s25  }
 0x133   :  { %264 = dma.done.wait [#allocation4], 256  }
 0x134   :  { %265 = vsyncadd [#allocation4], 4294967040 }
 0x135   :  { %144 = vsyncpa [#allocation3], 1 }
 0x136   :  { %145 = vsyncpa [#allocation6], 1 }
 0x137   :  { %146 = vsyncpa [#allocation4], 1 }

// kernel: _lambda_.28
= control target key start
LH: loop header
LB: loop body
LE: loop exit
PB: predicated region body
PF: predicated region fallthrough
CT: control target
= control target key end

     0   :  { %11 = vsyncpa [#allocation3], 0  ;;  %s595_s0 = inlined_call_operand.hbm [shape: f32[16,64], index: 0, kind: input, shape index: {}]   ;;  %s596_s1 = inlined_call_operand.hbm [shape: f32[64,32], index: 1, kind: input, shape index: {}]   ;;  %s597_s2 = inlined_call_operand.hbm [shape: f32[1,32], index: 2, kind: input, shape index: {}]   ;;  %s598_s3 = inlined_call_operand.hbm [shape: f32[16,32], index: 3, kind: input, shape index: {}]   ;;  %s599_s4 = inlined_call_operand.hbm [shape: f32[1,32], index: 4, kind: input, shape index: {}]   ;;  %s600_s5 = inlined_call_operand.hbm [shape: f32[1,32], index: 5, kind: input, shape index: {}]   ;;  %s601_s6 = inlined_call_operand.hbm [shape: f32[16,32], index: 6, kind: output, shape index: {}]  }
   0x1   :  { %12 = vsyncpa [#allocation6], 0 }
   0x2   :  { %13 = vsyncpa [#allocation9], 0 }
   0x3   :  { %14 = vsyncpa [#allocation12], 0 }
   0x4   :  { %15 = vsyncpa [#allocation4], 0  ;;  %s440_s21 = smov [#allocation5]   ;;  %s441_s23 = smov [#allocation8]  }
   0x5   :  { %s33_s22 = sshll.u32 %s440_s21, 4  ;;  %s55_s24 = sshll.u32 %s441_s23, 4  ;;  %s34_s22 = int_to_ptr.vmem [resolvable:$true] %s33_s22  ;;  %s486_s24 = int_to_ptr.vmem [resolvable:$true] %s55_s24 }
   0x6   :  { %s276_s27 = scalar_lea.hbm %s596_s1, 1024 }
   0x7   :  { %p277_p0 = scmp.ne.s32.totalorder %s596_s1, %s276_s27  ;;  %p280_p1 = scmp.lt.u32.totalorder %s276_s27, %s596_s1 }
   0x9   :  { %p282_p2 = pnand %p280_p1, %p277_p0 }
   0xb   :  { %285 = shalt.err (!%p282_p2)
}
   0xc   :  { %s286_s8 = scalar_lea.vmem %s34_s22, 1024  ;;  %p291_p4 = scmp.lt.s32.totalorder %s34_s22, %s34_s22 }
   0xd   :  { %p287_p3 = scmp.ne.s32.totalorder %s34_s22, %s286_s8  ;;  %p292_p5 = scmp.lt.s32.totalorder %s286_s8, %s286_s8 }
   0xf   :  { %p293_p6 = por %p292_p5, %p291_p4 }
  0x11   :  { %p294_p7 = pnand %p293_p6, %p287_p3 }
  0x13   :  { %297 = shalt.err (!%p294_p7)
}
  0x14   :  { %s442_s9 = smov 128   ;;  %s443_s10 = smov 8  }
  0x15   :  { %39 = dma.hbm_to_vmem [thread:$0]  %s596_s1, 1024, %s34_s22, [#allocation6], %s442_s9, %s442_s9, %s443_s10  }
  0x16   :  { %s298_s15 = scalar_lea.hbm %s598_s3, 256 }
  0x17   :  { %p299_p8 = scmp.ne.s32.totalorder %s598_s3, %s298_s15  ;;  %p302_p9 = scmp.lt.u32.totalorder %s298_s15, %s598_s3 }
  0x19   :  { %p304_p10 = pnand %p302_p9, %p299_p8 }
  0x1b   :  { %307 = shalt.err (!%p304_p10)
}
  0x1c   :  { %s308_s20 = scalar_lea.vmem %s486_s24, 256  ;;  %p313_p12 = scmp.lt.s32.totalorder %s486_s24, %s486_s24 }
  0x1d   :  { %p309_p11 = scmp.ne.s32.totalorder %s486_s24, %s308_s20  ;;  %p314_p13 = scmp.lt.s32.totalorder %s308_s20, %s308_s20 }
  0x1f   :  { %p315_p0 = por %p314_p13, %p313_p12 }
  0x21   :  { %p316_p1 = pnand %p315_p0, %p309_p11 }
  0x23   :  { %319 = shalt.err (!%p316_p1)
}
  0x24   :  { %61 = dma.hbm_to_vmem [thread:$0]  %s598_s3, 256, %s486_s24, [#allocation9], %s442_s9, %s442_s9, %s443_s10  }
  0x25   :  { %s444_s22 = smov [#allocation2]   ;;  %s445_s25 = smov [#allocation7]  }
  0x26   :  { %s21_s23 = sshll.u32 %s444_s22, 4  ;;  %s46_s26 = sshll.u32 %s445_s25, 4  ;;  %s22_s23 = int_to_ptr.vmem [resolvable:$true] %s21_s23  ;;  %s47_s26 = int_to_ptr.vmem [resolvable:$true] %s46_s26 }
  0x27   :  { %s320_s29 = scalar_lea.hbm %s595_s0, 256 }
  0x28   :  { %p321_p2 = scmp.ne.s32.totalorder %s595_s0, %s320_s29  ;;  %p324_p3 = scmp.lt.u32.totalorder %s320_s29, %s595_s0 }
  0x2a   :  { %p326_p4 = pnand %p324_p3, %p321_p2 }
  0x2c   :  { %329 = shalt.err (!%p326_p4)
}
  0x2d   :  { %s330_s3 = scalar_lea.vmem %s22_s23, 256  ;;  %p335_p6 = scmp.lt.s32.totalorder %s22_s23, %s22_s23 }
  0x2e   :  { %p331_p5 = scmp.ne.s32.totalorder %s22_s23, %s330_s3  ;;  %p336_p7 = scmp.lt.s32.totalorder %s330_s3, %s330_s3 }
  0x30   :  { %p337_p8 = por %p336_p7, %p335_p6 }
  0x32   :  { %p338_p9 = pnand %p337_p8, %p331_p5 }
  0x34   :  { %341 = shalt.err (!%p338_p9)
}
  0x35   :  { %27 = dma.hbm_to_vmem [thread:$0]  %s595_s0, 256, %s22_s23, [#allocation3], %s442_s9, %s442_s9, %s443_s10  }
  0x36   :  { %s342_s15 = scalar_lea.hbm %s597_s2, 16 }
  0x37   :  { %p343_p10 = scmp.ne.s32.totalorder %s597_s2, %s342_s15  ;;  %p346_p11 = scmp.lt.u32.totalorder %s342_s15, %s597_s2 }
  0x39   :  { %p348_p12 = pnand %p346_p11, %p343_p10 }
  0x3b   :  { %351 = shalt.err (!%p348_p12)
}
  0x3c   :  { %s352_s20 = scalar_lea.vmem %s47_s26, 16  ;;  %s356_s1 = scalar_lea.vmem %s47_s26, 32 }
  0x3d   :  { %p353_p13 = scmp.ne.s32.totalorder %s47_s26, %s352_s20  ;;  %p357_p0 = scmp.lt.s32.totalorder %s47_s26, %s47_s26 }
  0x3e   :  { %p358_p1 = scmp.lt.s32.totalorder %s356_s1, %s352_s20 }
  0x40   :  { %p359_p2 = por %p358_p1, %p357_p0 }
  0x42   :  { %p360_p3 = pnand %p359_p2, %p353_p13 }
  0x44   :  { %363 = shalt.err (!%p360_p3)
}
  0x45   :  { %49 = dma.hbm_to_vmem [thread:$0]  %s597_s2, 16, %s47_s26, [#allocation6]  }
  0x46   :  { %s446_s22 = smov [#allocation10]   ;;  %s447_s25 = smov [#allocation11]  }
  0x47   :  { %s68_s23 = sshll.u32 %s446_s22, 4  ;;  %s78_s27 = sshll.u32 %s447_s25, 4  ;;  %s69_s23 = int_to_ptr.vmem [resolvable:$true] %s68_s23  ;;  %s79_s27 = int_to_ptr.vmem [resolvable:$true] %s78_s27 }
  0x48   :  { %s364_s30 = scalar_lea.hbm %s599_s4, 16 }
  0x49   :  { %p365_p4 = scmp.ne.s32.totalorder %s599_s4, %s364_s30  ;;  %p368_p5 = scmp.lt.u32.totalorder %s364_s30, %s599_s4 }
  0x4b   :  { %p370_p6 = pnand %p368_p5, %p365_p4 }
  0x4d   :  { %373 = shalt.err (!%p370_p6)
}
  0x4e   :  { %s374_s2 = scalar_lea.vmem %s69_s23, 16  ;;  %s378_s26 = scalar_lea.vmem %s69_s23, 32 }
  0x4f   :  { %p375_p7 = scmp.ne.s32.totalorder %s69_s23, %s374_s2  ;;  %p379_p8 = scmp.lt.s32.totalorder %s69_s23, %s69_s23 }
  0x50   :  { %p380_p9 = scmp.lt.s32.totalorder %s378_s26, %s374_s2 }
  0x52   :  { %p381_p10 = por %p380_p9, %p379_p8 }
  0x54   :  { %p382_p11 = pnand %p381_p10, %p375_p7 }
  0x56   :  { %385 = shalt.err (!%p382_p11)
}
  0x57   :  { %71 = dma.hbm_to_vmem [thread:$0]  %s599_s4, 16, %s69_s23, [#allocation9]  }
  0x58   :  { %s386_s15 = scalar_lea.hbm %s600_s5, 16 }
  0x59   :  { %p387_p12 = scmp.ne.s32.totalorder %s600_s5, %s386_s15  ;;  %p390_p13 = scmp.lt.u32.totalorder %s386_s15, %s600_s5 }
  0x5b   :  { %p392_p0 = pnand %p390_p13, %p387_p12 }
  0x5d   :  { %395 = shalt.err (!%p392_p0)
}
  0x5e   :  { %s396_s20 = scalar_lea.vmem %s79_s27, 16  ;;  %s400_s1 = scalar_lea.vmem %s79_s27, 32 }
  0x5f   :  { %p397_p1 = scmp.ne.s32.totalorder %s79_s27, %s396_s20  ;;  %p401_p2 = scmp.lt.s32.totalorder %s79_s27, %s79_s27 }
  0x60   :  { %p402_p3 = scmp.lt.s32.totalorder %s400_s1, %s396_s20 }
  0x62   :  { %p403_p4 = por %p402_p3, %p401_p2 }
  0x64   :  { %p404_p5 = pnand %p403_p4, %p397_p1 }
  0x66   :  { %407 = shalt.err (!%p404_p5)
}
  0x67   :  { %81 = dma.hbm_to_vmem [thread:$0]  %s600_s5, 16, %s79_s27, [#allocation12]  }
  0x68   :  { %430 = dma.done.wait [#allocation3], 256  }
  0x69   :  { %431 = vsyncadd [#allocation3], 4294967040 }
  0x6a   :  { %432 = dma.done.wait [#allocation6], 1040  }
  0x6b   :  { %433 = vsyncadd [#allocation6], 4294966256 }
  0x6c   :  { %434 = dma.done.wait [#allocation9], 272  }
  0x6d   :  { %435 = vsyncadd [#allocation9], 4294967024 }
  0x6e   :  { %436 = dma.done.wait [#allocation12], 16  }
  0x6f   :  { %437 = vsyncadd [#allocation12], 4294967280  ;;  %v448_v0 = vmov 0.0   ;;  %vm449_vm0 = vmmov 0   ;;  %v103_v1 = vld [vmem:[#allocation5] sm:$0xff]  ;;  %v104_v2 = vld [vmem:[#allocation5 + $0x8] sm:$0xff] }
  0x70   :  { %249 = vmatprep.subr.bf16.mxu0 %v448_v0  ;;  %257 = vmatprep.mubr.msk.bf16.mxu0 %vm449_vm0, %v448_v0  ;;  %v105_v3 = vld [vmem:[#allocation5 + $0x10] sm:$0xff]  ;;  %v112_v4 = vpack.c.bf16 %v104_v2, %v103_v1  ;;  %v106_v5 = vld [vmem:[#allocation5 + $0x18] sm:$0xff]  ;;  %v107_v7 = vld [vmem:[#allocation5 + $0x20] sm:$0xff]  ;;  %vm123_vm1 = vcmask 523264   ;;  %vm172_vm2 = vcmask 261120   ;;  %s450_s5 = smov [#allocation13]  }
  0x71   :  { %v113_v6 = vpack.c.bf16 %v106_v5, %v105_v3  ;;  %v108_v8 = vld [vmem:[#allocation5 + $0x28] sm:$0xff]  ;;  %v109_v10 = vld [vmem:[#allocation5 + $0x30] sm:$0xff]  ;;  %v110_v11 = vld [vmem:[#allocation5 + $0x38] sm:$0xff]  ;;  %s225_s21 = sshll.u32 %s450_s5, 4  ;;  %s226_s21 = int_to_ptr.vmem [resolvable:$true] %s225_s21 }
  0x72   :  { %250 = vmatpush3.bf16.msra.mxu0 %v112_v4  ;;  %v114_v9 = vpack.c.bf16 %v108_v8, %v107_v7  ;;  %v115_v12 = vpack.c.bf16 %v110_v11, %v109_v10  ;;  %v101_v13 = vld [vmem:[#allocation2] sm:$0xff]  ;;  %v102_v14 = vld [vmem:[#allocation2 + $0x8] sm:$0xff]  ;;  %v240_v16 = vld [vmem:[#allocation7] ss:$0 sm:$0xff]  ;;  %s408_s22 = scalar_lea.vmem %s226_s21, 256  ;;  %p413_p7 = scmp.lt.s32.totalorder %s226_s21, %s226_s21 }
  0x73   :  { %251 = vmatprep.subr.bf16.mxu0 %v448_v0  ;;  %v111_v15 = vpack.c.bf16 %v102_v14, %v101_v13  ;;  %v168_v18 = vld [vmem:[#allocation8] sm:$0xff]  ;;  %v169_v22 = vld [vmem:[#allocation8 + $0x8] sm:$0xff]  ;;  %v242_v46 = vld [vmem:[#allocation10] ss:$0 sm:$0xff]  ;;  %p409_p6 = scmp.ne.s32.totalorder %s226_s21, %s408_s22  ;;  %p414_p8 = scmp.lt.s32.totalorder %s408_s22, %s408_s22 }
  0x74   :  { %v243_v48 = vld [vmem:[#allocation11] ss:$0 sm:$0xff] }
  0x75   :  { %p415_p9 = por %p414_p8, %p413_p7 }
  0x76   :  { %252 = vmatpush3.bf16.msra.mxu0 %v113_v6 }
  0x77   :  { %253 = vmatprep.subr.bf16.mxu0 %v448_v0  ;;  %p416_p10 = pnand %p415_p9, %p409_p6 }
  0x7a   :  { %254 = vmatpush3.bf16.msra.mxu0 %v114_v9 }
  0x7b   :  { %255 = vmatprep.subr.bf16.mxu0 %v448_v0 }
  0x7e   :  { %256 = vmatpush3.bf16.msra.mxu0 %v115_v12 }
  0x81   :  { %258 = vmatmul.mubr.msk.bf16.vlgmr.msra.gmra.mrb[0].mxu0 %vm123_vm1, %v111_v15 }
 0x154   :  { %v161_v17 = vpop.f32.mrb[0].mxu0 }
 0x155   :  { %v162_v19 = vadd.f32 %v240_v16, %v161_v17  ;;  %v259_v20 = vpop.f32.mrb[1].mxu0 }
 0x156   :  { %v164_v21 = vpop.f32.mrb[2].mxu0 }
 0x157   :  { %v165_v23 = vadd.f32 %v240_v16, %v164_v21  ;;  %v260_v24 = vpop.f32.mrb[3].mxu0  ;;  %v170_v25 = vadd.f32 %v168_v18, %v162_v19 }
 0x159   :  { %v173_v26 = vsel %vm172_vm2, %v170_v25, 0.0  ;;  %v171_v27 = vadd.f32 %v169_v22, %v165_v23 }
 0x15a   :  { %174 = vadd.xlane.f32.xlu0 %v173_v26 }
 0x15b   :  { %v176_v28 = vsel %vm172_vm2, %v171_v27, 0.0 }
 0x15e   :  { %177 = vadd.xlane.f32.xlu0 %v176_v28 }
 0x1e7   :  { %v175_v29 = vpop.xlane.xlu0 %174 }
 0x1e8   :  { %v180_v30 = vmul.f32 0.03125, %v175_v29 }
 0x1ea   :  { %v182_v31 = vsub.f32 %v170_v25, %v180_v30 }
 0x1eb   :  { %v178_v32 = vpop.xlane.xlu0 %177 }
 0x1ec   :  { %v181_v33 = vmul.f32 0.03125, %v178_v32  ;;  %v184_v34 = vmul.f32 %v182_v31, %v182_v31 }
 0x1ee   :  { %v183_v35 = vsub.f32 %v171_v27, %v181_v33  ;;  %v186_v36 = vsel %vm172_vm2, %v184_v34, 0.0 }
 0x1ef   :  { %187 = vadd.xlane.f32.xlu1 %v186_v36 }
 0x1f0   :  { %v185_v37 = vmul.f32 %v183_v35, %v183_v35 }
 0x1f2   :  { %v189_v38 = vsel %vm172_vm2, %v185_v37, 0.0 }
 0x1f3   :  { %190 = vadd.xlane.f32.xlu1 %v189_v38 }
 0x27c   :  { %v188_v39 = vpop.xlane.xlu1 %187 }
 0x27d   :  { %v192_v40 = vmul.f32 0.03125, %v188_v39 }
 0x27f   :  { %v194_v41 = vadd.f32 1e-05, %v192_v40 }
 0x280   :  { %v191_v42 = vpop.xlane.xlu1 %190 }
 0x281   :  { %272 = vrsqrt.f32 %v194_v41  ;;  %v193_v43 = vmul.f32 0.03125, %v191_v42 }
 0x283   :  { %v195_v44 = vadd.f32 1e-05, %v193_v43 }
 0x285   :  { %274 = vrsqrt.f32 %v195_v44 }
 0x28b   :  { %v273_v45 = vpop.eup %272 }
 0x28c   :  { %v198_v47 = vmul.f32 %v273_v45, %v182_v31 }
 0x28e   :  { %v207_v49 = vmul.f32 %v242_v46, %v198_v47 }
 0x28f   :  { %v275_v50 = vpop.eup %274 }
 0x290   :  { %v199_v51 = vmul.f32 %v275_v50, %v183_v35  ;;  %v216_v52 = vadd.f32 %v243_v48, %v207_v49 }
 0x292   :  { %v208_v53 = vmul.f32 %v242_v46, %v199_v51  ;;  %218 = vst.msk [vmem:[#allocation13] sm:$0xff] %vm172_vm2, %v216_v52 }
 0x294   :  { %v217_v54 = vadd.f32 %v243_v48, %v208_v53 }
 0x296   :  { %219 = vst.msk [vmem:[#allocation13 + $0x8] sm:$0xff] %vm172_vm2, %v217_v54 }
 0x297   :  { %419 = shalt.err (!%p416_p10)
}
 0x298   :  { %s420_s27 = scalar_lea.hbm %s601_s6, 256 }
 0x299   :  { %p421_p11 = scmp.ne.s32.totalorder %s601_s6, %s420_s27  ;;  %p424_p12 = scmp.lt.u32.totalorder %s420_s27, %s601_s6 }
 0x29b   :  { %p426_p13 = pnand %p424_p12, %p421_p11 }
 0x29d   :  { %429 = shalt.err (!%p426_p13)
}
 0x29e   :  { %231 = dma.vmem_to_hbm [thread:$0]  %s226_s21, 256, %s601_s6, [#allocation4], %s442_s9, %s442_s9, %s443_s10  }
 0x29f   :  { %438 = dma.done.wait [#allocation4], 256  }
 0x2a0   :  { %439 = vsyncadd [#allocation4], 4294967040 }
 0x2a1   :  { %235 = vsyncpa [#allocation3], 1 }
 0x2a2   :  { %236 = vsyncpa [#allocation6], 1 }
 0x2a3   :  { %237 = vsyncpa [#allocation9], 1 }
 0x2a4   :  { %238 = vsyncpa [#allocation12], 1 }
 0x2a5   :  { %239 = vsyncpa [#allocation4], 1 }

// kernel: _lambda_.25
= control target key start
LH: loop header
LB: loop body
LE: loop exit
PB: predicated region body
PF: predicated region fallthrough
CT: control target
= control target key end

     0   :  { %7 = vsyncpa [#allocation6], 0  ;;  %s1708_s0 = inlined_call_operand.hbm [shape: f32[2,8,32], index: 0, kind: input, shape index: {}]   ;;  %s1709_s1 = inlined_call_operand.hbm [shape: f32[2,8,64], index: 1, kind: input, shape index: {}]   ;;  %s1710_s2 = inlined_call_operand.hbm [shape: f32[2,8,32], index: 2, kind: output, shape index: {}]  }
   0x1   :  { %9 = vsyncpa [#allocation6 + $0x1], 0 }
   0x2   :  { %10 = vsyncpa [#allocation9], 0 }
   0x3   :  { %12 = vsyncpa [#allocation9 + $0x1], 0 }
   0x4   :  { %13 = vsyncpa [#allocation7], 0 }
   0x5   :  { %15 = vsyncpa [#allocation7 + $0x1], 0  ;;  %s1360_s9 = smov 0   ;;  %s1362_s10 = smov 0  }
   0x6   :  { %s1364_s11 = smov 0   ;;  %s1366_s12 = smov 0  }
   0x7   :  { %s1368_s13 = smov 0   ;;  %s1370_s14 = smov 0  }
   0x8 LB: > { %s985_s15 = sadd.s32 4294967295, %s1326_s14   ;;  %s986_s16 = sadd.s32 4294967294, %s1326_s14   ;;  %s1326_s14 = sphi %s1370_s14, %s21_s14   ;;  %s1322_s13 = sphi %s1368_s13, %s1730_s13   ;;  %s1318_s12 = sphi %s1366_s12, %s1729_s12   ;;  %s1314_s11 = sphi %s1364_s11, %s1728_s11   ;;  %s1310_s10 = sphi %s1362_s10, %s1727_s10   ;;  %s1306_s9 = sphi %s1360_s9, %s1726_s9  }
   0x9   : > { %s40_s17 = sadd.s32 1, %s1322_s13  ;;  %s49_s18 = sadd.s32 1, %s1314_s11 }
   0xa   : > { %p42_p0 = scmp.ge.s32.totalorder %s40_s17, 2  ;;  %p56_p1 = scmp.ne.s32.totalorder %s1314_s11, %s1310_s10 }
   0xb   : > { %p57_p2 = scmp.eq.s32.totalorder %s1326_s14, 0  ;;  %p62_p3 = scmp.ne.s32.totalorder %s1310_s10, %s1306_s9 }
   0xc   : > { %s1732_s17 = smov (%p42_p0, %s40_s17), 0  ;;  %p63_p5 = scmp.eq.s32.totalorder %s985_s15, 0 }
   0xd   : > { %p1401_p4 = por %p57_p2, %p56_p1  ;;  %s44_s20 = ssub.s32 %s1322_s13, %s1732_s17 }
   0xe   : > { %p116_p6 = scmp.eq.s32.totalorder %s985_s15, 1  ;;  %p47_p7 = scmp.eq.s32.totalorder %s44_s20, 0 }
   0xf   : > { %p1407_p8 = por %p63_p5, %p62_p3  ;;  %p122_p10 = scmp.eq.s32.totalorder %s986_s16, 1 }
  0x10   : > { %p1411_p9 = por %p116_p6, %p56_p1  ;;  %p1090_p13 = scmp.lt.s32.totalorder %s1326_s14, 2 }
  0x11   : > { %s1714_s21 = scalar_select %p1407_p8, 1, 0 }
  0x12   : > { %s1715_s22 = scalar_select %p1411_p9, 1, 0 }
  0x13   : > { %s1416_s23 = scalar_select %p47_p7, %s1314_s11, %s49_s18  }
  0x14   : > { %p1418_p11 = por %p122_p10, %p62_p3  ;;  %s1425_s25 = sand.u32 1, %s1314_s11  }
  0x15   : > { %s989_s26 = sshll.u32 %s1425_s25, 3  ;;  %s990_s27 = sshll.u32 %s1322_s13, 7 }
  0x16   : > { %s1716_s24 = scalar_select %p1418_p11, 1, 0 }
  0x17   : > { %s1434_s30 = scalar_lea.hbm %s1708_s0, %s990_s27  ;;  %s146_s3 = scalar_lea.vmem [#allocation5], %s989_s26 }
  0x18   : > { %s154_s4 = sshll.u32 %s146_s3, 4  ;;  %p1442_p0 = pnand %p1090_p13, %p1401_p4  ;;  %s1438_s4 = int_to_ptr.vmem [resolvable:$true] %s154_s4 }
  0x19   : > { %s143_s6 = scalar_lea.sflag [#allocation6], %s1425_s25  ;;  %s1180_s7 = scalar_lea.hbm %s1434_s30, 128 }
  0x1a   : > { %p1181_p3 = scmp.ne.s32.totalorder %s1434_s30, %s1180_s7  ;;  %p1182_p5 = pneg %p1442_p0 }
  0x1b   : > { %s1185_s16 = scalar_lea.hbm %s1708_s0, 256  ;;  %p1186_p4 = scmp.lt.u32.totalorder %s1434_s30, %s1708_s0 }
  0x1c   : > { %p1183_p6 = pnand %p1182_p5, %p1181_p3  ;;  %p1187_p10 = scmp.lt.u32.totalorder %s1185_s16, %s1180_s7 }
  0x1d   : > { %p1189_p12 = scmp.lt.u32.totalorder %s1180_s7, %s1434_s30 }
  0x1e   : > { %p1184_p7 = pneg %p1183_p6  ;;  %p1188_p13 = por %p1187_p10, %p1186_p4 }
  0x20   : > { %p1190_p1 = por %p1189_p12, %p1188_p13 }
  0x22   : > { %p1191_p2 = pnand %p1190_p1, %p1184_p7 }
  0x24   : > { %1194 = shalt.err (!%p1191_p2)
}
  0x25   : > { %s1195_s20 = scalar_lea.vmem %s1438_s4, 128  ;;  %s1328_s28 = smov [#allocation5]  }
  0x26   : > { %p1196_p3 = scmp.ne.s32.totalorder %s1438_s4, %s1195_s20  ;;  %s1200_s29 = sshll.u32 %s1328_s28, 4  ;;  %s1201_s29 = int_to_ptr.vmem [resolvable:$false] %s1200_s29 }
  0x27   : > { %s1202_s3 = scalar_lea.vmem %s1201_s29, 256  ;;  %p1203_p9 = scmp.lt.s32.totalorder %s1438_s4, %s1201_s29 }
  0x28   : > { %p1198_p6 = pnand %p1196_p3, %p1182_p5  ;;  %p1204_p4 = scmp.lt.s32.totalorder %s1202_s3, %s1195_s20 }
  0x2a   : > { %p1199_p11 = pneg %p1198_p6  ;;  %p1205_p10 = por %p1204_p4, %p1203_p9 }
  0x2c   : > { %p1206_p12 = pnand %p1205_p10, %p1199_p11 }
  0x2e   : > { %1209 = shalt.err (!%p1206_p12)
}
  0x2f   : > { %1082 = dma.hbm_to_vmem [thread:$0]  (!%p1442_p0), %s1434_s30, 128, %s1438_s4, %s143_s6  }
  0x30   : > { %p1718_p1 = scmp.lt.s32.totalorder %s1326_s14, 3  ;;  %p1719_p2 = scmp.ge.s32.totalorder %s1326_s14, 1 }
  0x31   : > { %s1487_s16 = scalar_lea.hbm %s1709_s1, %s990_s27  ;;  %s165_s18 = scalar_lea.vmem [#allocation8], %s989_s26 }
  0x32   : > { %p1478_p7 = pnand %p1719_p2, %p1718_p1  ;;  %s173_s19 = sshll.u32 %s165_s18, 4  ;;  %s174_s19 = int_to_ptr.vmem [resolvable:$true] %s173_s19 }
  0x33   : > { %s162_s30 = scalar_lea.sflag [#allocation9], %s1425_s25  ;;  %s1210_s4 = scalar_lea.hbm %s1487_s16, 128 }
  0x34   : > { %s1720_s7 = scalar_select %p1478_p7, 1, 0 }
  0x35   : > { %p1211_p9 = scmp.ne.s32.totalorder %s1487_s16, %s1210_s4  ;;  %s1215_s27 = scalar_lea.hbm %s1709_s1, 256 }
  0x36   : > { %p1216_p3 = scmp.lt.u32.totalorder %s1487_s16, %s1709_s1  ;;  %p1217_p6 = scmp.lt.u32.totalorder %s1215_s27, %s1210_s4 }
  0x37   : > { %p1213_p11 = pnand %p1211_p9, %p1182_p5  ;;  %p1219_p10 = scmp.lt.u32.totalorder %s1210_s4, %s1487_s16 }
  0x38   : > { %p1218_p4 = por %p1217_p6, %p1216_p3 }
  0x39   : > { %p1214_p13 = pneg %p1213_p11 }
  0x3a   : > { %p1220_p12 = por %p1219_p10, %p1218_p4 }
  0x3c   : > { %p1221_p1 = pnand %p1220_p12, %p1214_p13 }
  0x3e   : > { %1224 = shalt.err (!%p1221_p1)
}
  0x3f   : > { %s1225_s25 = scalar_lea.vmem %s174_s19, 128  ;;  %s1329_s26 = smov [#allocation8]  }
  0x40   : > { %p1226_p2 = scmp.ne.s32.totalorder %s174_s19, %s1225_s25  ;;  %s1230_s3 = sshll.u32 %s1329_s26, 4  ;;  %s1231_s3 = int_to_ptr.vmem [resolvable:$false] %s1230_s3 }
  0x41   : > { %s1232_s8 = scalar_lea.vmem %s1231_s3, 256  ;;  %p1233_p8 = scmp.lt.s32.totalorder %s174_s19, %s1231_s3 }
  0x42   : > { %p1228_p9 = pnand %p1226_p2, %p1182_p5  ;;  %p1234_p7 = scmp.lt.s32.totalorder %s1232_s8, %s1225_s25 }
  0x44   : > { %p1229_p11 = pneg %p1228_p9  ;;  %p1235_p3 = por %p1234_p7, %p1233_p8 }
  0x46   : > { %p1236_p6 = pnand %p1235_p3, %p1229_p11 }
  0x48   : > { %1239 = shalt.err (!%p1236_p6)
}
  0x49   : > { %1085 = dma.hbm_to_vmem [thread:$0]  (!%p1442_p0), %s1487_s16, 128, %s174_s19, %s162_s30  }
  0x4a   : > { %p1721_p13 = scmp.ne.s32.totalorder %s1720_s7, 0 }
  0x4b   : > { %s1514_s15 = sand.u32 (!%p1721_p13), 1, %s1310_s10   ;;  %p1722_p8 = scmp.ne.s32.totalorder (!%p1721_p13), %s1714_s21, 0 }
  0x4c   : > { %182 = sbr.rel (%p1721_p13) target bundleno = 1547 (0x60b), region = 28  ;;  %s1517_s18 = sshll.u32 (!%p1721_p13), %s1514_s15, 3 }
  0x4d   : > { %s185_s4 = scalar_lea.sflag (!%p1721_p13), [#allocation6], %s1514_s15  ;;  %s188_s6 = scalar_lea.vmem (!%p1721_p13), [#allocation5], %s1517_s18 }
  0x53   : > { %1293 = dma.done.wait (%p1722_p8), %s185_s4, 128  }
  0x54   : > { %1295 = vsyncadd (%p1722_p8), %s185_s4, 4294967168  ;;  %s194_s5 = scalar_lea.sflag [#allocation9], %s1514_s15  ;;  %s197_s7 = scalar_lea.vmem [#allocation8], %s1517_s18 }
  0x55   : > { %1297 = dma.done.wait (%p1722_p8), %s194_s5, 128  }
  0x56   : > { %1299 = vsyncadd (%p1722_p8), %s194_s5, 4294967168  ;;  %vm237_vm0 = vcmask 64512   ;;  %v1330_v0 = vmov 0.0   ;;  %vm1331_vm1 = vmmov 0   ;;  %v244_v1 = vld [vmem:[%s197_s7] sm:$0xff]  ;;  %v242_v2 = vld [vmem:[%s188_s6] sm:$0xff] }
  0x57   : > { %1025 = vmatprep.subr.bf16.mxu0 %v1330_v0  ;;  %238 = vst.msk [vmem:[#allocation4] sm:$0xff] %vm237_vm0, %v1330_v0  ;;  %239 = vst.msk [vmem:[#allocation4 + $0x8] sm:$0xff] %vm237_vm0, %v1330_v0  ;;  %1027 = vmatprep.mubr.msk.bf16.mxu0 %vm1331_vm1, %v1330_v0  ;;  %v1545_v3 = vpack.c.bf16 %v244_v1, %v244_v1  ;;  %v243_v5 = vmul.f32 0.35355338, %v242_v2  ;;  %vm228_vm2 = vcmask 7168   ;;  %v1332_v7 = vmov -inf  }
  0x58   : > { %240 = vst.msk [vmem:[#allocation4 + $0x10] sm:$0xff] %vm237_vm0, %v1330_v0  ;;  %241 = vst.msk [vmem:[#allocation4 + $0x18] sm:$0xff] %vm237_vm0, %v1330_v0  ;;  %1031 = vmatprep.subr.bf16.mxu1 %v1330_v0  ;;  %1033 = vmatprep.mubr.msk.bf16.mxu1 %vm1331_vm1, %v1330_v0  ;;  %v1333_v13 = vmov 0   ;;  %s1334_s21 = smov 96   ;;  %s1335_s16 = smov 120   ;;  %vm332_vm3 = vcmask 1043456  }
  0x59   : > { %v252_v4 = vsel %vm237_vm0, %v1545_v3, 0  ;;  %v245_v6 = vpack.c.bf16 %v243_v5, %v243_v5  ;;  %229 = vst.msk [vmem:[#allocation2] sm:$0xff] %vm228_vm2, %v1332_v7  ;;  %230 = vst.msk [vmem:[#allocation2 + $0x8] sm:$0xff] %vm228_vm2, %v1332_v7  ;;  %1154 = vset.pattern.permute.xlu0 %v1333_v13  ;;  %1155 = vset.pattern.permute.xlu1 %v1333_v13  ;;  %s1336_s19 = smov 112   ;;  %s1337_s30 = smov 104   ;;  %vm857_vm4 = vcmask 130048  }
  0x5a   : > { %1026 = vmatpush3.bf16.xpose.msra.mxu0 %v252_v4  ;;  %231 = vst.msk [vmem:[#allocation2 + $0x10] sm:$0xff] %vm228_vm2, %v1332_v7  ;;  %232 = vst.msk [vmem:[#allocation2 + $0x18] sm:$0xff] %vm228_vm2, %v1332_v7  ;;  %327 = vrot.lane.b32.xlu1 %v1545_v3, %s1334_s21  ;;  %s1338_s20 = smov 88   ;;  %s1339_s27 = smov 80   ;;  %vm859_vm5 = vcmask 195584   ;;  %vm861_vm6 = vcmask 261120  }
  0x5b   : > { %1043 = vmatprep.subr.bf16.mxu0 %v1330_v0  ;;  %233 = vst.msk [vmem:[#allocation3] sm:$0xff] %vm228_vm2, %v1330_v0  ;;  %234 = vst.msk [vmem:[#allocation3 + $0x8] sm:$0xff] %vm228_vm2, %v1330_v0  ;;  %s1340_s28 = smov 72   ;;  %s1341_s29 = smov 8  }
  0x5c   : > { %235 = vst.msk [vmem:[#allocation3 + $0x10] sm:$0xff] %vm228_vm2, %v1330_v0  ;;  %236 = vst.msk [vmem:[#allocation3 + $0x18] sm:$0xff] %vm228_vm2, %v1330_v0  ;;  %s1342_s25 = smov 16   ;;  %s1343_s26 = smov 24  }
  0x5d   : > { %s1006_s3 = sshll.u32 %s1318_s12, 7  ;;  %s222_s8 = scalar_lea.vmem [#allocation10], %s1517_s18 }
  0x5e   : > { %388 = vrot.lane.b32.xlu1 %v1545_v3, %s1335_s16  ;;  %s878_s4 = sshll.u32 %s222_s8, 4  ;;  %s1659_s7 = scalar_lea.hbm %s1710_s2, %s1006_s3  ;;  %s1661_s4 = int_to_ptr.vmem [resolvable:$true] %s878_s4 }
  0x5f   : > { %s864_s12 = scalar_lea.sflag [#allocation7], %s1514_s15  ;;  %s1240_s18 = scalar_lea.vmem %s1661_s4, 128 }
  0x60   : > { %v1570_v14 = vld [vmem:[#allocation2] sm:$0xff]  ;;  %v1606_v53 = vld [vmem:[#allocation2 + $0x8] sm:$0xff]  ;;  %p1241_p0 = scmp.ne.s32.totalorder %s1661_s4, %s1240_s18  ;;  %p1723_p5 = scmp.ne.s32.totalorder %s1715_s22, 0 }
  0x61   : > { %1028 = vmatmul.mubr.msk.bf16.vlgmr.msra.gmra.mrb[0].mxu0 %vm237_vm0, %v245_v6  ;;  %v579_v57 = vld [vmem:[#allocation2 + $0x10] sm:$0xff]  ;;  %v721_v61 = vld [vmem:[#allocation2 + $0x18] sm:$0xff]  ;;  %s1344_s21 = smov [#allocation10]  }
  0x62   : > { %1045 = vmatprep.mubr.msk.bf16.mxu0 %vm1331_vm1, %v1330_v0  ;;  %385 = vrot.lane.b32.xlu1 %v245_v6, %s1335_s16  ;;  %p1242_p7 = pnand %p1241_p0, %p1723_p5  ;;  %s1244_s16 = sshll.u32 %s1344_s21, 4  ;;  %s1245_s16 = int_to_ptr.vmem [resolvable:$false] %s1244_s16 }
  0x63   : > { %p1247_p10 = scmp.lt.s32.totalorder %s1661_s4, %s1245_s16 }
  0x64   : > { %p1243_p4 = pneg %p1242_p7 }
  0x66   : > { %530 = vrot.lane.b32.xlu1 %v1545_v3, %s1336_s19 }
  0x6a   : > { %527 = vrot.lane.b32.xlu1 %v245_v6, %s1336_s19  ;;  %s1246_s19 = scalar_lea.vmem %s1245_s16, 256 }
  0x6b   : > { %p1248_p12 = scmp.lt.s32.totalorder %s1246_s19, %s1240_s18 }
  0x6d   : > { %p1249_p1 = por %p1248_p12, %p1247_p10 }
  0x6e   : > { %672 = vrot.lane.b32.xlu1 %v1545_v3, %s1337_s30 }
  0x6f   : > { %p1250_p2 = pnand %p1249_p1, %p1243_p4 }
  0x72   : > { %669 = vrot.lane.b32.xlu1 %v245_v6, %s1337_s30 }
  0xcc   : > { %v328_v18 = vpop.permute.xlu1 %327 }
  0xcd   : > { %v334_v19 = vsel %vm332_vm3, %v328_v18, 0 }
  0xce   : > { %1032 = vmatpush3.bf16.msra.mxu1 %v334_v19 }
  0xcf   : > { %1037 = vmatprep.subr.bf16.mxu1 %v1330_v0 }
  0xd0   : > { %v389_v23 = vpop.permute.xlu1 %388 }
  0xd1   : > { %v394_v26 = vsel %vm237_vm0, %v389_v23, 0 }
  0xd4   : > { %v386_v24 = vpop.permute.xlu1 %385 }
  0xd8   : > { %v531_v28 = vpop.permute.xlu1 %530 }
  0xd9   : > { %v536_v30 = vsel %vm237_vm0, %v531_v28, 0 }
  0xdc   : > { %v528_v29 = vpop.permute.xlu1 %527 }
  0xe0   : > { %v673_v31 = vpop.permute.xlu1 %672 }
  0xe1   : > { %v678_v32 = vsel %vm237_vm0, %v673_v31, 0 }
  0xe4   : > { %v670_v33 = vpop.permute.xlu1 %669 }
 0x134   : > { %v288_v8 = vpop.f32.mrb[0].mxu0 }
 0x135   : > { %v1029_v9 = vpop.f32.mrb[1].mxu0  ;;  %v295_v10 = vsel %vm237_vm0, %v288_v8, -inf }
 0x136   : > { %296 = vmax.xlane.f32.xlu0 %v295_v10  ;;  %v291_v11 = vpop.f32.mrb[2].mxu0 }
 0x137   : > { %v1030_v12 = vpop.f32.mrb[3].mxu0 }
 0x1c3   : > { %v297_v15 = vpop.xlane.xlu0 %296 }
 0x1c4   : > { %v1573_v16 = vmax.f32 %v1570_v14, %v297_v15 }
 0x1c6   : > { %v299_v17 = vsub.f32 %v1570_v14, %v1573_v16  ;;  %378 = vst.msk [vmem:[#allocation2] sm:$0xff] %vm228_vm2, %v1573_v16  ;;  %304 = vperm.xlu0 %1154, %v1573_v16  }
 0x245   : > { %v305_v20 = vpop.permute.xlu0 %304 }
 0x246   : > { %v307_v21 = vsub.f32 %v288_v8, %v305_v20 }
 0x248   : > { %v308_v22 = vmul.f32 1.442695, %v307_v21 }
 0x24a   : > { %1156 = vpow2.f32 %v308_v22 }
 0x254   : > { %v1582_v25 = vpop.eup %1156 }
 0x255   : > { %v325_v27 = vpack.c.bf16 %v1582_v25, %v1582_v25  ;;  %v312_v2 = vsel %vm237_vm0, %v1582_v25, 0.0 }
 0x257   : > { %1034 = vmatmul.mubr.msk.bf16.vlgmr.msra.gmra.mrb[0].mxu1 %vm237_vm0, %v325_v27 }
 0x258   : > { %1038 = vmatpush3.bf16.xpose.msra.mxu1 %v394_v26  ;;  %1039 = vmatprep.mubr.msk.bf16.mxu1 %vm1331_vm1, %v1330_v0 }
 0x259   : > { %1049 = vmatprep.subr.bf16.mxu1 %v1330_v0 }
 0x25f   : > { %1040 = vmatmul.mubr.msk.bf16.vlgmr.msra.gmra.mrb[4].mxu1 %vm237_vm0, %v386_v24 }
 0x260   : > { %1050 = vmatpush3.bf16.xpose.msra.mxu1 %v536_v30  ;;  %1051 = vmatprep.mubr.msk.bf16.mxu1 %vm1331_vm1, %v1330_v0 }
 0x261   : > { %1061 = vmatprep.subr.bf16.mxu1 %v1330_v0 }
 0x267   : > { %1052 = vmatmul.mubr.msk.bf16.vlgmr.msra.gmra.mrb[8].mxu1 %vm237_vm0, %v528_v29 }
 0x268   : > { %1062 = vmatpush3.bf16.xpose.msra.mxu1 %v678_v32  ;;  %1063 = vmatprep.mubr.msk.bf16.mxu1 %vm1331_vm1, %v1330_v0 }
 0x26f   : > { %1064 = vmatmul.mubr.msk.bf16.vlgmr.msra.gmra.mrb[12].mxu1 %vm237_vm0, %v670_v33 }
 0x32a   : > { %v1601_v34 = vpop.f32.mrb[0].mxu1 }
 0x32b   : > { %v1035_v35 = vpop.f32.mrb[1].mxu1 }
 0x32c   : > { %v373_v36 = vpop.f32.mrb[2].mxu1  ;;  %v310_v35 = vld [vmem:[#allocation3] sm:$0xff] }
 0x32d   : > { %v1036_v37 = vpop.f32.mrb[3].mxu1 }
 0x332   : > { %v430_v38 = vpop.f32.mrb[4].mxu1 }
 0x333   : > { %v1041_v39 = vpop.f32.mrb[5].mxu1  ;;  %v438_v40 = vsel %vm237_vm0, %v430_v38, -inf }
 0x334   : > { %439 = vmax.xlane.f32.xlu1 %v438_v40  ;;  %v433_v41 = vpop.f32.mrb[6].mxu1 }
 0x335   : > { %v1042_v42 = vpop.f32.mrb[7].mxu1  ;;  %v454_v41 = vld [vmem:[#allocation3 + $0x8] sm:$0xff] }
 0x33a   : > { %v572_v43 = vpop.f32.mrb[8].mxu1 }
 0x33b   : > { %v1053_v44 = vpop.f32.mrb[9].mxu1  ;;  %v580_v45 = vsel %vm237_vm0, %v572_v43, -inf }
 0x33c   : > { %581 = vmax.xlane.f32.xlu0 %v580_v45  ;;  %v575_v46 = vpop.f32.mrb[10].mxu1  ;;  %v318_v45 = vld [vmem:[#allocation4] sm:$0xff] }
 0x33d   : > { %v1054_v47 = vpop.f32.mrb[11].mxu1 }
 0x33e   : > { %v596_v47 = vld [vmem:[#allocation3 + $0x10] sm:$0xff] }
 0x342   : > { %v714_v48 = vpop.f32.mrb[12].mxu1 }
 0x343   : > { %v1065_v49 = vpop.f32.mrb[13].mxu1  ;;  %v722_v50 = vsel %vm237_vm0, %v714_v48, -inf }
 0x344   : > { %723 = vmax.xlane.f32.xlu1 %v722_v50  ;;  %v717_v51 = vpop.f32.mrb[14].mxu1 }
 0x345   : > { %v1066_v52 = vpop.f32.mrb[15].mxu1 }
 0x3c1   : > { %v440_v54 = vpop.xlane.xlu1 %439 }
 0x3c2   : > { %v1609_v55 = vmax.f32 %v1606_v53, %v440_v54  ;;  %v738_v54 = vld [vmem:[#allocation3 + $0x18] sm:$0xff] }
 0x3c4   : > { %v442_v56 = vsub.f32 %v1606_v53, %v1609_v55  ;;  %520 = vst.msk [vmem:[#allocation2 + $0x8] sm:$0xff] %vm228_vm2, %v1609_v55  ;;  %447 = vperm.xlu1 %1155, %v1609_v55  }
 0x3c6   : > { %v443_v32 = vmul.f32 1.442695, %v442_v56 }
 0x3c9   : > { %v582_v58 = vpop.xlane.xlu0 %581 }
 0x3ca   : > { %v583_v59 = vmax.f32 %v579_v57, %v582_v58 }
 0x3cc   : > { %v584_v60 = vsub.f32 %v579_v57, %v583_v59  ;;  %662 = vst.msk [vmem:[#allocation2 + $0x10] sm:$0xff] %vm228_vm2, %v583_v59  ;;  %589 = vperm.xlu0 %1154, %v583_v59  }
 0x3ce   : > { %v585_v21 = vmul.f32 1.442695, %v584_v60 }
 0x3d1   : > { %v724_v62 = vpop.xlane.xlu1 %723 }
 0x3d2   : > { %v725_v63 = vmax.f32 %v721_v61, %v724_v62  ;;  %v462_v62 = vld [vmem:[#allocation4 + $0x8] sm:$0xff] }
 0x3d4   : > { %v726_v1 = vsub.f32 %v721_v61, %v725_v63  ;;  %804 = vst.msk [vmem:[#allocation2 + $0x18] sm:$0xff] %vm228_vm2, %v725_v63  ;;  %731 = vperm.xlu1 %1155, %v725_v63  }
 0x3d6   : > { %v727_v16 = vmul.f32 1.442695, %v726_v1 }
 0x3d8   : > { %470 = vrot.lane.b32.xlu1 %v1545_v3, %s1338_s20 }
 0x3dc   : > { %612 = vrot.lane.b32.xlu1 %v1545_v3, %s1339_s27 }
 0x3e0   : > { %754 = vrot.lane.b32.xlu1 %v1545_v3, %s1340_s28  ;;  %v300_v3 = vmul.f32 1.442695, %v299_v17 }
 0x3eb   : > { %313 = vadd.xlane.f32.xlu0 %v312_v2 }
 0x443   : > { %v448_v4 = vpop.permute.xlu1 %447 }
 0x444   : > { %v450_v5 = vsub.f32 %v430_v38, %v448_v4 }
 0x446   : > { %v451_v6 = vmul.f32 1.442695, %v450_v5 }
 0x448   : > { %1158 = vpow2.f32 %v451_v6 }
 0x44b   : > { %v590_v7 = vpop.permute.xlu0 %589 }
 0x44c   : > { %v592_v8 = vsub.f32 %v572_v43, %v590_v7 }
 0x44e   : > { %v593_v9 = vmul.f32 1.442695, %v592_v8  ;;  %v604_v8 = vld [vmem:[#allocation4 + $0x10] sm:$0xff] }
 0x450   : > { %1160 = vpow2.f32 %v593_v9 }
 0x452   : > { %v1159_v10 = vpop.eup %1158 }
 0x453   : > { %v732_v11 = vpop.permute.xlu1 %731  ;;  %v456_v12 = vsel %vm237_vm0, %v1159_v10, 0.0  ;;  %v469_v22 = vpack.c.bf16 %v1159_v10, %v1159_v10 }
 0x454   : > { %v734_v13 = vsub.f32 %v714_v48, %v732_v11  ;;  %457 = vadd.xlane.f32.xlu1 %v456_v12 }
 0x456   : > { %v735_v15 = vmul.f32 1.442695, %v734_v13 }
 0x457   : > { %v471_v18 = vpop.permute.xlu1 %470 }
 0x458   : > { %1162 = vpow2.f32 %v735_v15  ;;  %v476_v19 = vsel %vm332_vm3, %v471_v18, 0  ;;  %v746_v18 = vld [vmem:[#allocation4 + $0x18] sm:$0xff] }
 0x459   : > { %1044 = vmatpush3.bf16.msra.mxu0 %v476_v19  ;;  %1164 = vpow2.f32 %v300_v3 }
 0x45a   : > { %v1161_v20 = vpop.eup %1160  ;;  %1055 = vmatprep.subr.bf16.mxu0 %v1330_v0  ;;  %1166 = vpow2.f32 %v585_v21 }
 0x45b   : > { %v598_v23 = vsel %vm237_vm0, %v1161_v20, 0.0  ;;  %v613_v24 = vpop.permute.xlu1 %612  ;;  %1168 = vpow2.f32 %v727_v16  ;;  %v611_v26 = vpack.c.bf16 %v1161_v20, %v1161_v20 }
 0x45c   : > { %1046 = vmatmul.mubr.msk.bf16.vlgmr.msra.gmra.mrb[4].mxu0 %vm237_vm0, %v469_v22  ;;  %599 = vadd.xlane.f32.xlu0 %v598_v23  ;;  %v618_v14 = vsel %vm332_vm3, %v613_v24, 0  ;;  %1170 = vpow2.f32 %v443_v32 }
 0x45d   : > { %1056 = vmatpush3.bf16.msra.mxu0 %v618_v14  ;;  %1057 = vmatprep.mubr.msk.bf16.mxu0 %vm1331_vm1, %v1330_v0 }
 0x45e   : > { %1067 = vmatprep.subr.bf16.mxu0 %v1330_v0 }
 0x45f   : > { %v755_v17 = vpop.permute.xlu1 %754 }
 0x460   : > { %v760_v27 = vsel %vm332_vm3, %v755_v17, 0 }
 0x462   : > { %v1163_v25 = vpop.eup %1162 }
 0x463   : > { %v740_v28 = vsel %vm237_vm0, %v1163_v25, 0.0  ;;  %v1165_v29 = vpop.eup %1164  ;;  %v753_v31 = vpack.c.bf16 %v1163_v25, %v1163_v25 }
 0x464   : > { %1058 = vmatmul.mubr.msk.bf16.vlgmr.msra.gmra.mrb[8].mxu0 %vm237_vm0, %v611_v26  ;;  %741 = vadd.xlane.f32.xlu0 %v740_v28  ;;  %v1167_v30 = vpop.eup %1166  ;;  %v311_v36 = vmul.f32 %v1165_v29, %v310_v35 }
 0x465   : > { %321 = vperm.xlu1 %1155, %v1165_v29   ;;  %1068 = vmatpush3.bf16.msra.mxu0 %v760_v27  ;;  %v1169_v33 = vpop.eup %1168  ;;  %v597_v50 = vmul.f32 %v1167_v30, %v596_v47 }
 0x466   : > { %1069 = vmatprep.mubr.msk.bf16.mxu0 %vm1331_vm1, %v1330_v0  ;;  %v1171_v38 = vpop.eup %1170  ;;  %v739_v55 = vmul.f32 %v1169_v33, %v738_v54 }
 0x467   : > { %v455_v42 = vmul.f32 %v1171_v38, %v454_v41 }
 0x469   : > { %607 = vperm.xlu1 %1155, %v1167_v30  }
 0x46c   : > { %1070 = vmatmul.mubr.msk.bf16.vlgmr.msra.gmra.mrb[12].mxu0 %vm237_vm0, %v753_v31 }
 0x46d   : > { %749 = vperm.xlu1 %1155, %v1169_v33  }
 0x478   : > { %v314_v37 = vpop.xlane.xlu0 %313 }
 0x479   : > { %v315_v39 = vadd.f32 %v314_v37, %v311_v36 }
 0x47a   : > { %465 = vperm.xlu0 %1154, %v1171_v38  }
 0x47b   : > { %317 = vst.msk [vmem:[#allocation3] sm:$0xff] %vm228_vm2, %v315_v39 }
 0x482   : > { %v809_v0 = vld [vmem:[#allocation3] sm:$0xff] }
 0x483   : > { %1172 = vrcp.f32 %v809_v0 }
 0x48d   : > { %v1173_v40 = vpop.eup %1172 }
 0x48e   : > { %813 = vperm.xlu0 %1154, %v1173_v40  }
 0x4e1   : > { %v458_v43 = vpop.xlane.xlu1 %457 }
 0x4e2   : > { %v459_v44 = vadd.f32 %v458_v43, %v455_v42 }
 0x4e4   : > { %460 = vst.msk [vmem:[#allocation3 + $0x8] sm:$0xff] %vm228_vm2, %v459_v44 }
 0x4e5   : > { %v322_v46 = vpop.permute.xlu1 %321 }
 0x4e6   : > { %v324_v48 = vmul.f32 %v322_v46, %v318_v45 }
 0x4e8   : > { %v376_v49 = vadd.f32 %v1601_v34, %v324_v48 }
 0x4e9   : > { %v600_v51 = vpop.xlane.xlu0 %599  ;;  %v608_v9 = vpop.permute.xlu1 %607 }
 0x4ea   : > { %377 = vst.msk [vmem:[#allocation4] sm:$0xff] %vm237_vm0, %v376_v49  ;;  %v601_v52 = vadd.f32 %v600_v51, %v597_v50  ;;  %v610_v10 = vmul.f32 %v608_v9, %v604_v8 }
 0x4eb   : > { %v818_v53 = vld [vmem:[#allocation3 + $0x8] sm:$0xff] }
 0x4ec   : > { %602 = vst.msk [vmem:[#allocation3 + $0x10] sm:$0xff] %vm228_vm2, %v601_v52  ;;  %1174 = vrcp.f32 %v818_v53 }
 0x4ed   : > { %v750_v19 = vpop.permute.xlu1 %749 }
 0x4ee   : > { %v752_v20 = vmul.f32 %v750_v19, %v746_v18 }
 0x4f1   : > { %v742_v56 = vpop.xlane.xlu0 %741  ;;  %v808_v33 = vld [vmem:[#allocation4] sm:$0xff] }
 0x4f2   : > { %v743_v57 = vadd.f32 %v742_v56, %v739_v55 }
 0x4f3   : > { %v827_v58 = vld [vmem:[#allocation3 + $0x10] sm:$0xff] }
 0x4f4   : > { %744 = vst.msk [vmem:[#allocation3 + $0x18] sm:$0xff] %vm228_vm2, %v743_v57  ;;  %1176 = vrcp.f32 %v827_v58 }
 0x4f6   : > { %v1175_v59 = vpop.eup %1174 }
 0x4f7   : > { %822 = vperm.xlu1 %1155, %v1175_v59  }
 0x4f9   : > { %v466_v63 = vpop.permute.xlu0 %465 }
 0x4fa   : > { %v468_v1 = vmul.f32 %v466_v63, %v462_v62 }
 0x4fb   : > { %v836_v34 = vld [vmem:[#allocation3 + $0x18] sm:$0xff] }
 0x4fc   : > { %1178 = vrcp.f32 %v836_v34 }
 0x4fe   : > { %v1177_v60 = vpop.eup %1176 }
 0x4ff   : > { %831 = vperm.xlu0 %1154, %v1177_v60  }
 0x506   : > { %v1179_v61 = vpop.eup %1178 }
 0x507   : > { %840 = vperm.xlu1 %1155, %v1179_v61  }
 0x50d   : > { %v814_v26 = vpop.permute.xlu0 %813 }
 0x50e   : > { %v816_v36 = vmul.f32 %v814_v26, %v808_v33 }
 0x52f   : > { %v512_v2 = vpop.f32.mrb[4].mxu0 }
 0x530   : > { %v518_v4 = vadd.f32 %v512_v2, %v468_v1  ;;  %v1047_v5 = vpop.f32.mrb[5].mxu0 }
 0x531   : > { %v515_v6 = vpop.f32.mrb[6].mxu0 }
 0x532   : > { %519 = vst.msk [vmem:[#allocation4 + $0x8] sm:$0xff] %vm237_vm0, %v518_v4  ;;  %v1048_v7 = vpop.f32.mrb[7].mxu0 }
 0x537   : > { %v654_v11 = vpop.f32.mrb[8].mxu0 }
 0x538   : > { %v660_v12 = vadd.f32 %v654_v11, %v610_v10  ;;  %v1059_v13 = vpop.f32.mrb[9].mxu0 }
 0x539   : > { %v657_v3 = vpop.f32.mrb[10].mxu0  ;;  %v817_v16 = vld [vmem:[#allocation4 + $0x8] sm:$0xff] }
 0x53a   : > { %661 = vst.msk [vmem:[#allocation4 + $0x10] sm:$0xff] %vm237_vm0, %v660_v12  ;;  %v1060_v15 = vpop.f32.mrb[11].mxu0 }
 0x53f   : > { %v796_v21 = vpop.f32.mrb[12].mxu0 }
 0x540   : > { %v802_v22 = vadd.f32 %v796_v21, %v752_v20  ;;  %v1071_v23 = vpop.f32.mrb[13].mxu0 }
 0x541   : > { %v799_v24 = vpop.f32.mrb[14].mxu0  ;;  %v826_v27 = vld [vmem:[#allocation4 + $0x10] sm:$0xff] }
 0x542   : > { %803 = vst.msk [vmem:[#allocation4 + $0x18] sm:$0xff] %vm237_vm0, %v802_v22  ;;  %v1072_v14 = vpop.f32.mrb[15].mxu0 }
 0x549   : > { %v835_v30 = vld [vmem:[#allocation4 + $0x18] sm:$0xff] }
 0x576   : > { %v823_v17 = vpop.permute.xlu1 %822 }
 0x577   : > { %v825_v25 = vmul.f32 %v823_v17, %v817_v16 }
 0x579   : > { %845 = vrot.lane.b32.xlu0 %v825_v25, %s1341_s29 }
 0x57e   : > { %v832_v28 = vpop.permute.xlu0 %831 }
 0x57f   : > { %v834_v29 = vmul.f32 %v832_v28, %v826_v27 }
 0x581   : > { %849 = vrot.lane.b32.xlu1 %v834_v29, %s1342_s25 }
 0x586   : > { %v841_v31 = vpop.permute.xlu1 %840 }
 0x587   : > { %v843_v32 = vmul.f32 %v841_v31, %v835_v30 }
 0x589   : > { %853 = vrot.lane.b32.xlu0 %v843_v32, %s1343_s26 }
 0x5eb   : > { %v846_v35 = vpop.permute.xlu0 %845 }
 0x5ec   : > { %v856_v38 = vsel %vm237_vm0, %v816_v36, %v846_v35 }
 0x5f3   : > { %v850_v37 = vpop.permute.xlu1 %849 }
 0x5f4   : > { %v858_v39 = vsel %vm857_vm4, %v856_v38, %v850_v37 }
 0x5fb   : > { %v854_v0 = vpop.permute.xlu0 %853 }
 0x5fc   : > { %v860_v40 = vsel %vm859_vm5, %v858_v39, %v854_v0 }
 0x5fd   : > { %862 = vst.msk [vmem:[%s222_s8] sm:$0xff] %vm861_vm6, %v860_v40 }
 0x5fe   : > { %1253 = shalt.err (!%p1250_p2)
}
 0x5ff   : > { %s1254_s15 = scalar_lea.hbm %s1659_s7, 128  ;;  %s1258_s27 = scalar_lea.hbm %s1710_s2, 256 }
 0x600   : > { %p1255_p9 = scmp.ne.s32.totalorder %s1659_s7, %s1254_s15  ;;  %p1259_p6 = scmp.lt.u32.totalorder %s1659_s7, %s1710_s2 }
 0x601   : > { %p1260_p13 = scmp.lt.u32.totalorder %s1258_s27, %s1254_s15  ;;  %p1262_p0 = scmp.lt.u32.totalorder %s1254_s15, %s1659_s7 }
 0x602   : > { %p1256_p11 = pnand %p1255_p9, %p1723_p5 }
 0x603   : > { %p1261_p8 = por %p1260_p13, %p1259_p6 }
 0x604   : > { %p1257_p3 = pneg %p1256_p11 }
 0x605   : > { %p1263_p7 = por %p1262_p0, %p1261_p8 }
 0x607   : > { %p1264_p4 = pnand %p1263_p7, %p1257_p3 }
 0x609   : > { %1267 = shalt.err (!%p1264_p4)
}
 0x60a   : > { %1077 = dma.vmem_to_hbm [thread:$0]  (%p1723_p5), %s1661_s4, 128, %s1659_s7, %s864_s12  }
 0x60b PF: > { %s890_s25 = sand.u32 1, %s1306_s9   ;;  %p1724_p10 = scmp.ne.s32.totalorder %s1716_s24, 0 }
 0x60c   : > { %p1725_p12 = scmp.ge.s32.totalorder %s1326_s14, 2  ;;  %s891_s26 = scalar_lea.sflag [#allocation7], %s890_s25 }
 0x60e   : > { %p1087_p1 = pnand %p1725_p12, %p1724_p10 }
 0x610   : > { %1301 = dma.done.wait (!%p1087_p1), %s891_s26, 128  }
 0x611   : > { %1303 = vsyncadd (!%p1087_p1), %s891_s26, 4294967168  ;;  %s21_s14 = sadd.s32 1, %s1326_s14   ;;  %s1726_s9 = smov %s1310_s10 }
 0x612   : > { %p18_p2 = scmp.ge.s32.totalorder %s21_s14, 4   ;;  %s1727_s10 = smov %s1314_s11 }
 0x613   : > { %s1728_s11 = smov %s1416_s23  ;;  %s1729_s12 = smov %s1322_s13 }
 0x614   : > { %s1730_s13 = smov %s1732_s17  ;;  %20 = sbr.rel (!%p18_p2) target bundleno = 8 (0x8), region = 103 }
 0x61b   :  { %896 = vsyncpa [#allocation6], 1 }
 0x61c   :  { %898 = vsyncpa [#allocation6 + $0x1], 1 }
 0x61d   :  { %899 = vsyncpa [#allocation9], 1 }
 0x61e   :  { %901 = vsyncpa [#allocation9 + $0x1], 1 }
 0x61f   :  { %902 = vsyncpa [#allocation7], 1 }
 0x620   :  { %904 = vsyncpa [#allocation7 + $0x1], 1 }

// kernel: _lambda_.38
= control target key start
LH: loop header
LB: loop body
LE: loop exit
PB: predicated region body
PF: predicated region fallthrough
CT: control target
= control target key end

     0   :  { %8 = vsyncpa [#allocation3], 0  ;;  %s319_s0 = inlined_call_operand.hbm [shape: f32[16,32], index: 0, kind: input, shape index: {}]   ;;  %s320_s1 = inlined_call_operand.hbm [shape: f32[1,32], index: 1, kind: input, shape index: {}]   ;;  %s321_s2 = inlined_call_operand.hbm [shape: f32[1,32], index: 2, kind: input, shape index: {}]   ;;  %s322_s3 = inlined_call_operand.hbm [shape: f32[16,32], index: 3, kind: output, shape index: {}]  }
   0x1   :  { %9 = vsyncpa [#allocation6], 0 }
   0x2   :  { %10 = vsyncpa [#allocation4], 0  ;;  %s226_s12 = smov [#allocation5]   ;;  %s227_s14 = smov [#allocation2]  }
   0x3   :  { %s29_s13 = sshll.u32 %s226_s12, 4  ;;  %s16_s15 = sshll.u32 %s227_s14, 4  ;;  %s30_s13 = int_to_ptr.vmem [resolvable:$true] %s29_s13  ;;  %s252_s15 = int_to_ptr.vmem [resolvable:$true] %s16_s15 }
   0x4   :  { %s132_s18 = scalar_lea.hbm %s320_s1, 16 }
   0x5   :  { %p133_p0 = scmp.ne.s32.totalorder %s320_s1, %s132_s18  ;;  %p136_p1 = scmp.lt.u32.totalorder %s132_s18, %s320_s1 }
   0x7   :  { %p138_p2 = pnand %p136_p1, %p133_p0 }
   0x9   :  { %141 = shalt.err (!%p138_p2)
}
   0xa   :  { %s142_s23 = scalar_lea.vmem %s30_s13, 16  ;;  %s146_s24 = scalar_lea.vmem %s30_s13, 32 }
   0xb   :  { %p143_p3 = scmp.ne.s32.totalorder %s30_s13, %s142_s23  ;;  %p147_p4 = scmp.lt.s32.totalorder %s30_s13, %s30_s13 }
   0xc   :  { %p148_p5 = scmp.lt.s32.totalorder %s146_s24, %s142_s23 }
   0xe   :  { %p149_p6 = por %p148_p5, %p147_p4 }
  0x10   :  { %p150_p7 = pnand %p149_p6, %p143_p3 }
  0x12   :  { %153 = shalt.err (!%p150_p7)
}
  0x13   :  { %32 = dma.hbm_to_vmem [thread:$0]  %s320_s1, 16, %s30_s13, [#allocation6]  }
  0x14   :  { %s154_s29 = scalar_lea.hbm %s319_s0, 256 }
  0x15   :  { %p155_p8 = scmp.ne.s32.totalorder %s319_s0, %s154_s29  ;;  %p158_p9 = scmp.lt.u32.totalorder %s154_s29, %s319_s0 }
  0x17   :  { %p160_p10 = pnand %p158_p9, %p155_p8 }
  0x19   :  { %163 = shalt.err (!%p160_p10)
}
  0x1a   :  { %s164_s7 = scalar_lea.vmem %s252_s15, 256  ;;  %p169_p12 = scmp.lt.s32.totalorder %s252_s15, %s252_s15 }
  0x1b   :  { %p165_p11 = scmp.ne.s32.totalorder %s252_s15, %s164_s7  ;;  %p170_p13 = scmp.lt.s32.totalorder %s164_s7, %s164_s7 }
  0x1d   :  { %p171_p0 = por %p170_p13, %p169_p12 }
  0x1f   :  { %p172_p1 = pnand %p171_p0, %p165_p11 }
  0x21   :  { %175 = shalt.err (!%p172_p1)
}
  0x22   :  { %s228_s1 = smov 128   ;;  %s229_s8 = smov 8  }
  0x23   :  { %22 = dma.hbm_to_vmem [thread:$0]  %s319_s0, 256, %s252_s15, [#allocation3], %s228_s1, %s228_s1, %s229_s8  }
  0x24   :  { %s230_s11 = smov [#allocation7]   ;;  %s176_s16 = scalar_lea.hbm %s321_s2, 16 }
  0x25   :  { %s39_s12 = sshll.u32 %s230_s11, 4  ;;  %p177_p2 = scmp.ne.s32.totalorder %s321_s2, %s176_s16  ;;  %s40_s12 = int_to_ptr.vmem [resolvable:$true] %s39_s12 }
  0x26   :  { %p180_p3 = scmp.lt.u32.totalorder %s176_s16, %s321_s2 }
  0x28   :  { %p182_p4 = pnand %p180_p3, %p177_p2 }
  0x2a   :  { %185 = shalt.err (!%p182_p4)
}
  0x2b   :  { %s186_s21 = scalar_lea.vmem %s40_s12, 16  ;;  %s190_s0 = scalar_lea.vmem %s40_s12, 32 }
  0x2c   :  { %p187_p5 = scmp.ne.s32.totalorder %s40_s12, %s186_s21  ;;  %p191_p6 = scmp.lt.s32.totalorder %s40_s12, %s40_s12 }
  0x2d   :  { %p192_p7 = scmp.lt.s32.totalorder %s190_s0, %s186_s21 }
  0x2f   :  { %p193_p8 = por %p192_p7, %p191_p6 }
  0x31   :  { %p194_p9 = pnand %p193_p8, %p187_p5 }
  0x33   :  { %197 = shalt.err (!%p194_p9)
}
  0x34   :  { %42 = dma.hbm_to_vmem [thread:$0]  %s321_s2, 16, %s40_s12, [#allocation6]  }
  0x35   :  { %220 = dma.done.wait [#allocation3], 256  }
  0x36   :  { %221 = vsyncadd [#allocation3], 4294967040 }
  0x37   :  { %222 = dma.done.wait [#allocation6], 32  }
  0x38   :  { %223 = vsyncadd [#allocation6], 4294967264  ;;  %vm54_vm0 = vcmask 261120   ;;  %v52_v0 = vld [vmem:[#allocation2] sm:$0xff]  ;;  %v53_v1 = vld [vmem:[#allocation2 + $0x8] sm:$0xff]  ;;  %s231_s2 = smov [#allocation8]  }
  0x39   :  { %v55_v2 = vsel %vm54_vm0, %v52_v0, 0.0  ;;  %v58_v3 = vsel %vm54_vm0, %v53_v1, 0.0  ;;  %v120_v21 = vld [vmem:[#allocation5] ss:$0 sm:$0xff]  ;;  %v121_v23 = vld [vmem:[#allocation7] ss:$0 sm:$0xff] }
  0x3a   :  { %56 = vadd.xlane.f32.xlu0 %v55_v2  ;;  %s107_s23 = sshll.u32 %s231_s2, 4  ;;  %s108_s23 = int_to_ptr.vmem [resolvable:$true] %s107_s23 }
  0x3b   :  { %s198_s24 = scalar_lea.vmem %s108_s23, 256  ;;  %p203_p11 = scmp.lt.s32.totalorder %s108_s23, %s108_s23 }
  0x3c   :  { %p199_p10 = scmp.ne.s32.totalorder %s108_s23, %s198_s24  ;;  %p204_p12 = scmp.lt.s32.totalorder %s198_s24, %s198_s24 }
  0x3e   :  { %59 = vadd.xlane.f32.xlu0 %v58_v3  ;;  %p205_p13 = por %p204_p12, %p203_p11 }
  0x40   :  { %p206_p0 = pnand %p205_p13, %p199_p10 }
  0xc7   :  { %v57_v4 = vpop.xlane.xlu0 %56 }
  0xc8   :  { %v62_v5 = vmul.f32 0.03125, %v57_v4 }
  0xca   :  { %v64_v6 = vsub.f32 %v52_v0, %v62_v5 }
  0xcb   :  { %v60_v7 = vpop.xlane.xlu0 %59 }
  0xcc   :  { %v63_v8 = vmul.f32 0.03125, %v60_v7  ;;  %v66_v9 = vmul.f32 %v64_v6, %v64_v6 }
  0xce   :  { %v65_v10 = vsub.f32 %v53_v1, %v63_v8  ;;  %v68_v11 = vsel %vm54_vm0, %v66_v9, 0.0 }
  0xcf   :  { %69 = vadd.xlane.f32.xlu1 %v68_v11 }
  0xd0   :  { %v67_v12 = vmul.f32 %v65_v10, %v65_v10 }
  0xd2   :  { %v71_v13 = vsel %vm54_vm0, %v67_v12, 0.0 }
  0xd3   :  { %72 = vadd.xlane.f32.xlu1 %v71_v13 }
 0x15c   :  { %v70_v14 = vpop.xlane.xlu1 %69 }
 0x15d   :  { %v74_v15 = vmul.f32 0.03125, %v70_v14 }
 0x15f   :  { %v76_v16 = vadd.f32 1e-05, %v74_v15 }
 0x160   :  { %v73_v17 = vpop.xlane.xlu1 %72 }
 0x161   :  { %128 = vrsqrt.f32 %v76_v16  ;;  %v75_v18 = vmul.f32 0.03125, %v73_v17 }
 0x163   :  { %v77_v19 = vadd.f32 1e-05, %v75_v18 }
 0x165   :  { %130 = vrsqrt.f32 %v77_v19 }
 0x16b   :  { %v129_v20 = vpop.eup %128 }
 0x16c   :  { %v80_v22 = vmul.f32 %v129_v20, %v64_v6 }
 0x16e   :  { %v89_v24 = vmul.f32 %v120_v21, %v80_v22 }
 0x16f   :  { %v131_v25 = vpop.eup %130 }
 0x170   :  { %v81_v26 = vmul.f32 %v131_v25, %v65_v10  ;;  %v98_v27 = vadd.f32 %v121_v23, %v89_v24 }
 0x172   :  { %v90_v28 = vmul.f32 %v120_v21, %v81_v26  ;;  %100 = vst.msk [vmem:[#allocation8] sm:$0xff] %vm54_vm0, %v98_v27 }
 0x174   :  { %v99_v29 = vadd.f32 %v121_v23, %v90_v28 }
 0x176   :  { %101 = vst.msk [vmem:[#allocation8 + $0x8] sm:$0xff] %vm54_vm0, %v99_v29 }
 0x177   :  { %209 = shalt.err (!%p206_p0)
}
 0x178   :  { %s210_s27 = scalar_lea.hbm %s322_s3, 256 }
 0x179   :  { %p211_p1 = scmp.ne.s32.totalorder %s322_s3, %s210_s27  ;;  %p214_p2 = scmp.lt.u32.totalorder %s210_s27, %s322_s3 }
 0x17b   :  { %p216_p3 = pnand %p214_p2, %p211_p1 }
 0x17d   :  { %219 = shalt.err (!%p216_p3)
}
 0x17e   :  { %113 = dma.vmem_to_hbm [thread:$0]  %s108_s23, 256, %s322_s3, [#allocation4], %s228_s1, %s228_s1, %s229_s8  }
 0x17f   :  { %224 = dma.done.wait [#allocation4], 256  }
 0x180   :  { %225 = vsyncadd [#allocation4], 4294967040 }
 0x181   :  { %117 = vsyncpa [#allocation3], 1 }
 0x182   :  { %118 = vsyncpa [#allocation6], 1 }
 0x183   :  { %119 = vsyncpa [#allocation4], 1 }

</bundles_post_ra>
